<compile_context>
chip_gen: v7x
topology: tpu7x:2x2x1
jax: 0.10.0
libtpu: 0.0.40
codegen_flags: <defaults>
</compile_context>

<pallas_src>
import functools

import jax
import jax.numpy as jnp
from jax import lax
from jax.experimental import pallas as pl
from jax.experimental.pallas import tpu as pltpu


# ---------------------------------------------------------------------------
# Fused ResBlock kernel (one batch element per grid step)
# ---------------------------------------------------------------------------
def _resblock_kernel(x_ref, w1_ref, b1_ref, w2_ref, b2_ref, w3_ref, b3_ref,
                     o_ref, col_ref, *, D, H, W):
    """Refs:
      x_ref  : (1, C, D*H*W)   channels-first, spatial flattened on lanes
      w1/w2  : (C, 27*C)       folded 3x3x3 weights, column k = tap*C + ci
      b1/b2/b3: (C, 1)
      w3     : (C, C)          pointwise weights, row = out channel
      o_ref  : (1, C, D*H*W)
      col_ref: (27*C, D*H*W)   f32 im2col scratch (reused by both 3x3x3 convs)
    """
    C = x_ref.shape[1]
    HW = H * W
    DHW = D * HW
    PAD = HW + W + 1                         # >= max |tap shift| = HW + W + 1

    x = x_ref[0].astype(jnp.float32)         # (C, DHW)

    # --- boundary validity masks for tap offsets -1 / 0 / +1 along d, h, w ----
    m_idx = lax.broadcasted_iota(jnp.int32, (C, DHW), 1)
    d_idx = lax.div(m_idx, HW)
    h_idx = lax.rem(lax.div(m_idx, W), H)
    w_idx = lax.rem(m_idx, W)

    def _valid(idx, size):
        return [jnp.logical_and(idx + off >= 0, idx + off < size)
                for off in (-1, 0, 1)]

    d_ok, h_ok, w_ok = _valid(d_idx, D), _valid(h_idx, H), _valid(w_idx, W)
    zpad = jnp.zeros((C, PAD), jnp.float32)

    def _im2col(src):
        """src: (C, DHW) f32.  Fills col_ref[k, m] = src[ci, m + shift(tap)] with
        zeros at the d/h/w halo, where k = (kd*9 + kh*3 + kw)*C + ci."""
        xz = jnp.concatenate([zpad, src, zpad], axis=1)      # (C, DHW + 2*PAD)
        for kd in range(3):
            for kh in range(3):
                for kw in range(3):
                    tap = kd * 9 + kh * 3 + kw
                    shift = (kd - 1) * HW + (kh - 1) * W + (kw - 1)
                    shifted = xz[:, PAD + shift:PAD + shift + DHW]
                    mask = d_ok[kd] & h_ok[kh] & w_ok[kw]
                    col_ref[tap * C:(tap + 1) * C, :] = jnp.where(mask, shifted, 0.0)

    # conv1 (3x3x3) + bias + ReLU   -- h stays in f32, never leaves VMEM
    _im2col(x)
    h = jnp.dot(w1_ref[...], col_ref[...], preferred_element_type=jnp.float32)
    h = jnp.maximum(h + b1_ref[...], 0.0)

    # conv2 (3x3x3) + bias + ReLU
    _im2col(h)
    g = jnp.dot(w2_ref[...], col_ref[...], preferred_element_type=jnp.float32)
    g = jnp.maximum(g + b2_ref[...], 0.0)

    # 1x1x1 conv + bias + residual
    y = jnp.dot(w3_ref[...], g, preferred_element_type=jnp.float32)
    y = y + b3_ref[...] + x
    o_ref[0] = y.astype(o_ref.dtype)


# ---------------------------------------------------------------------------
# Wrapper
# ---------------------------------------------------------------------------
def _resblock_pallas(N, C, D, H, W, dtype):
    DHW = D * H * W
    kernel = functools.partial(_resblock_kernel, D=D, H=H, W=W)
    return pl.pallas_call(
        kernel,
        out_shape=jax.ShapeDtypeStruct((N, C, DHW), dtype),
        grid=(N,),
        in_specs=[
            pl.BlockSpec((1, C, DHW), lambda n: (n, 0, 0)),      # x (channels-first)
            pl.BlockSpec((C, 27 * C), lambda n: (0, 0)),         # w1
            pl.BlockSpec((C, 1), lambda n: (0, 0)),              # b1
            pl.BlockSpec((C, 27 * C), lambda n: (0, 0)),         # w2
            pl.BlockSpec((C, 1), lambda n: (0, 0)),              # b2
            pl.BlockSpec((C, C), lambda n: (0, 0)),              # w3 (row = out ch)
            pl.BlockSpec((C, 1), lambda n: (0, 0)),              # b3
        ],
        out_specs=pl.BlockSpec((1, C, DHW), lambda n: (n, 0, 0)),
        scratch_shapes=[pltpu.VMEM((27 * C, DHW), jnp.float32)],
        compiler_params=pltpu.CompilerParams(
            dimension_semantics=("parallel",),
            vmem_limit_bytes=32 * 1024 * 1024),
    )


@jax.jit
def resblock_forward(params, x_ncdhw):
    """x_ncdhw: (N, C, D, H, W) — PyTorch Conv3d layout. Returns NCDHW."""
    N, C, D, H, W = x_ncdhw.shape
    DHW = D * H * W
    # Free, contiguous reshapes — no wrapper transposes / pads / HBM round trips.
    x_flat = x_ncdhw.reshape(N, C, DHW)
    # Fold conv weights to (Cout, 27*Cin), column order k = tap*Cin + ci (tiny arrays).
    w1 = params["w1"].transpose(2, 0, 1).reshape(C, 27 * C)
    w2 = params["w2"].transpose(2, 0, 1).reshape(C, 27 * C)
    w3 = params["w3"].T                                          # (Cout, Cin)
    b1 = params["b1"].reshape(C, 1)
    b2 = params["b2"].reshape(C, 1)
    b3 = params["b3"].reshape(C, 1)
    out = _resblock_pallas(N, C, D, H, W, x_ncdhw.dtype)(
        x_flat, w1, b1, w2, b2, w3, b3)
    return out.reshape(N, C, D, H, W)


def init_resblock_params(key, chan, dtype=jnp.float32):
    ks = jax.random.split(key, 6)
    s3 = 1.0 / jnp.sqrt(27.0 * chan)   # fan_in = 3*3*3*chan
    s1 = 1.0 / jnp.sqrt(1.0 * chan)    # fan_in = chan
    return {
        "w1": jax.random.normal(ks[0], (27, chan, chan), dtype) * s3,
        "b1": jax.random.normal(ks[1], (chan,), dtype) * s3,
        "w2": jax.random.normal(ks[2], (27, chan, chan), dtype) * s3,
        "b2": jax.random.normal(ks[3], (chan,), dtype) * s3,
        "w3": jax.random.normal(ks[4], (chan, chan), dtype) * s1,
        "b3": jax.random.normal(ks[5], (chan,), dtype) * s1,
    }


# ---------------------------------------------------------------------------
# Pure-JAX reference (correctness check)
# ---------------------------------------------------------------------------
def _conv3d_ref(x_ndhwc, w_27, b):
    C = x_ndhwc.shape[-1]
    w = w_27.reshape(3, 3, 3, C, C)  # DHWIO
    y = lax.conv_general_dilated(
        x_ndhwc, w, window_strides=(1, 1, 1), padding="SAME",
        dimension_numbers=("NDHWC", "DHWIO", "NDHWC"))
    return y + b


def resblock_ref(params, x_ncdhw):
    x = jnp.transpose(x_ncdhw, (0, 2, 3, 4, 1))
    h = jax.nn.relu(_conv3d_ref(x, params["w1"], params["b1"]))
    h = jax.nn.relu(_conv3d_ref(h, params["w2"], params["b2"]))
    y = jnp.einsum("ndhwc,co->ndhwo", h, params["w3"]) + params["b3"] + x
    return jnp.transpose(y, (0, 4, 1, 2, 3))


if __name__ == "__main__":
    key = jax.random.PRNGKey(0)
    k_x, k_p = jax.random.split(key)

    N, C, D, H, W = 2, 4, 8, 8, 8
    x = jax.random.normal(k_x, (N, C, D, H, W), jnp.float32)
    params = init_resblock_params(k_p, C)

    out = jax.block_until_ready(resblock_forward(params, x))

    ref = resblock_ref(params, x)
    assert out.shape == (N, C, D, H, W)
    max_err = jnp.max(jnp.abs(out - ref))
    assert jnp.allclose(out, ref, atol=1e-4, rtol=1e-4), f"max err {max_err}"

    print("KERNEL_OK")
</pallas_src>

<mosaic_0001>
module attributes {stable_mosaic.version = 11 : i64} {
  func.func @_resblock_kernel(%arg0: i32, %arg1: memref<1x4x512xf32, #tpu.memory_space<vmem>>, %arg2: memref<4x108xf32, #tpu.memory_space<vmem>>, %arg3: memref<4x1xf32, #tpu.memory_space<vmem>>, %arg4: memref<4x108xf32, #tpu.memory_space<vmem>>, %arg5: memref<4x1xf32, #tpu.memory_space<vmem>>, %arg6: memref<4x4xf32, #tpu.memory_space<vmem>>, %arg7: memref<4x1xf32, #tpu.memory_space<vmem>>, %arg8: memref<1x4x512xf32, #tpu.memory_space<vmem>>, %arg9: memref<108x512xf32, #tpu.memory_space<vmem>>) attributes {dimension_semantics = [#tpu.dimension_semantics<parallel>], iteration_bounds = array<i64: 2>, scalar_prefetch = 0 : i64, scratch_operands = 1 : i64, tpu.core_type = #tpu.core_type<tc>, window_params = [{transform_indices = @transform_0, window_bounds = array<i64: 1, 4, 512>}, {pipeline_mode = #tpu.pipeline_mode<synchronous>, transform_indices = @transform_1, window_bounds = array<i64: 4, 108>}, {pipeline_mode = #tpu.pipeline_mode<synchronous>, transform_indices = @transform_2, window_bounds = array<i64: 4, 1>}, {pipeline_mode = #tpu.pipeline_mode<synchronous>, transform_indices = @transform_3, window_bounds = array<i64: 4, 108>}, {pipeline_mode = #tpu.pipeline_mode<synchronous>, transform_indices = @transform_4, window_bounds = array<i64: 4, 1>}, {pipeline_mode = #tpu.pipeline_mode<synchronous>, transform_indices = @transform_5, window_bounds = array<i64: 4, 4>}, {pipeline_mode = #tpu.pipeline_mode<synchronous>, transform_indices = @transform_6, window_bounds = array<i64: 4, 1>}, {transform_indices = @transform_7, window_bounds = array<i64: 1, 4, 512>}]} {
    %c0 = arith.constant 0 : index
    %c0_0 = arith.constant 0 : index
    %c0_1 = arith.constant 0 : index
    %0 = vector.load %arg1[%c0, %c0_0, %c0_1] : memref<1x4x512xf32, #tpu.memory_space<vmem>>, vector<1x4x512xf32>
    %1 = vector.shape_cast %0 : vector<1x4x512xf32> to vector<4x512xf32>
    %2 = tpu.iota {dimensions = array<i32: 1>} : vector<4x512xi32>
    %c64_i32 = arith.constant 64 : i32
    %3 = vector.broadcast %c64_i32 : i32 to vector<4x512xi32>
    %4 = arith.divsi %2, %3 : vector<4x512xi32>
    %c8_i32 = arith.constant 8 : i32
    %5 = vector.broadcast %c8_i32 : i32 to vector<4x512xi32>
    %6 = arith.divsi %2, %5 : vector<4x512xi32>
    %c8_i32_2 = arith.constant 8 : i32
    %7 = vector.broadcast %c8_i32_2 : i32 to vector<4x512xi32>
    %8 = arith.remsi %6, %7 : vector<4x512xi32>
    %c8_i32_3 = arith.constant 8 : i32
    %9 = vector.broadcast %c8_i32_3 : i32 to vector<4x512xi32>
    %10 = arith.remsi %2, %9 : vector<4x512xi32>
    %c-1_i32 = arith.constant -1 : i32
    %11 = vector.broadcast %c-1_i32 : i32 to vector<4x512xi32>
    %12 = arith.addi %4, %11 : vector<4x512xi32>
    %c0_i32 = arith.constant 0 : i32
    %13 = vector.broadcast %c0_i32 : i32 to vector<4x512xi32>
    %14 = arith.cmpi sge, %12, %13 : vector<4x512xi32>
    %c-1_i32_4 = arith.constant -1 : i32
    %15 = vector.broadcast %c-1_i32_4 : i32 to vector<4x512xi32>
    %16 = arith.addi %4, %15 : vector<4x512xi32>
    %c8_i32_5 = arith.constant 8 : i32
    %17 = vector.broadcast %c8_i32_5 : i32 to vector<4x512xi32>
    %18 = arith.cmpi slt, %16, %17 : vector<4x512xi32>
    %19 = arith.andi %14, %18 : vector<4x512xi1>
    %c0_i32_6 = arith.constant 0 : i32
    %20 = vector.broadcast %c0_i32_6 : i32 to vector<4x512xi32>
    %21 = arith.addi %4, %20 : vector<4x512xi32>
    %c0_i32_7 = arith.constant 0 : i32
    %22 = vector.broadcast %c0_i32_7 : i32 to vector<4x512xi32>
    %23 = arith.cmpi sge, %21, %22 : vector<4x512xi32>
    %c0_i32_8 = arith.constant 0 : i32
    %24 = vector.broadcast %c0_i32_8 : i32 to vector<4x512xi32>
    %25 = arith.addi %4, %24 : vector<4x512xi32>
    %c8_i32_9 = arith.constant 8 : i32
    %26 = vector.broadcast %c8_i32_9 : i32 to vector<4x512xi32>
    %27 = arith.cmpi slt, %25, %26 : vector<4x512xi32>
    %28 = arith.andi %23, %27 : vector<4x512xi1>
    %c1_i32 = arith.constant 1 : i32
    %29 = vector.broadcast %c1_i32 : i32 to vector<4x512xi32>
    %30 = arith.addi %4, %29 : vector<4x512xi32>
    %c0_i32_10 = arith.constant 0 : i32
    %31 = vector.broadcast %c0_i32_10 : i32 to vector<4x512xi32>
    %32 = arith.cmpi sge, %30, %31 : vector<4x512xi32>
    %c1_i32_11 = arith.constant 1 : i32
    %33 = vector.broadcast %c1_i32_11 : i32 to vector<4x512xi32>
    %34 = arith.addi %4, %33 : vector<4x512xi32>
    %c8_i32_12 = arith.constant 8 : i32
    %35 = vector.broadcast %c8_i32_12 : i32 to vector<4x512xi32>
    %36 = arith.cmpi slt, %34, %35 : vector<4x512xi32>
    %37 = arith.andi %32, %36 : vector<4x512xi1>
    %c-1_i32_13 = arith.constant -1 : i32
    %38 = vector.broadcast %c-1_i32_13 : i32 to vector<4x512xi32>
    %39 = arith.addi %8, %38 : vector<4x512xi32>
    %c0_i32_14 = arith.constant 0 : i32
    %40 = vector.broadcast %c0_i32_14 : i32 to vector<4x512xi32>
    %41 = arith.cmpi sge, %39, %40 : vector<4x512xi32>
    %c-1_i32_15 = arith.constant -1 : i32
    %42 = vector.broadcast %c-1_i32_15 : i32 to vector<4x512xi32>
    %43 = arith.addi %8, %42 : vector<4x512xi32>
    %c8_i32_16 = arith.constant 8 : i32
    %44 = vector.broadcast %c8_i32_16 : i32 to vector<4x512xi32>
    %45 = arith.cmpi slt, %43, %44 : vector<4x512xi32>
    %46 = arith.andi %41, %45 : vector<4x512xi1>
    %c0_i32_17 = arith.constant 0 : i32
    %47 = vector.broadcast %c0_i32_17 : i32 to vector<4x512xi32>
    %48 = arith.addi %8, %47 : vector<4x512xi32>
    %c0_i32_18 = arith.constant 0 : i32
    %49 = vector.broadcast %c0_i32_18 : i32 to vector<4x512xi32>
    %50 = arith.cmpi sge, %48, %49 : vector<4x512xi32>
    %c0_i32_19 = arith.constant 0 : i32
    %51 = vector.broadcast %c0_i32_19 : i32 to vector<4x512xi32>
    %52 = arith.addi %8, %51 : vector<4x512xi32>
    %c8_i32_20 = arith.constant 8 : i32
    %53 = vector.broadcast %c8_i32_20 : i32 to vector<4x512xi32>
    %54 = arith.cmpi slt, %52, %53 : vector<4x512xi32>
    %55 = arith.andi %50, %54 : vector<4x512xi1>
    %c1_i32_21 = arith.constant 1 : i32
    %56 = vector.broadcast %c1_i32_21 : i32 to vector<4x512xi32>
    %57 = arith.addi %8, %56 : vector<4x512xi32>
    %c0_i32_22 = arith.constant 0 : i32
    %58 = vector.broadcast %c0_i32_22 : i32 to vector<4x512xi32>
    %59 = arith.cmpi sge, %57, %58 : vector<4x512xi32>
    %c1_i32_23 = arith.constant 1 : i32
    %60 = vector.broadcast %c1_i32_23 : i32 to vector<4x512xi32>
    %61 = arith.addi %8, %60 : vector<4x512xi32>
    %c8_i32_24 = arith.constant 8 : i32
    %62 = vector.broadcast %c8_i32_24 : i32 to vector<4x512xi32>
    %63 = arith.cmpi slt, %61, %62 : vector<4x512xi32>
    %64 = arith.andi %59, %63 : vector<4x512xi1>
    %c-1_i32_25 = arith.constant -1 : i32
    %65 = vector.broadcast %c-1_i32_25 : i32 to vector<4x512xi32>
    %66 = arith.addi %10, %65 : vector<4x512xi32>
    %c0_i32_26 = arith.constant 0 : i32
    %67 = vector.broadcast %c0_i32_26 : i32 to vector<4x512xi32>
    %68 = arith.cmpi sge, %66, %67 : vector<4x512xi32>
    %c-1_i32_27 = arith.constant -1 : i32
    %69 = vector.broadcast %c-1_i32_27 : i32 to vector<4x512xi32>
    %70 = arith.addi %10, %69 : vector<4x512xi32>
    %c8_i32_28 = arith.constant 8 : i32
    %71 = vector.broadcast %c8_i32_28 : i32 to vector<4x512xi32>
    %72 = arith.cmpi slt, %70, %71 : vector<4x512xi32>
    %73 = arith.andi %68, %72 : vector<4x512xi1>
    %c0_i32_29 = arith.constant 0 : i32
    %74 = vector.broadcast %c0_i32_29 : i32 to vector<4x512xi32>
    %75 = arith.addi %10, %74 : vector<4x512xi32>
    %c0_i32_30 = arith.constant 0 : i32
    %76 = vector.broadcast %c0_i32_30 : i32 to vector<4x512xi32>
    %77 = arith.cmpi sge, %75, %76 : vector<4x512xi32>
    %c0_i32_31 = arith.constant 0 : i32
    %78 = vector.broadcast %c0_i32_31 : i32 to vector<4x512xi32>
    %79 = arith.addi %10, %78 : vector<4x512xi32>
    %c8_i32_32 = arith.constant 8 : i32
    %80 = vector.broadcast %c8_i32_32 : i32 to vector<4x512xi32>
    %81 = arith.cmpi slt, %79, %80 : vector<4x512xi32>
    %82 = arith.andi %77, %81 : vector<4x512xi1>
    %c1_i32_33 = arith.constant 1 : i32
    %83 = vector.broadcast %c1_i32_33 : i32 to vector<4x512xi32>
    %84 = arith.addi %10, %83 : vector<4x512xi32>
    %c0_i32_34 = arith.constant 0 : i32
    %85 = vector.broadcast %c0_i32_34 : i32 to vector<4x512xi32>
    %86 = arith.cmpi sge, %84, %85 : vector<4x512xi32>
    %c1_i32_35 = arith.constant 1 : i32
    %87 = vector.broadcast %c1_i32_35 : i32 to vector<4x512xi32>
    %88 = arith.addi %10, %87 : vector<4x512xi32>
    %c8_i32_36 = arith.constant 8 : i32
    %89 = vector.broadcast %c8_i32_36 : i32 to vector<4x512xi32>
    %90 = arith.cmpi slt, %88, %89 : vector<4x512xi32>
    %91 = arith.andi %86, %90 : vector<4x512xi1>
    %cst = arith.constant 0.000000e+00 : f32
    %92 = vector.broadcast %cst : f32 to vector<4x73xf32>
    %93 = tpu.concatenate %92, %1, %92 in 1 : vector<4x73xf32>, vector<4x512xf32>, vector<4x73xf32> -> vector<4x658xf32>
    %94 = vector.extract_strided_slice %93 {offsets = [0, 0], sizes = [4, 512], strides = [1, 1]} : vector<4x658xf32> to vector<4x512xf32>
    %95 = arith.andi %19, %46 : vector<4x512xi1>
    %96 = arith.andi %95, %73 : vector<4x512xi1>
    %cst_37 = arith.constant 0.000000e+00 : f32
    %97 = vector.broadcast %cst_37 : f32 to vector<4x512xf32>
    %98 = arith.select %96, %94, %97 : vector<4x512xi1>, vector<4x512xf32>
    %c0_38 = arith.constant 0 : index
    %c0_39 = arith.constant 0 : index
    %99 = vector.load %arg9[%c0_38, %c0_39] : memref<108x512xf32, #tpu.memory_space<vmem>>, vector<4x512xf32>
    tpu.vector_store %arg9[%c0_38, %c0_39], %98 {strides = array<i32>} : memref<108x512xf32, #tpu.memory_space<vmem>>, vector<4x512xf32>,
    %100 = vector.extract_strided_slice %93 {offsets = [0, 1], sizes = [4, 512], strides = [1, 1]} : vector<4x658xf32> to vector<4x512xf32>
    %101 = arith.andi %19, %46 : vector<4x512xi1>
    %102 = arith.andi %101, %82 : vector<4x512xi1>
    %cst_40 = arith.constant 0.000000e+00 : f32
    %103 = vector.broadcast %cst_40 : f32 to vector<4x512xf32>
    %104 = arith.select %102, %100, %103 : vector<4x512xi1>, vector<4x512xf32>
    %c4 = arith.constant 4 : index
    %c0_41 = arith.constant 0 : index
    %105 = vector.load %arg9[%c4, %c0_41] : memref<108x512xf32, #tpu.memory_space<vmem>>, vector<4x512xf32>
    tpu.vector_store %arg9[%c4, %c0_41], %104 {strides = array<i32>} : memref<108x512xf32, #tpu.memory_space<vmem>>, vector<4x512xf32>,
    %106 = vector.extract_strided_slice %93 {offsets = [0, 2], sizes = [4, 512], strides = [1, 1]} : vector<4x658xf32> to vector<4x512xf32>
    %107 = arith.andi %19, %46 : vector<4x512xi1>
    %108 = arith.andi %107, %91 : vector<4x512xi1>
    %cst_42 = arith.constant 0.000000e+00 : f32
    %109 = vector.broadcast %cst_42 : f32 to vector<4x512xf32>
    %110 = arith.select %108, %106, %109 : vector<4x512xi1>, vector<4x512xf32>
    %c8 = arith.constant 8 : index
    %c0_43 = arith.constant 0 : index
    %111 = vector.load %arg9[%c8, %c0_43] : memref<108x512xf32, #tpu.memory_space<vmem>>, vector<4x512xf32>
    tpu.vector_store %arg9[%c8, %c0_43], %110 {strides = array<i32>} : memref<108x512xf32, #tpu.memory_space<vmem>>, vector<4x512xf32>,
    %112 = vector.extract_strided_slice %93 {offsets = [0, 8], sizes = [4, 512], strides = [1, 1]} : vector<4x658xf32> to vector<4x512xf32>
    %113 = arith.andi %19, %55 : vector<4x512xi1>
    %114 = arith.andi %113, %73 : vector<4x512xi1>
    %cst_44 = arith.constant 0.000000e+00 : f32
    %115 = vector.broadcast %cst_44 : f32 to vector<4x512xf32>
    %116 = arith.select %114, %112, %115 : vector<4x512xi1>, vector<4x512xf32>
    %c12 = arith.constant 12 : index
    %c0_45 = arith.constant 0 : index
    %117 = vector.load %arg9[%c12, %c0_45] : memref<108x512xf32, #tpu.memory_space<vmem>>, vector<4x512xf32>
    tpu.vector_store %arg9[%c12, %c0_45], %116 {strides = array<i32>} : memref<108x512xf32, #tpu.memory_space<vmem>>, vector<4x512xf32>,
    %118 = vector.extract_strided_slice %93 {offsets = [0, 9], sizes = [4, 512], strides = [1, 1]} : vector<4x658xf32> to vector<4x512xf32>
    %119 = arith.andi %19, %55 : vector<4x512xi1>
    %120 = arith.andi %119, %82 : vector<4x512xi1>
    %cst_46 = arith.constant 0.000000e+00 : f32
    %121 = vector.broadcast %cst_46 : f32 to vector<4x512xf32>
    %122 = arith.select %120, %118, %121 : vector<4x512xi1>, vector<4x512xf32>
    %c16 = arith.constant 16 : index
    %c0_47 = arith.constant 0 : index
    %123 = vector.load %arg9[%c16, %c0_47] : memref<108x512xf32, #tpu.memory_space<vmem>>, vector<4x512xf32>
    tpu.vector_store %arg9[%c16, %c0_47], %122 {strides = array<i32>} : memref<108x512xf32, #tpu.memory_space<vmem>>, vector<4x512xf32>,
    %124 = vector.extract_strided_slice %93 {offsets = [0, 10], sizes = [4, 512], strides = [1, 1]} : vector<4x658xf32> to vector<4x512xf32>
    %125 = arith.andi %19, %55 : vector<4x512xi1>
    %126 = arith.andi %125, %91 : vector<4x512xi1>
    %cst_48 = arith.constant 0.000000e+00 : f32
    %127 = vector.broadcast %cst_48 : f32 to vector<4x512xf32>
    %128 = arith.select %126, %124, %127 : vector<4x512xi1>, vector<4x512xf32>
    %c20 = arith.constant 20 : index
    %c0_49 = arith.constant 0 : index
    %129 = vector.load %arg9[%c20, %c0_49] : memref<108x512xf32, #tpu.memory_space<vmem>>, vector<4x512xf32>
    tpu.vector_store %arg9[%c20, %c0_49], %128 {strides = array<i32>} : memref<108x512xf32, #tpu.memory_space<vmem>>, vector<4x512xf32>,
    %130 = vector.extract_strided_slice %93 {offsets = [0, 16], sizes = [4, 512], strides = [1, 1]} : vector<4x658xf32> to vector<4x512xf32>
    %131 = arith.andi %19, %64 : vector<4x512xi1>
    %132 = arith.andi %131, %73 : vector<4x512xi1>
    %cst_50 = arith.constant 0.000000e+00 : f32
    %133 = vector.broadcast %cst_50 : f32 to vector<4x512xf32>
    %134 = arith.select %132, %130, %133 : vector<4x512xi1>, vector<4x512xf32>
    %c24 = arith.constant 24 : index
    %c0_51 = arith.constant 0 : index
    %135 = vector.load %arg9[%c24, %c0_51] : memref<108x512xf32, #tpu.memory_space<vmem>>, vector<4x512xf32>
    tpu.vector_store %arg9[%c24, %c0_51], %134 {strides = array<i32>} : memref<108x512xf32, #tpu.memory_space<vmem>>, vector<4x512xf32>,
    %136 = vector.extract_strided_slice %93 {offsets = [0, 17], sizes = [4, 512], strides = [1, 1]} : vector<4x658xf32> to vector<4x512xf32>
    %137 = arith.andi %19, %64 : vector<4x512xi1>
    %138 = arith.andi %137, %82 : vector<4x512xi1>
    %cst_52 = arith.constant 0.000000e+00 : f32
    %139 = vector.broadcast %cst_52 : f32 to vector<4x512xf32>
    %140 = arith.select %138, %136, %139 : vector<4x512xi1>, vector<4x512xf32>
    %c28 = arith.constant 28 : index
    %c0_53 = arith.constant 0 : index
    %141 = vector.load %arg9[%c28, %c0_53] : memref<108x512xf32, #tpu.memory_space<vmem>>, vector<4x512xf32>
    tpu.vector_store %arg9[%c28, %c0_53], %140 {strides = array<i32>} : memref<108x512xf32, #tpu.memory_space<vmem>>, vector<4x512xf32>,
    %142 = vector.extract_strided_slice %93 {offsets = [0, 18], sizes = [4, 512], strides = [1, 1]} : vector<4x658xf32> to vector<4x512xf32>
    %143 = arith.andi %19, %64 : vector<4x512xi1>
    %144 = arith.andi %143, %91 : vector<4x512xi1>
    %cst_54 = arith.constant 0.000000e+00 : f32
    %145 = vector.broadcast %cst_54 : f32 to vector<4x512xf32>
    %146 = arith.select %144, %142, %145 : vector<4x512xi1>, vector<4x512xf32>
    %c32 = arith.constant 32 : index
    %c0_55 = arith.constant 0 : index
    %147 = vector.load %arg9[%c32, %c0_55] : memref<108x512xf32, #tpu.memory_space<vmem>>, vector<4x512xf32>
    tpu.vector_store %arg9[%c32, %c0_55], %146 {strides = array<i32>} : memref<108x512xf32, #tpu.memory_space<vmem>>, vector<4x512xf32>,
    %148 = vector.extract_strided_slice %93 {offsets = [0, 64], sizes = [4, 512], strides = [1, 1]} : vector<4x658xf32> to vector<4x512xf32>
    %149 = arith.andi %28, %46 : vector<4x512xi1>
    %150 = arith.andi %149, %73 : vector<4x512xi1>
    %cst_56 = arith.constant 0.000000e+00 : f32
    %151 = vector.broadcast %cst_56 : f32 to vector<4x512xf32>
    %152 = arith.select %150, %148, %151 : vector<4x512xi1>, vector<4x512xf32>
    %c36 = arith.constant 36 : index
    %c0_57 = arith.constant 0 : index
    %153 = vector.load %arg9[%c36, %c0_57] : memref<108x512xf32, #tpu.memory_space<vmem>>, vector<4x512xf32>
    tpu.vector_store %arg9[%c36, %c0_57], %152 {strides = array<i32>} : memref<108x512xf32, #tpu.memory_space<vmem>>, vector<4x512xf32>,
    %154 = vector.extract_strided_slice %93 {offsets = [0, 65], sizes = [4, 512], strides = [1, 1]} : vector<4x658xf32> to vector<4x512xf32>
    %155 = arith.andi %28, %46 : vector<4x512xi1>
    %156 = arith.andi %155, %82 : vector<4x512xi1>
    %cst_58 = arith.constant 0.000000e+00 : f32
    %157 = vector.broadcast %cst_58 : f32 to vector<4x512xf32>
    %158 = arith.select %156, %154, %157 : vector<4x512xi1>, vector<4x512xf32>
    %c40 = arith.constant 40 : index
    %c0_59 = arith.constant 0 : index
    %159 = vector.load %arg9[%c40, %c0_59] : memref<108x512xf32, #tpu.memory_space<vmem>>, vector<4x512xf32>
    tpu.vector_store %arg9[%c40, %c0_59], %158 {strides = array<i32>} : memref<108x512xf32, #tpu.memory_space<vmem>>, vector<4x512xf32>,
    %160 = vector.extract_strided_slice %93 {offsets = [0, 66], sizes = [4, 512], strides = [1, 1]} : vector<4x658xf32> to vector<4x512xf32>
    %161 = arith.andi %28, %46 : vector<4x512xi1>
    %162 = arith.andi %161, %91 : vector<4x512xi1>
    %cst_60 = arith.constant 0.000000e+00 : f32
    %163 = vector.broadcast %cst_60 : f32 to vector<4x512xf32>
    %164 = arith.select %162, %160, %163 : vector<4x512xi1>, vector<4x512xf32>
    %c44 = arith.constant 44 : index
    %c0_61 = arith.constant 0 : index
    %165 = vector.load %arg9[%c44, %c0_61] : memref<108x512xf32, #tpu.memory_space<vmem>>, vector<4x512xf32>
    tpu.vector_store %arg9[%c44, %c0_61], %164 {strides = array<i32>} : memref<108x512xf32, #tpu.memory_space<vmem>>, vector<4x512xf32>,
    %166 = vector.extract_strided_slice %93 {offsets = [0, 72], sizes = [4, 512], strides = [1, 1]} : vector<4x658xf32> to vector<4x512xf32>
    %167 = arith.andi %28, %55 : vector<4x512xi1>
    %168 = arith.andi %167, %73 : vector<4x512xi1>
    %cst_62 = arith.constant 0.000000e+00 : f32
    %169 = vector.broadcast %cst_62 : f32 to vector<4x512xf32>
    %170 = arith.select %168, %166, %169 : vector<4x512xi1>, vector<4x512xf32>
    %c48 = arith.constant 48 : index
    %c0_63 = arith.constant 0 : index
    %171 = vector.load %arg9[%c48, %c0_63] : memref<108x512xf32, #tpu.memory_space<vmem>>, vector<4x512xf32>
    tpu.vector_store %arg9[%c48, %c0_63], %170 {strides = array<i32>} : memref<108x512xf32, #tpu.memory_space<vmem>>, vector<4x512xf32>,
    %172 = vector.extract_strided_slice %93 {offsets = [0, 73], sizes = [4, 512], strides = [1, 1]} : vector<4x658xf32> to vector<4x512xf32>
    %173 = arith.andi %28, %55 : vector<4x512xi1>
    %174 = arith.andi %173, %82 : vector<4x512xi1>
    %cst_64 = arith.constant 0.000000e+00 : f32
    %175 = vector.broadcast %cst_64 : f32 to vector<4x512xf32>
    %176 = arith.select %174, %172, %175 : vector<4x512xi1>, vector<4x512xf32>
    %c52 = arith.constant 52 : index
    %c0_65 = arith.constant 0 : index
    %177 = vector.load %arg9[%c52, %c0_65] : memref<108x512xf32, #tpu.memory_space<vmem>>, vector<4x512xf32>
    tpu.vector_store %arg9[%c52, %c0_65], %176 {strides = array<i32>} : memref<108x512xf32, #tpu.memory_space<vmem>>, vector<4x512xf32>,
    %178 = vector.extract_strided_slice %93 {offsets = [0, 74], sizes = [4, 512], strides = [1, 1]} : vector<4x658xf32> to vector<4x512xf32>
    %179 = arith.andi %28, %55 : vector<4x512xi1>
    %180 = arith.andi %179, %91 : vector<4x512xi1>
    %cst_66 = arith.constant 0.000000e+00 : f32
    %181 = vector.broadcast %cst_66 : f32 to vector<4x512xf32>
    %182 = arith.select %180, %178, %181 : vector<4x512xi1>, vector<4x512xf32>
    %c56 = arith.constant 56 : index
    %c0_67 = arith.constant 0 : index
    %183 = vector.load %arg9[%c56, %c0_67] : memref<108x512xf32, #tpu.memory_space<vmem>>, vector<4x512xf32>
    tpu.vector_store %arg9[%c56, %c0_67], %182 {strides = array<i32>} : memref<108x512xf32, #tpu.memory_space<vmem>>, vector<4x512xf32>,
    %184 = vector.extract_strided_slice %93 {offsets = [0, 80], sizes = [4, 512], strides = [1, 1]} : vector<4x658xf32> to vector<4x512xf32>
    %185 = arith.andi %28, %64 : vector<4x512xi1>
    %186 = arith.andi %185, %73 : vector<4x512xi1>
    %cst_68 = arith.constant 0.000000e+00 : f32
    %187 = vector.broadcast %cst_68 : f32 to vector<4x512xf32>
    %188 = arith.select %186, %184, %187 : vector<4x512xi1>, vector<4x512xf32>
    %c60 = arith.constant 60 : index
    %c0_69 = arith.constant 0 : index
    %189 = vector.load %arg9[%c60, %c0_69] : memref<108x512xf32, #tpu.memory_space<vmem>>, vector<4x512xf32>
    tpu.vector_store %arg9[%c60, %c0_69], %188 {strides = array<i32>} : memref<108x512xf32, #tpu.memory_space<vmem>>, vector<4x512xf32>,
    %190 = vector.extract_strided_slice %93 {offsets = [0, 81], sizes = [4, 512], strides = [1, 1]} : vector<4x658xf32> to vector<4x512xf32>
    %191 = arith.andi %28, %64 : vector<4x512xi1>
    %192 = arith.andi %191, %82 : vector<4x512xi1>
    %cst_70 = arith.constant 0.000000e+00 : f32
    %193 = vector.broadcast %cst_70 : f32 to vector<4x512xf32>
    %194 = arith.select %192, %190, %193 : vector<4x512xi1>, vector<4x512xf32>
    %c64 = arith.constant 64 : index
    %c0_71 = arith.constant 0 : index
    %195 = vector.load %arg9[%c64, %c0_71] : memref<108x512xf32, #tpu.memory_space<vmem>>, vector<4x512xf32>
    tpu.vector_store %arg9[%c64, %c0_71], %194 {strides = array<i32>} : memref<108x512xf32, #tpu.memory_space<vmem>>, vector<4x512xf32>,
    %196 = vector.extract_strided_slice %93 {offsets = [0, 82], sizes = [4, 512], strides = [1, 1]} : vector<4x658xf32> to vector<4x512xf32>
    %197 = arith.andi %28, %64 : vector<4x512xi1>
    %198 = arith.andi %197, %91 : vector<4x512xi1>
    %cst_72 = arith.constant 0.000000e+00 : f32
    %199 = vector.broadcast %cst_72 : f32 to vector<4x512xf32>
    %200 = arith.select %198, %196, %199 : vector<4x512xi1>, vector<4x512xf32>
    %c68 = arith.constant 68 : index
    %c0_73 = arith.constant 0 : index
    %201 = vector.load %arg9[%c68, %c0_73] : memref<108x512xf32, #tpu.memory_space<vmem>>, vector<4x512xf32>
    tpu.vector_store %arg9[%c68, %c0_73], %200 {strides = array<i32>} : memref<108x512xf32, #tpu.memory_space<vmem>>, vector<4x512xf32>,
    %202 = vector.extract_strided_slice %93 {offsets = [0, 128], sizes = [4, 512], strides = [1, 1]} : vector<4x658xf32> to vector<4x512xf32>
    %203 = arith.andi %37, %46 : vector<4x512xi1>
    %204 = arith.andi %203, %73 : vector<4x512xi1>
    %cst_74 = arith.constant 0.000000e+00 : f32
    %205 = vector.broadcast %cst_74 : f32 to vector<4x512xf32>
    %206 = arith.select %204, %202, %205 : vector<4x512xi1>, vector<4x512xf32>
    %c72 = arith.constant 72 : index
    %c0_75 = arith.constant 0 : index
    %207 = vector.load %arg9[%c72, %c0_75] : memref<108x512xf32, #tpu.memory_space<vmem>>, vector<4x512xf32>
    tpu.vector_store %arg9[%c72, %c0_75], %206 {strides = array<i32>} : memref<108x512xf32, #tpu.memory_space<vmem>>, vector<4x512xf32>,
    %208 = vector.extract_strided_slice %93 {offsets = [0, 129], sizes = [4, 512], strides = [1, 1]} : vector<4x658xf32> to vector<4x512xf32>
    %209 = arith.andi %37, %46 : vector<4x512xi1>
    %210 = arith.andi %209, %82 : vector<4x512xi1>
    %cst_76 = arith.constant 0.000000e+00 : f32
    %211 = vector.broadcast %cst_76 : f32 to vector<4x512xf32>
    %212 = arith.select %210, %208, %211 : vector<4x512xi1>, vector<4x512xf32>
    %c76 = arith.constant 76 : index
    %c0_77 = arith.constant 0 : index
    %213 = vector.load %arg9[%c76, %c0_77] : memref<108x512xf32, #tpu.memory_space<vmem>>, vector<4x512xf32>
    tpu.vector_store %arg9[%c76, %c0_77], %212 {strides = array<i32>} : memref<108x512xf32, #tpu.memory_space<vmem>>, vector<4x512xf32>,
    %214 = vector.extract_strided_slice %93 {offsets = [0, 130], sizes = [4, 512], strides = [1, 1]} : vector<4x658xf32> to vector<4x512xf32>
    %215 = arith.andi %37, %46 : vector<4x512xi1>
    %216 = arith.andi %215, %91 : vector<4x512xi1>
    %cst_78 = arith.constant 0.000000e+00 : f32
    %217 = vector.broadcast %cst_78 : f32 to vector<4x512xf32>
    %218 = arith.select %216, %214, %217 : vector<4x512xi1>, vector<4x512xf32>
    %c80 = arith.constant 80 : index
    %c0_79 = arith.constant 0 : index
    %219 = vector.load %arg9[%c80, %c0_79] : memref<108x512xf32, #tpu.memory_space<vmem>>, vector<4x512xf32>
    tpu.vector_store %arg9[%c80, %c0_79], %218 {strides = array<i32>} : memref<108x512xf32, #tpu.memory_space<vmem>>, vector<4x512xf32>,
    %220 = vector.extract_strided_slice %93 {offsets = [0, 136], sizes = [4, 512], strides = [1, 1]} : vector<4x658xf32> to vector<4x512xf32>
    %221 = arith.andi %37, %55 : vector<4x512xi1>
    %222 = arith.andi %221, %73 : vector<4x512xi1>
    %cst_80 = arith.constant 0.000000e+00 : f32
    %223 = vector.broadcast %cst_80 : f32 to vector<4x512xf32>
    %224 = arith.select %222, %220, %223 : vector<4x512xi1>, vector<4x512xf32>
    %c84 = arith.constant 84 : index
    %c0_81 = arith.constant 0 : index
    %225 = vector.load %arg9[%c84, %c0_81] : memref<108x512xf32, #tpu.memory_space<vmem>>, vector<4x512xf32>
    tpu.vector_store %arg9[%c84, %c0_81], %224 {strides = array<i32>} : memref<108x512xf32, #tpu.memory_space<vmem>>, vector<4x512xf32>,
    %226 = vector.extract_strided_slice %93 {offsets = [0, 137], sizes = [4, 512], strides = [1, 1]} : vector<4x658xf32> to vector<4x512xf32>
    %227 = arith.andi %37, %55 : vector<4x512xi1>
    %228 = arith.andi %227, %82 : vector<4x512xi1>
    %cst_82 = arith.constant 0.000000e+00 : f32
    %229 = vector.broadcast %cst_82 : f32 to vector<4x512xf32>
    %230 = arith.select %228, %226, %229 : vector<4x512xi1>, vector<4x512xf32>
    %c88 = arith.constant 88 : index
    %c0_83 = arith.constant 0 : index
    %231 = vector.load %arg9[%c88, %c0_83] : memref<108x512xf32, #tpu.memory_space<vmem>>, vector<4x512xf32>
    tpu.vector_store %arg9[%c88, %c0_83], %230 {strides = array<i32>} : memref<108x512xf32, #tpu.memory_space<vmem>>, vector<4x512xf32>,
    %232 = vector.extract_strided_slice %93 {offsets = [0, 138], sizes = [4, 512], strides = [1, 1]} : vector<4x658xf32> to vector<4x512xf32>
    %233 = arith.andi %37, %55 : vector<4x512xi1>
    %234 = arith.andi %233, %91 : vector<4x512xi1>
    %cst_84 = arith.constant 0.000000e+00 : f32
    %235 = vector.broadcast %cst_84 : f32 to vector<4x512xf32>
    %236 = arith.select %234, %232, %235 : vector<4x512xi1>, vector<4x512xf32>
    %c92 = arith.constant 92 : index
    %c0_85 = arith.constant 0 : index
    %237 = vector.load %arg9[%c92, %c0_85] : memref<108x512xf32, #tpu.memory_space<vmem>>, vector<4x512xf32>
    tpu.vector_store %arg9[%c92, %c0_85], %236 {strides = array<i32>} : memref<108x512xf32, #tpu.memory_space<vmem>>, vector<4x512xf32>,
    %238 = vector.extract_strided_slice %93 {offsets = [0, 144], sizes = [4, 512], strides = [1, 1]} : vector<4x658xf32> to vector<4x512xf32>
    %239 = arith.andi %37, %64 : vector<4x512xi1>
    %240 = arith.andi %239, %73 : vector<4x512xi1>
    %cst_86 = arith.constant 0.000000e+00 : f32
    %241 = vector.broadcast %cst_86 : f32 to vector<4x512xf32>
    %242 = arith.select %240, %238, %241 : vector<4x512xi1>, vector<4x512xf32>
    %c96 = arith.constant 96 : index
    %c0_87 = arith.constant 0 : index
    %243 = vector.load %arg9[%c96, %c0_87] : memref<108x512xf32, #tpu.memory_space<vmem>>, vector<4x512xf32>
    tpu.vector_store %arg9[%c96, %c0_87], %242 {strides = array<i32>} : memref<108x512xf32, #tpu.memory_space<vmem>>, vector<4x512xf32>,
    %244 = vector.extract_strided_slice %93 {offsets = [0, 145], sizes = [4, 512], strides = [1, 1]} : vector<4x658xf32> to vector<4x512xf32>
    %245 = arith.andi %37, %64 : vector<4x512xi1>
    %246 = arith.andi %245, %82 : vector<4x512xi1>
    %cst_88 = arith.constant 0.000000e+00 : f32
    %247 = vector.broadcast %cst_88 : f32 to vector<4x512xf32>
    %248 = arith.select %246, %244, %247 : vector<4x512xi1>, vector<4x512xf32>
    %c100 = arith.constant 100 : index
    %c0_89 = arith.constant 0 : index
    %249 = vector.load %arg9[%c100, %c0_89] : memref<108x512xf32, #tpu.memory_space<vmem>>, vector<4x512xf32>
    tpu.vector_store %arg9[%c100, %c0_89], %248 {strides = array<i32>} : memref<108x512xf32, #tpu.memory_space<vmem>>, vector<4x512xf32>,
    %250 = vector.extract_strided_slice %93 {offsets = [0, 146], sizes = [4, 512], strides = [1, 1]} : vector<4x658xf32> to vector<4x512xf32>
    %251 = arith.andi %37, %64 : vector<4x512xi1>
    %252 = arith.andi %251, %91 : vector<4x512xi1>
    %cst_90 = arith.constant 0.000000e+00 : f32
    %253 = vector.broadcast %cst_90 : f32 to vector<4x512xf32>
    %254 = arith.select %252, %250, %253 : vector<4x512xi1>, vector<4x512xf32>
    %c104 = arith.constant 104 : index
    %c0_91 = arith.constant 0 : index
    %255 = vector.load %arg9[%c104, %c0_91] : memref<108x512xf32, #tpu.memory_space<vmem>>, vector<4x512xf32>
    tpu.vector_store %arg9[%c104, %c0_91], %254 {strides = array<i32>} : memref<108x512xf32, #tpu.memory_space<vmem>>, vector<4x512xf32>,
    %c0_92 = arith.constant 0 : index
    %c0_93 = arith.constant 0 : index
    %256 = vector.load %arg2[%c0_92, %c0_93] : memref<4x108xf32, #tpu.memory_space<vmem>>, vector<4x108xf32>
    %c0_94 = arith.constant 0 : index
    %c0_95 = arith.constant 0 : index
    %257 = vector.load %arg9[%c0_94, %c0_95] : memref<108x512xf32, #tpu.memory_space<vmem>>, vector<108x512xf32>
    %cst_96 = arith.constant dense<0.000000e+00> : vector<4x512xf32>
    %258 = tpu.matmul %256, %257, %cst_96 {dimension_numbers = #tpu.dot_dimension_numbers<[1], [0], [0], [1], [0, 0, 1, 1], [], []>} : vector<4x108xf32>, vector<108x512xf32>, vector<4x512xf32> -> vector<4x512xf32>
    %c0_97 = arith.constant 0 : index
    %c0_98 = arith.constant 0 : index
    %259 = vector.load %arg3[%c0_97, %c0_98] : memref<4x1xf32, #tpu.memory_space<vmem>>, vector<4x1xf32>
    %260 = vector.broadcast %259 : vector<4x1xf32> to vector<4x512xf32>
    %261 = arith.addf %258, %260 : vector<4x512xf32>
    %cst_99 = arith.constant 0.000000e+00 : f32
    %262 = vector.broadcast %cst_99 : f32 to vector<4x512xf32>
    %263 = arith.maximumf %261, %262 : vector<4x512xf32>
    %264 = tpu.concatenate %92, %263, %92 in 1 : vector<4x73xf32>, vector<4x512xf32>, vector<4x73xf32> -> vector<4x658xf32>
    %265 = vector.extract_strided_slice %264 {offsets = [0, 0], sizes = [4, 512], strides = [1, 1]} : vector<4x658xf32> to vector<4x512xf32>
    %266 = arith.andi %19, %46 : vector<4x512xi1>
    %267 = arith.andi %266, %73 : vector<4x512xi1>
    %cst_100 = arith.constant 0.000000e+00 : f32
    %268 = vector.broadcast %cst_100 : f32 to vector<4x512xf32>
    %269 = arith.select %267, %265, %268 : vector<4x512xi1>, vector<4x512xf32>
    %c0_101 = arith.constant 0 : index
    %c0_102 = arith.constant 0 : index
    %270 = vector.load %arg9[%c0_101, %c0_102] : memref<108x512xf32, #tpu.memory_space<vmem>>, vector<4x512xf32>
    tpu.vector_store %arg9[%c0_101, %c0_102], %269 {strides = array<i32>} : memref<108x512xf32, #tpu.memory_space<vmem>>, vector<4x512xf32>,
    %271 = vector.extract_strided_slice %264 {offsets = [0, 1], sizes = [4, 512], strides = [1, 1]} : vector<4x658xf32> to vector<4x512xf32>
    %272 = arith.andi %19, %46 : vector<4x512xi1>
    %273 = arith.andi %272, %82 : vector<4x512xi1>
    %cst_103 = arith.constant 0.000000e+00 : f32
    %274 = vector.broadcast %cst_103 : f32 to vector<4x512xf32>
    %275 = arith.select %273, %271, %274 : vector<4x512xi1>, vector<4x512xf32>
    %c4_104 = arith.constant 4 : index
    %c0_105 = arith.constant 0 : index
    %276 = vector.load %arg9[%c4_104, %c0_105] : memref<108x512xf32, #tpu.memory_space<vmem>>, vector<4x512xf32>
    tpu.vector_store %arg9[%c4_104, %c0_105], %275 {strides = array<i32>} : memref<108x512xf32, #tpu.memory_space<vmem>>, vector<4x512xf32>,
    %277 = vector.extract_strided_slice %264 {offsets = [0, 2], sizes = [4, 512], strides = [1, 1]} : vector<4x658xf32> to vector<4x512xf32>
    %278 = arith.andi %19, %46 : vector<4x512xi1>
    %279 = arith.andi %278, %91 : vector<4x512xi1>
    %cst_106 = arith.constant 0.000000e+00 : f32
    %280 = vector.broadcast %cst_106 : f32 to vector<4x512xf32>
    %281 = arith.select %279, %277, %280 : vector<4x512xi1>, vector<4x512xf32>
    %c8_107 = arith.constant 8 : index
    %c0_108 = arith.constant 0 : index
    %282 = vector.load %arg9[%c8_107, %c0_108] : memref<108x512xf32, #tpu.memory_space<vmem>>, vector<4x512xf32>
    tpu.vector_store %arg9[%c8_107, %c0_108], %281 {strides = array<i32>} : memref<108x512xf32, #tpu.memory_space<vmem>>, vector<4x512xf32>,
    %283 = vector.extract_strided_slice %264 {offsets = [0, 8], sizes = [4, 512], strides = [1, 1]} : vector<4x658xf32> to vector<4x512xf32>
    %284 = arith.andi %19, %55 : vector<4x512xi1>
    %285 = arith.andi %284, %73 : vector<4x512xi1>
    %cst_109 = arith.constant 0.000000e+00 : f32
    %286 = vector.broadcast %cst_109 : f32 to vector<4x512xf32>
    %287 = arith.select %285, %283, %286 : vector<4x512xi1>, vector<4x512xf32>
    %c12_110 = arith.constant 12 : index
    %c0_111 = arith.constant 0 : index
    %288 = vector.load %arg9[%c12_110, %c0_111] : memref<108x512xf32, #tpu.memory_space<vmem>>, vector<4x512xf32>
    tpu.vector_store %arg9[%c12_110, %c0_111], %287 {strides = array<i32>} : memref<108x512xf32, #tpu.memory_space<vmem>>, vector<4x512xf32>,
    %289 = vector.extract_strided_slice %264 {offsets = [0, 9], sizes = [4, 512], strides = [1, 1]} : vector<4x658xf32> to vector<4x512xf32>
    %290 = arith.andi %19, %55 : vector<4x512xi1>
    %291 = arith.andi %290, %82 : vector<4x512xi1>
    %cst_112 = arith.constant 0.000000e+00 : f32
    %292 = vector.broadcast %cst_112 : f32 to vector<4x512xf32>
    %293 = arith.select %291, %289, %292 : vector<4x512xi1>, vector<4x512xf32>
    %c16_113 = arith.constant 16 : index
    %c0_114 = arith.constant 0 : index
    %294 = vector.load %arg9[%c16_113, %c0_114] : memref<108x512xf32, #tpu.memory_space<vmem>>, vector<4x512xf32>
    tpu.vector_store %arg9[%c16_113, %c0_114], %293 {strides = array<i32>} : memref<108x512xf32, #tpu.memory_space<vmem>>, vector<4x512xf32>,
    %295 = vector.extract_strided_slice %264 {offsets = [0, 10], sizes = [4, 512], strides = [1, 1]} : vector<4x658xf32> to vector<4x512xf32>
    %296 = arith.andi %19, %55 : vector<4x512xi1>
    %297 = arith.andi %296, %91 : vector<4x512xi1>
    %cst_115 = arith.constant 0.000000e+00 : f32
    %298 = vector.broadcast %cst_115 : f32 to vector<4x512xf32>
    %299 = arith.select %297, %295, %298 : vector<4x512xi1>, vector<4x512xf32>
    %c20_116 = arith.constant 20 : index
    %c0_117 = arith.constant 0 : index
    %300 = vector.load %arg9[%c20_116, %c0_117] : memref<108x512xf32, #tpu.memory_space<vmem>>, vector<4x512xf32>
    tpu.vector_store %arg9[%c20_116, %c0_117], %299 {strides = array<i32>} : memref<108x512xf32, #tpu.memory_space<vmem>>, vector<4x512xf32>,
    %301 = vector.extract_strided_slice %264 {offsets = [0, 16], sizes = [4, 512], strides = [1, 1]} : vector<4x658xf32> to vector<4x512xf32>
    %302 = arith.andi %19, %64 : vector<4x512xi1>
    %303 = arith.andi %302, %73 : vector<4x512xi1>
    %cst_118 = arith.constant 0.000000e+00 : f32
    %304 = vector.broadcast %cst_118 : f32 to vector<4x512xf32>
    %305 = arith.select %303, %301, %304 : vector<4x512xi1>, vector<4x512xf32>
    %c24_119 = arith.constant 24 : index
    %c0_120 = arith.constant 0 : index
    %306 = vector.load %arg9[%c24_119, %c0_120] : memref<108x512xf32, #tpu.memory_space<vmem>>, vector<4x512xf32>
    tpu.vector_store %arg9[%c24_119, %c0_120], %305 {strides = array<i32>} : memref<108x512xf32, #tpu.memory_space<vmem>>, vector<4x512xf32>,
    %307 = vector.extract_strided_slice %264 {offsets = [0, 17], sizes = [4, 512], strides = [1, 1]} : vector<4x658xf32> to vector<4x512xf32>
    %308 = arith.andi %19, %64 : vector<4x512xi1>
    %309 = arith.andi %308, %82 : vector<4x512xi1>
    %cst_121 = arith.constant 0.000000e+00 : f32
    %310 = vector.broadcast %cst_121 : f32 to vector<4x512xf32>
    %311 = arith.select %309, %307, %310 : vector<4x512xi1>, vector<4x512xf32>
    %c28_122 = arith.constant 28 : index
    %c0_123 = arith.constant 0 : index
    %312 = vector.load %arg9[%c28_122, %c0_123] : memref<108x512xf32, #tpu.memory_space<vmem>>, vector<4x512xf32>
    tpu.vector_store %arg9[%c28_122, %c0_123], %311 {strides = array<i32>} : memref<108x512xf32, #tpu.memory_space<vmem>>, vector<4x512xf32>,
    %313 = vector.extract_strided_slice %264 {offsets = [0, 18], sizes = [4, 512], strides = [1, 1]} : vector<4x658xf32> to vector<4x512xf32>
    %314 = arith.andi %19, %64 : vector<4x512xi1>
    %315 = arith.andi %314, %91 : vector<4x512xi1>
    %cst_124 = arith.constant 0.000000e+00 : f32
    %316 = vector.broadcast %cst_124 : f32 to vector<4x512xf32>
    %317 = arith.select %315, %313, %316 : vector<4x512xi1>, vector<4x512xf32>
    %c32_125 = arith.constant 32 : index
    %c0_126 = arith.constant 0 : index
    %318 = vector.load %arg9[%c32_125, %c0_126] : memref<108x512xf32, #tpu.memory_space<vmem>>, vector<4x512xf32>
    tpu.vector_store %arg9[%c32_125, %c0_126], %317 {strides = array<i32>} : memref<108x512xf32, #tpu.memory_space<vmem>>, vector<4x512xf32>,
    %319 = vector.extract_strided_slice %264 {offsets = [0, 64], sizes = [4, 512], strides = [1, 1]} : vector<4x658xf32> to vector<4x512xf32>
    %320 = arith.andi %28, %46 : vector<4x512xi1>
    %321 = arith.andi %320, %73 : vector<4x512xi1>
    %cst_127 = arith.constant 0.000000e+00 : f32
    %322 = vector.broadcast %cst_127 : f32 to vector<4x512xf32>
    %323 = arith.select %321, %319, %322 : vector<4x512xi1>, vector<4x512xf32>
    %c36_128 = arith.constant 36 : index
    %c0_129 = arith.constant 0 : index
    %324 = vector.load %arg9[%c36_128, %c0_129] : memref<108x512xf32, #tpu.memory_space<vmem>>, vector<4x512xf32>
    tpu.vector_store %arg9[%c36_128, %c0_129], %323 {strides = array<i32>} : memref<108x512xf32, #tpu.memory_space<vmem>>, vector<4x512xf32>,
    %325 = vector.extract_strided_slice %264 {offsets = [0, 65], sizes = [4, 512], strides = [1, 1]} : vector<4x658xf32> to vector<4x512xf32>
    %326 = arith.andi %28, %46 : vector<4x512xi1>
    %327 = arith.andi %326, %82 : vector<4x512xi1>
    %cst_130 = arith.constant 0.000000e+00 : f32
    %328 = vector.broadcast %cst_130 : f32 to vector<4x512xf32>
    %329 = arith.select %327, %325, %328 : vector<4x512xi1>, vector<4x512xf32>
    %c40_131 = arith.constant 40 : index
    %c0_132 = arith.constant 0 : index
    %330 = vector.load %arg9[%c40_131, %c0_132] : memref<108x512xf32, #tpu.memory_space<vmem>>, vector<4x512xf32>
    tpu.vector_store %arg9[%c40_131, %c0_132], %329 {strides = array<i32>} : memref<108x512xf32, #tpu.memory_space<vmem>>, vector<4x512xf32>,
    %331 = vector.extract_strided_slice %264 {offsets = [0, 66], sizes = [4, 512], strides = [1, 1]} : vector<4x658xf32> to vector<4x512xf32>
    %332 = arith.andi %28, %46 : vector<4x512xi1>
    %333 = arith.andi %332, %91 : vector<4x512xi1>
    %cst_133 = arith.constant 0.000000e+00 : f32
    %334 = vector.broadcast %cst_133 : f32 to vector<4x512xf32>
    %335 = arith.select %333, %331, %334 : vector<4x512xi1>, vector<4x512xf32>
    %c44_134 = arith.constant 44 : index
    %c0_135 = arith.constant 0 : index
    %336 = vector.load %arg9[%c44_134, %c0_135] : memref<108x512xf32, #tpu.memory_space<vmem>>, vector<4x512xf32>
    tpu.vector_store %arg9[%c44_134, %c0_135], %335 {strides = array<i32>} : memref<108x512xf32, #tpu.memory_space<vmem>>, vector<4x512xf32>,
    %337 = vector.extract_strided_slice %264 {offsets = [0, 72], sizes = [4, 512], strides = [1, 1]} : vector<4x658xf32> to vector<4x512xf32>
    %338 = arith.andi %28, %55 : vector<4x512xi1>
    %339 = arith.andi %338, %73 : vector<4x512xi1>
    %cst_136 = arith.constant 0.000000e+00 : f32
    %340 = vector.broadcast %cst_136 : f32 to vector<4x512xf32>
    %341 = arith.select %339, %337, %340 : vector<4x512xi1>, vector<4x512xf32>
    %c48_137 = arith.constant 48 : index
    %c0_138 = arith.constant 0 : index
    %342 = vector.load %arg9[%c48_137, %c0_138] : memref<108x512xf32, #tpu.memory_space<vmem>>, vector<4x512xf32>
    tpu.vector_store %arg9[%c48_137, %c0_138], %341 {strides = array<i32>} : memref<108x512xf32, #tpu.memory_space<vmem>>, vector<4x512xf32>,
    %343 = vector.extract_strided_slice %264 {offsets = [0, 73], sizes = [4, 512], strides = [1, 1]} : vector<4x658xf32> to vector<4x512xf32>
    %344 = arith.andi %28, %55 : vector<4x512xi1>
    %345 = arith.andi %344, %82 : vector<4x512xi1>
    %cst_139 = arith.constant 0.000000e+00 : f32
    %346 = vector.broadcast %cst_139 : f32 to vector<4x512xf32>
    %347 = arith.select %345, %343, %346 : vector<4x512xi1>, vector<4x512xf32>
    %c52_140 = arith.constant 52 : index
    %c0_141 = arith.constant 0 : index
    %348 = vector.load %arg9[%c52_140, %c0_141] : memref<108x512xf32, #tpu.memory_space<vmem>>, vector<4x512xf32>
    tpu.vector_store %arg9[%c52_140, %c0_141], %347 {strides = array<i32>} : memref<108x512xf32, #tpu.memory_space<vmem>>, vector<4x512xf32>,
    %349 = vector.extract_strided_slice %264 {offsets = [0, 74], sizes = [4, 512], strides = [1, 1]} : vector<4x658xf32> to vector<4x512xf32>
    %350 = arith.andi %28, %55 : vector<4x512xi1>
    %351 = arith.andi %350, %91 : vector<4x512xi1>
    %cst_142 = arith.constant 0.000000e+00 : f32
    %352 = vector.broadcast %cst_142 : f32 to vector<4x512xf32>
    %353 = arith.select %351, %349, %352 : vector<4x512xi1>, vector<4x512xf32>
    %c56_143 = arith.constant 56 : index
    %c0_144 = arith.constant 0 : index
    %354 = vector.load %arg9[%c56_143, %c0_144] : memref<108x512xf32, #tpu.memory_space<vmem>>, vector<4x512xf32>
    tpu.vector_store %arg9[%c56_143, %c0_144], %353 {strides = array<i32>} : memref<108x512xf32, #tpu.memory_space<vmem>>, vector<4x512xf32>,
    %355 = vector.extract_strided_slice %264 {offsets = [0, 80], sizes = [4, 512], strides = [1, 1]} : vector<4x658xf32> to vector<4x512xf32>
    %356 = arith.andi %28, %64 : vector<4x512xi1>
    %357 = arith.andi %356, %73 : vector<4x512xi1>
    %cst_145 = arith.constant 0.000000e+00 : f32
    %358 = vector.broadcast %cst_145 : f32 to vector<4x512xf32>
    %359 = arith.select %357, %355, %358 : vector<4x512xi1>, vector<4x512xf32>
    %c60_146 = arith.constant 60 : index
    %c0_147 = arith.constant 0 : index
    %360 = vector.load %arg9[%c60_146, %c0_147] : memref<108x512xf32, #tpu.memory_space<vmem>>, vector<4x512xf32>
    tpu.vector_store %arg9[%c60_146, %c0_147], %359 {strides = array<i32>} : memref<108x512xf32, #tpu.memory_space<vmem>>, vector<4x512xf32>,
    %361 = vector.extract_strided_slice %264 {offsets = [0, 81], sizes = [4, 512], strides = [1, 1]} : vector<4x658xf32> to vector<4x512xf32>
    %362 = arith.andi %28, %64 : vector<4x512xi1>
    %363 = arith.andi %362, %82 : vector<4x512xi1>
    %cst_148 = arith.constant 0.000000e+00 : f32
    %364 = vector.broadcast %cst_148 : f32 to vector<4x512xf32>
    %365 = arith.select %363, %361, %364 : vector<4x512xi1>, vector<4x512xf32>
    %c64_149 = arith.constant 64 : index
    %c0_150 = arith.constant 0 : index
    %366 = vector.load %arg9[%c64_149, %c0_150] : memref<108x512xf32, #tpu.memory_space<vmem>>, vector<4x512xf32>
    tpu.vector_store %arg9[%c64_149, %c0_150], %365 {strides = array<i32>} : memref<108x512xf32, #tpu.memory_space<vmem>>, vector<4x512xf32>,
    %367 = vector.extract_strided_slice %264 {offsets = [0, 82], sizes = [4, 512], strides = [1, 1]} : vector<4x658xf32> to vector<4x512xf32>
    %368 = arith.andi %28, %64 : vector<4x512xi1>
    %369 = arith.andi %368, %91 : vector<4x512xi1>
    %cst_151 = arith.constant 0.000000e+00 : f32
    %370 = vector.broadcast %cst_151 : f32 to vector<4x512xf32>
    %371 = arith.select %369, %367, %370 : vector<4x512xi1>, vector<4x512xf32>
    %c68_152 = arith.constant 68 : index
    %c0_153 = arith.constant 0 : index
    %372 = vector.load %arg9[%c68_152, %c0_153] : memref<108x512xf32, #tpu.memory_space<vmem>>, vector<4x512xf32>
    tpu.vector_store %arg9[%c68_152, %c0_153], %371 {strides = array<i32>} : memref<108x512xf32, #tpu.memory_space<vmem>>, vector<4x512xf32>,
    %373 = vector.extract_strided_slice %264 {offsets = [0, 128], sizes = [4, 512], strides = [1, 1]} : vector<4x658xf32> to vector<4x512xf32>
    %374 = arith.andi %37, %46 : vector<4x512xi1>
    %375 = arith.andi %374, %73 : vector<4x512xi1>
    %cst_154 = arith.constant 0.000000e+00 : f32
    %376 = vector.broadcast %cst_154 : f32 to vector<4x512xf32>
    %377 = arith.select %375, %373, %376 : vector<4x512xi1>, vector<4x512xf32>
    %c72_155 = arith.constant 72 : index
    %c0_156 = arith.constant 0 : index
    %378 = vector.load %arg9[%c72_155, %c0_156] : memref<108x512xf32, #tpu.memory_space<vmem>>, vector<4x512xf32>
    tpu.vector_store %arg9[%c72_155, %c0_156], %377 {strides = array<i32>} : memref<108x512xf32, #tpu.memory_space<vmem>>, vector<4x512xf32>,
    %379 = vector.extract_strided_slice %264 {offsets = [0, 129], sizes = [4, 512], strides = [1, 1]} : vector<4x658xf32> to vector<4x512xf32>
    %380 = arith.andi %37, %46 : vector<4x512xi1>
    %381 = arith.andi %380, %82 : vector<4x512xi1>
    %cst_157 = arith.constant 0.000000e+00 : f32
    %382 = vector.broadcast %cst_157 : f32 to vector<4x512xf32>
    %383 = arith.select %381, %379, %382 : vector<4x512xi1>, vector<4x512xf32>
    %c76_158 = arith.constant 76 : index
    %c0_159 = arith.constant 0 : index
    %384 = vector.load %arg9[%c76_158, %c0_159] : memref<108x512xf32, #tpu.memory_space<vmem>>, vector<4x512xf32>
    tpu.vector_store %arg9[%c76_158, %c0_159], %383 {strides = array<i32>} : memref<108x512xf32, #tpu.memory_space<vmem>>, vector<4x512xf32>,
    %385 = vector.extract_strided_slice %264 {offsets = [0, 130], sizes = [4, 512], strides = [1, 1]} : vector<4x658xf32> to vector<4x512xf32>
    %386 = arith.andi %37, %46 : vector<4x512xi1>
    %387 = arith.andi %386, %91 : vector<4x512xi1>
    %cst_160 = arith.constant 0.000000e+00 : f32
    %388 = vector.broadcast %cst_160 : f32 to vector<4x512xf32>
    %389 = arith.select %387, %385, %388 : vector<4x512xi1>, vector<4x512xf32>
    %c80_161 = arith.constant 80 : index
    %c0_162 = arith.constant 0 : index
    %390 = vector.load %arg9[%c80_161, %c0_162] : memref<108x512xf32, #tpu.memory_space<vmem>>, vector<4x512xf32>
    tpu.vector_store %arg9[%c80_161, %c0_162], %389 {strides = array<i32>} : memref<108x512xf32, #tpu.memory_space<vmem>>, vector<4x512xf32>,
    %391 = vector.extract_strided_slice %264 {offsets = [0, 136], sizes = [4, 512], strides = [1, 1]} : vector<4x658xf32> to vector<4x512xf32>
    %392 = arith.andi %37, %55 : vector<4x512xi1>
    %393 = arith.andi %392, %73 : vector<4x512xi1>
    %cst_163 = arith.constant 0.000000e+00 : f32
    %394 = vector.broadcast %cst_163 : f32 to vector<4x512xf32>
    %395 = arith.select %393, %391, %394 : vector<4x512xi1>, vector<4x512xf32>
    %c84_164 = arith.constant 84 : index
    %c0_165 = arith.constant 0 : index
    %396 = vector.load %arg9[%c84_164, %c0_165] : memref<108x512xf32, #tpu.memory_space<vmem>>, vector<4x512xf32>
    tpu.vector_store %arg9[%c84_164, %c0_165], %395 {strides = array<i32>} : memref<108x512xf32, #tpu.memory_space<vmem>>, vector<4x512xf32>,
    %397 = vector.extract_strided_slice %264 {offsets = [0, 137], sizes = [4, 512], strides = [1, 1]} : vector<4x658xf32> to vector<4x512xf32>
    %398 = arith.andi %37, %55 : vector<4x512xi1>
    %399 = arith.andi %398, %82 : vector<4x512xi1>
    %cst_166 = arith.constant 0.000000e+00 : f32
    %400 = vector.broadcast %cst_166 : f32 to vector<4x512xf32>
    %401 = arith.select %399, %397, %400 : vector<4x512xi1>, vector<4x512xf32>
    %c88_167 = arith.constant 88 : index
    %c0_168 = arith.constant 0 : index
    %402 = vector.load %arg9[%c88_167, %c0_168] : memref<108x512xf32, #tpu.memory_space<vmem>>, vector<4x512xf32>
    tpu.vector_store %arg9[%c88_167, %c0_168], %401 {strides = array<i32>} : memref<108x512xf32, #tpu.memory_space<vmem>>, vector<4x512xf32>,
    %403 = vector.extract_strided_slice %264 {offsets = [0, 138], sizes = [4, 512], strides = [1, 1]} : vector<4x658xf32> to vector<4x512xf32>
    %404 = arith.andi %37, %55 : vector<4x512xi1>
    %405 = arith.andi %404, %91 : vector<4x512xi1>
    %cst_169 = arith.constant 0.000000e+00 : f32
    %406 = vector.broadcast %cst_169 : f32 to vector<4x512xf32>
    %407 = arith.select %405, %403, %406 : vector<4x512xi1>, vector<4x512xf32>
    %c92_170 = arith.constant 92 : index
    %c0_171 = arith.constant 0 : index
    %408 = vector.load %arg9[%c92_170, %c0_171] : memref<108x512xf32, #tpu.memory_space<vmem>>, vector<4x512xf32>
    tpu.vector_store %arg9[%c92_170, %c0_171], %407 {strides = array<i32>} : memref<108x512xf32, #tpu.memory_space<vmem>>, vector<4x512xf32>,
    %409 = vector.extract_strided_slice %264 {offsets = [0, 144], sizes = [4, 512], strides = [1, 1]} : vector<4x658xf32> to vector<4x512xf32>
    %410 = arith.andi %37, %64 : vector<4x512xi1>
    %411 = arith.andi %410, %73 : vector<4x512xi1>
    %cst_172 = arith.constant 0.000000e+00 : f32
    %412 = vector.broadcast %cst_172 : f32 to vector<4x512xf32>
    %413 = arith.select %411, %409, %412 : vector<4x512xi1>, vector<4x512xf32>
    %c96_173 = arith.constant 96 : index
    %c0_174 = arith.constant 0 : index
    %414 = vector.load %arg9[%c96_173, %c0_174] : memref<108x512xf32, #tpu.memory_space<vmem>>, vector<4x512xf32>
    tpu.vector_store %arg9[%c96_173, %c0_174], %413 {strides = array<i32>} : memref<108x512xf32, #tpu.memory_space<vmem>>, vector<4x512xf32>,
    %415 = vector.extract_strided_slice %264 {offsets = [0, 145], sizes = [4, 512], strides = [1, 1]} : vector<4x658xf32> to vector<4x512xf32>
    %416 = arith.andi %37, %64 : vector<4x512xi1>
    %417 = arith.andi %416, %82 : vector<4x512xi1>
    %cst_175 = arith.constant 0.000000e+00 : f32
    %418 = vector.broadcast %cst_175 : f32 to vector<4x512xf32>
    %419 = arith.select %417, %415, %418 : vector<4x512xi1>, vector<4x512xf32>
    %c100_176 = arith.constant 100 : index
    %c0_177 = arith.constant 0 : index
    %420 = vector.load %arg9[%c100_176, %c0_177] : memref<108x512xf32, #tpu.memory_space<vmem>>, vector<4x512xf32>
    tpu.vector_store %arg9[%c100_176, %c0_177], %419 {strides = array<i32>} : memref<108x512xf32, #tpu.memory_space<vmem>>, vector<4x512xf32>,
    %421 = vector.extract_strided_slice %264 {offsets = [0, 146], sizes = [4, 512], strides = [1, 1]} : vector<4x658xf32> to vector<4x512xf32>
    %422 = arith.andi %37, %64 : vector<4x512xi1>
    %423 = arith.andi %422, %91 : vector<4x512xi1>
    %cst_178 = arith.constant 0.000000e+00 : f32
    %424 = vector.broadcast %cst_178 : f32 to vector<4x512xf32>
    %425 = arith.select %423, %421, %424 : vector<4x512xi1>, vector<4x512xf32>
    %c104_179 = arith.constant 104 : index
    %c0_180 = arith.constant 0 : index
    %426 = vector.load %arg9[%c104_179, %c0_180] : memref<108x512xf32, #tpu.memory_space<vmem>>, vector<4x512xf32>
    tpu.vector_store %arg9[%c104_179, %c0_180], %425 {strides = array<i32>} : memref<108x512xf32, #tpu.memory_space<vmem>>, vector<4x512xf32>,
    %c0_181 = arith.constant 0 : index
    %c0_182 = arith.constant 0 : index
    %427 = vector.load %arg4[%c0_181, %c0_182] : memref<4x108xf32, #tpu.memory_space<vmem>>, vector<4x108xf32>
    %c0_183 = arith.constant 0 : index
    %c0_184 = arith.constant 0 : index
    %428 = vector.load %arg9[%c0_183, %c0_184] : memref<108x512xf32, #tpu.memory_space<vmem>>, vector<108x512xf32>
    %cst_185 = arith.constant dense<0.000000e+00> : vector<4x512xf32>
    %429 = tpu.matmul %427, %428, %cst_185 {dimension_numbers = #tpu.dot_dimension_numbers<[1], [0], [0], [1], [0, 0, 1, 1], [], []>} : vector<4x108xf32>, vector<108x512xf32>, vector<4x512xf32> -> vector<4x512xf32>
    %c0_186 = arith.constant 0 : index
    %c0_187 = arith.constant 0 : index
    %430 = vector.load %arg5[%c0_186, %c0_187] : memref<4x1xf32, #tpu.memory_space<vmem>>, vector<4x1xf32>
    %431 = vector.broadcast %430 : vector<4x1xf32> to vector<4x512xf32>
    %432 = arith.addf %429, %431 : vector<4x512xf32>
    %cst_188 = arith.constant 0.000000e+00 : f32
    %433 = vector.broadcast %cst_188 : f32 to vector<4x512xf32>
    %434 = arith.maximumf %432, %433 : vector<4x512xf32>
    %c0_189 = arith.constant 0 : index
    %c0_190 = arith.constant 0 : index
    %435 = vector.load %arg6[%c0_189, %c0_190] : memref<4x4xf32, #tpu.memory_space<vmem>>, vector<4x4xf32>
    %cst_191 = arith.constant dense<0.000000e+00> : vector<4x512xf32>
    %436 = tpu.matmul %435, %434, %cst_191 {dimension_numbers = #tpu.dot_dimension_numbers<[1], [0], [0], [1], [0, 0, 1, 1], [], []>} : vector<4x4xf32>, vector<4x512xf32>, vector<4x512xf32> -> vector<4x512xf32>
    %c0_192 = arith.constant 0 : index
    %c0_193 = arith.constant 0 : index
    %437 = vector.load %arg7[%c0_192, %c0_193] : memref<4x1xf32, #tpu.memory_space<vmem>>, vector<4x1xf32>
    %438 = vector.broadcast %437 : vector<4x1xf32> to vector<4x512xf32>
    %439 = arith.addf %436, %438 : vector<4x512xf32>
    %440 = arith.addf %439, %1 : vector<4x512xf32>
    %c0_194 = arith.constant 0 : index
    %c0_195 = arith.constant 0 : index
    %c0_196 = arith.constant 0 : index
    %441 = vector.load %arg8[%c0_194, %c0_195, %c0_196] : memref<1x4x512xf32, #tpu.memory_space<vmem>>, vector<1x4x512xf32>
    %442 = vector.shape_cast %441 : vector<1x4x512xf32> to vector<4x512xf32>
    %443 = vector.shape_cast %440 : vector<4x512xf32> to vector<1x4x512xf32>
    tpu.vector_store %arg8[%c0_194, %c0_195, %c0_196], %443 {strides = array<i32>} : memref<1x4x512xf32, #tpu.memory_space<vmem>>, vector<1x4x512xf32>,
    return
  }
  func.func @transform_0(%arg0: i32) -> (i32, i32, i32) {
    %c0_i32 = arith.constant 0 : i32
    %c0_i32_0 = arith.constant 0 : i32
    %c0_i32_1 = arith.constant 0 : i32
    return %arg0, %c0_i32, %c0_i32_0 : i32, i32, i32
  }
  func.func @transform_1(%arg0: i32) -> (i32, i32) {
    %c0_i32 = arith.constant 0 : i32
    %c0_i32_0 = arith.constant 0 : i32
    %c0_i32_1 = arith.constant 0 : i32
    return %c0_i32, %c0_i32_0 : i32, i32
  }
  func.func @transform_2(%arg0: i32) -> (i32, i32) {
    %c0_i32 = arith.constant 0 : i32
    %c0_i32_0 = arith.constant 0 : i32
    %c0_i32_1 = arith.constant 0 : i32
    return %c0_i32, %c0_i32_0 : i32, i32
  }
  func.func @transform_3(%arg0: i32) -> (i32, i32) {
    %c0_i32 = arith.constant 0 : i32
    %c0_i32_0 = arith.constant 0 : i32
    %c0_i32_1 = arith.constant 0 : i32
    return %c0_i32, %c0_i32_0 : i32, i32
  }
  func.func @transform_4(%arg0: i32) -> (i32, i32) {
    %c0_i32 = arith.constant 0 : i32
    %c0_i32_0 = arith.constant 0 : i32
    %c0_i32_1 = arith.constant 0 : i32
    return %c0_i32, %c0_i32_0 : i32, i32
  }
  func.func @transform_5(%arg0: i32) -> (i32, i32) {
    %c0_i32 = arith.constant 0 : i32
    %c0_i32_0 = arith.constant 0 : i32
    %c0_i32_1 = arith.constant 0 : i32
    return %c0_i32, %c0_i32_0 : i32, i32
  }
  func.func @transform_6(%arg0: i32) -> (i32, i32) {
    %c0_i32 = arith.constant 0 : i32
    %c0_i32_0 = arith.constant 0 : i32
    %c0_i32_1 = arith.constant 0 : i32
    return %c0_i32, %c0_i32_0 : i32, i32
  }
  func.func @transform_7(%arg0: i32) -> (i32, i32, i32) {
    %c0_i32 = arith.constant 0 : i32
    %c0_i32_0 = arith.constant 0 : i32
    %c0_i32_1 = arith.constant 0 : i32
    return %arg0, %c0_i32, %c0_i32_0 : i32, i32, i32
  }
}

</mosaic_0001>

<bundles_post_ra>
// kernel: resblock_forward.1
= control target key start
LH: loop header
LB: loop body
LE: loop exit
PB: predicated region body
PF: predicated region fallthrough
CT: control target
= control target key end

     0   :  { %s3086_s24 = smov 0   ;;  %s4651_s0 = inlined_call_operand.vmem [shape: f32[2,4,512], index: 0, kind: input, shape index: {}]   ;;  %s4652_s1 = inlined_call_operand.vmem [shape: f32[4,108], index: 1, kind: input, shape index: {}]   ;;  %s4653_s2 = inlined_call_operand.vmem [shape: f32[4,1], index: 2, kind: input, shape index: {}]   ;;  %s4654_s3 = inlined_call_operand.vmem [shape: f32[4,108], index: 3, kind: input, shape index: {}]   ;;  %s4655_s4 = inlined_call_operand.vmem [shape: f32[4,1], index: 4, kind: input, shape index: {}]   ;;  %s4656_s5 = inlined_call_operand.vmem [shape: f32[4,4], index: 5, kind: input, shape index: {}]   ;;  %s4657_s6 = inlined_call_operand.vmem [shape: f32[4,1], index: 6, kind: input, shape index: {}]   ;;  %s4658_s7 = inlined_call_operand.vmem [shape: f32[2,4,512], index: 7, kind: output, shape index: {}]  }
   0x1 LB: > { %s2831_s25 = sadd.s32 4294967295, %s3023_s24   ;;  %p2835_p0 = scmp.ge.s32.totalorder %s3023_s24, 1  ;;  %s3023_s24 = sphi %s3086_s24, %s17_s24  }
   0x2   : > { %p237_p1 = scmp.lt.s32.totalorder %s3023_s24, 3 }
   0x4   : > { %p238_p2 = pnand %p2835_p0, %p237_p1 }
   0x6   : > { %241 = sbr.rel (%p238_p2) target bundleno = 1522 (0x5f2), region = 48 }
   0xd   : > { %p269_p3 = scmp.lt.s32.totalorder %s2831_s25, 1  ;;  %s3025_s30 = smov 73   ;;  %v281_v4 = vlaneseq  ;;  %v4787_v30 = vmov 0  ;;  %v4789_v33 = vmov 0  ;;  %v4791_v35 = vmov 0 }
   0xe   : > { %v4793_v36 = vmov 0  ;;  %vm4662_vm15 = vcmask 596992   ;;  %v4795_v37 = vmov 0  ;;  %v4797_v38 = vmov 0  ;;  %s3026_s8 = smov 120   ;;  %s3027_s9 = smov 127  }
   0xf   : > { %s5141_s25 = smov (!%p269_p3, %s2831_s25), 1  ;;  %v3116_v5 = vand.u32 127, %v281_v4  ;;  %v4799_v41 = vmov 0  ;;  %v4801_v43 = vmov 0  ;;  %v4803_v45 = vmov 0  ;;  %s3028_s10 = smov 118  }
  0x10   : > { %s4699_s26 = sshll.u32 %s5141_s25, 4  ;;  %v4805_v46 = vmov 0  ;;  %v4807_v49 = vmov 0  ;;  %s3029_s11 = smov 126   ;;  %v4688_v61 = vmov 0.0  }
  0x11   : > { %s3102_s29 = scalar_lea.vmem %s4651_s0, %s4699_s26  ;;  %v3119_v6 = vadd.s32 128, %v3116_v5  ;;  %v317_v7 = vshrl.u32 %v3116_v5, 3  ;;  %v3123_v8 = vadd.s32 256, %v3116_v5  ;;  %v3127_v10 = vadd.s32 384, %v3116_v5  ;;  %s3030_s12 = smov 119   ;;  %1571 = vmatprep.mubr.f32.mxu0 %v4688_v61  ;;  %1642 = vmatprep.mubr.f32.mxu1 %v4688_v61 }
  0x12   : > { %v279_v0 = vld [vmem:[%s3102_s29] sm:$0xff]  ;;  %v280_v1 = vld [vmem:[%s3102_s29 + $0x8] sm:$0xff]  ;;  %v289_v11 = vshrl.u32 %v3116_v5, 6  ;;  %v374_v16 = vand.u32 7, %v3116_v5  ;;  %s3031_s13 = smov 111   ;;  %s3032_s14 = smov 64  }
  0x13   : > { %534 = vrot.lane.b32.xlu0 %v279_v0, %s3025_s30  ;;  %v3107_v2 = vcombine.high %v279_v0, %v279_v0  ;;  %538 = vrot.lane.b32.xlu1 %v280_v1, %s3025_s30  ;;  %v3110_v3 = vcombine.high %v280_v1, %v280_v1  ;;  %v324_v9 = vshrl.u32 %v3119_v6, 3  ;;  %v3130_v12 = vand.u32 7, %v317_v7  ;;  %s3033_s15 = smov 112   ;;  %s3034_s16 = smov 110  }
  0x14   : > { %v331_v13 = vshrl.u32 %v3123_v8, 3  ;;  %v338_v15 = vshrl.u32 %v3127_v10, 3  ;;  %v3137_v17 = vadd.s32 4294967295, %v289_v11  ;;  %v381_v20 = vand.u32 7, %v3119_v6  ;;  %s3035_s17 = smov 62   ;;  %s3036_s18 = smov 63  }
  0x15   : > { %4783 = vst [vmem:[#allocation3_spill] sm:$0xff] %v3107_v2  ;;  %4784 = vst [vmem:[#allocation4_spill] sm:$0xff] %v3110_v3  ;;  %v3133_v14 = vand.u32 7, %v324_v9  ;;  %v3140_v18 = vadd.s32 4294967295, %v3130_v12  ;;  %v3150_v23 = vadd.s32 4294967295, %v374_v16  ;;  %v388_v24 = vand.u32 7, %v3123_v8 }
  0x16   : > { %4785 = vst [vmem:[#allocation5_spill] sm:$0xff] %v3137_v17  ;;  %v3142_v19 = vand.u32 7, %v331_v13  ;;  %v3146_v22 = vand.u32 7, %v338_v15  ;;  %vm4659_vm0 = vcmp.ge.s32.totalorder %v3137_v17, 0  ;;  %v310_v26 = vshrl.u32 %v3127_v10, 6  ;;  %s3038_s19 = smov 48  }
  0x17   : > { %536 = vrot.lane.b32.xlu0 %v3107_v2, %s3025_s30  ;;  %540 = vrot.lane.b32.xlu1 %v3110_v3, %s3025_s30  ;;  %4786 = vst [vmem:[#allocation6_spill] sm:$0xff] %v3140_v18  ;;  %v443_v21 = vadd.s32 4294967295, %v3133_v14  ;;  %vm4665_vm1 = vcmp.ge.s32.totalorder %v3140_v18, 0  ;;  %v3159_v27 = vadd.s32 4294967295, %v381_v20  ;;  %v395_v28 = vand.u32 7, %v3127_v10  ;;  %s3039_s20 = smov 55  }
  0x18   : > { %v444_v25 = vadd.s32 4294967295, %v3142_v19  ;;  %v445_v29 = vadd.s32 4294967295, %v3146_v22  ;;  %vm4667_vm4 = vcmp.ge.s32.totalorder %v3150_v23, 0  ;;  %vm3168_vm5 = vmand %vm4659_vm0, %vm4665_vm1  ;;  %v3174_v31 = vadd.s32 4294967295, %v388_v24  ;;  %s3040_s21 = smov 56   ;;  %s3041_s22 = smov 54  }
  0x19   : > { %vm447_vm2 = vcmp.ge.s32.totalorder %v443_v21, 0  ;;  %vm451_vm3 = vcmp.lt.s32.totalorder %v443_v21, 8  ;;  %v4788_v30 = vsel %vm3168_vm5, 4294967295, %v4787_v30  ;;  %v3176_v32 = vadd.s32 1, %v310_v26  ;;  %vm3191_vm10 = vmand %vm3168_vm5, %vm4667_vm4  ;;  %s3042_s23 = smov 46   ;;  %s3043_s27 = smov 47  }
  0x1a   : > { %vm448_vm6 = vcmp.ge.s32.totalorder %v444_v25, 0  ;;  %vm452_vm7 = vcmp.lt.s32.totalorder %v444_v25, 8  ;;  %vm3178_vm8 = vmand %vm447_vm2, %vm451_vm3  ;;  %vm4668_vm9 = vcmp.ge.s32.totalorder %v3159_v27, 0  ;;  %v3185_v34 = vadd.s32 4294967295, %v395_v28 }
  0x1b   : > { %v4790_v33 = vsel %vm3178_vm8, 4294967295, %v4789_v33  ;;  %v4792_v35 = vsel %vm3191_vm10, 4294967295, %v4791_v35  ;;  %vm449_vm11 = vcmp.ge.s32.totalorder %v445_v29, 0  ;;  %vm453_vm12 = vcmp.lt.s32.totalorder %v445_v29, 8  ;;  %vm3195_vm13 = vmand %vm448_vm6, %vm452_vm7 }
  0x1c   : > { %v4794_v36 = vsel %vm3195_vm13, 4294967295, %v4793_v36  ;;  %vm4661_vm14 = vcmp.ge.s32.totalorder %v3174_v31, 0  ;;  %vm3204_vm2 = vmand %vm3178_vm8, %vm4668_vm9  ;;  %vm4660_vm3 = vcmp.lt.s32.totalorder %v3176_v32, 8  ;;  %vm4663_vm6 = vcmp.ge.s32.totalorder %v3185_v34, 0 }
  0x1d   : > { %v4796_v37 = vsel %vm3204_vm2, 4294967295, %v4795_v37  ;;  %vm3209_vm0 = vmand %vm449_vm11, %vm453_vm12 }
  0x1e   : > { %v4798_v38 = vsel %vm3209_vm0, 4294967295, %v4797_v38  ;;  %vm3218_vm7 = vmand %vm3195_vm13, %vm4661_vm14 }
  0x1f   : > { %v4800_v41 = vsel %vm3218_vm7, 4294967295, %v4799_v41  ;;  %vm3229_vm11 = vmand %vm4660_vm3, %vm3209_vm0 }
  0x20   : > { %v4802_v43 = vsel %vm3229_vm11, 4294967295, %v4801_v43  ;;  %vm3244_vm12 = vmand %vm3209_vm0, %vm4663_vm6 }
  0x21   : > { %v4804_v45 = vsel %vm3244_vm12, 4294967295, %v4803_v45  ;;  %vm3252_vm3 = vmand %vm4665_vm1, %vm4667_vm4 }
  0x22   : > { %v4806_v46 = vsel %vm3252_vm3, 4294967295, %v4805_v46  ;;  %vm3260_vm14 = vmand %vm3229_vm11, %vm4663_vm6  ;;  %vm4666_vm6 = vcmask 982016   ;;  %vm4818_vm11 = vcmp.ge.s32.totalorder %v3185_v34, 0 }
  0x23   : > { %v4808_v49 = vsel %vm3260_vm14, 4294967295, %v4807_v49 }
  0x85   : > { %v535_v39 = vpop.permute.xlu0 %534  ;;  %v539_v40 = vpop.permute.xlu1 %538 }
  0x86   : > { %v3223_v42 = vsel %vm4662_vm15, 0.0, %v535_v39 }
  0x87   : > { %653 = vrot.lane.b32.xlu1 %v3223_v42, %s3026_s8  ;;  %575 = vrot.lane.b32.xlu0 %v3223_v42, %s3027_s9  ;;  %v561_v44 = vsel %vm3191_vm10, %v3223_v42, 0.0  ;;  %vm4817_vm10 = vcmp.ge.s32.totalorder %v3174_v31, 0 }
  0x88   : > { %565 = vst [vmem:[#allocation2] sm:$0xf] %v561_v44 }
  0x89   : > { %v537_v47 = vpop.permute.xlu0 %536  ;;  %v541_v48 = vpop.permute.xlu1 %540 }
  0x8a   : > { %v3265_v50 = vsel %vm4662_vm15, %v535_v39, %v537_v47  ;;  %v3268_v51 = vsel %vm4662_vm15, %v537_v47, %v539_v40  ;;  %v3271_v52 = vsel %vm4662_vm15, %v539_v40, %v541_v48  ;;  %v3274_v53 = vsel %vm4662_vm15, %v541_v48, 0.0 }
  0x8b   : > { %727 = vrot.lane.b32.xlu1 %v3223_v42, %s3028_s10  ;;  %618 = vrot.lane.b32.xlu0 %v3223_v42, %s3029_s11  ;;  %v562_v54 = vsel %vm3204_vm2, %v3265_v50, 0.0  ;;  %v564_v55 = vsel %vm3244_vm12, %v3271_v52, 0.0  ;;  %v563_v56 = vsel %vm3218_vm7, %v3268_v51, 0.0  ;;  %v1234_v57 = vsel %vm3252_vm3, %v3265_v50, 0.0 }
  0x8c   : > { %566 = vst [vmem:[#allocation2 + $0x8] sm:$0xf] %v562_v54  ;;  %568 = vst [vmem:[#allocation2 + $0x18] sm:$0xf] %v564_v55  ;;  %v1237_v58 = vsel %vm3260_vm14, %v3274_v53, 0.0  ;;  %v1235_v59 = vsel %vm3204_vm2, %v3268_v51, 0.0 }
  0x8d   : > { %567 = vst [vmem:[#allocation2 + $0x10] sm:$0xf] %v563_v56  ;;  %1238 = vst [vmem:[#allocation2 + $0x120] sm:$0xf] %v1234_v57  ;;  %v1236_v60 = vsel %vm3218_vm7, %v3271_v52, 0.0  ;;  %vm4664_vm15 = vcmask 1039360  }
  0x8e   : > { %1241 = vst [vmem:[#allocation2 + $0x138] sm:$0xf] %v1237_v58  ;;  %1239 = vst [vmem:[#allocation2 + $0x128] sm:$0xf] %v1235_v59 }
  0x8f   : > { %1240 = vst [vmem:[#allocation2 + $0x130] sm:$0xf] %v1236_v60  ;;  %696 = vrot.lane.b32.xlu1 %v3223_v42, %s3030_s12  ;;  %805 = vrot.lane.b32.xlu0 %v3223_v42, %s3031_s13 }
  0x93   : > { %883 = vrot.lane.b32.xlu1 %v3223_v42, %s3032_s14  ;;  %774 = vrot.lane.b32.xlu0 %v3223_v42, %s3033_s15 }
  0x97   : > { %848 = vrot.lane.b32.xlu1 %v3223_v42, %s3034_s16  ;;  %957 = vrot.lane.b32.xlu0 %v3223_v42, %s3035_s17 }
  0x9b   : > { %926 = vrot.lane.b32.xlu0 %v3223_v42, %s3036_s18  ;;  %579 = vrot.lane.b32.xlu1 %v3268_v51, %s3027_s9 }
  0x9f   : > { %583 = vrot.lane.b32.xlu1 %v3274_v53, %s3027_s9  ;;  %577 = vrot.lane.b32.xlu0 %v3265_v50, %s3027_s9 }
  0xa3   : > { %657 = vrot.lane.b32.xlu1 %v3268_v51, %s3026_s8  ;;  %581 = vrot.lane.b32.xlu0 %v3271_v52, %s3027_s9 }
  0xa7   : > { %661 = vrot.lane.b32.xlu1 %v3274_v53, %s3026_s8  ;;  %655 = vrot.lane.b32.xlu0 %v3265_v50, %s3026_s8 }
  0xab   : > { %622 = vrot.lane.b32.xlu1 %v3268_v51, %s3029_s11  ;;  %659 = vrot.lane.b32.xlu0 %v3271_v52, %s3026_s8 }
  0xaf   : > { %626 = vrot.lane.b32.xlu1 %v3274_v53, %s3029_s11  ;;  %620 = vrot.lane.b32.xlu0 %v3265_v50, %s3029_s11 }
  0xb3   : > { %729 = vrot.lane.b32.xlu1 %v3265_v50, %s3028_s10  ;;  %624 = vrot.lane.b32.xlu0 %v3271_v52, %s3029_s11 }
  0xb7   : > { %733 = vrot.lane.b32.xlu1 %v3271_v52, %s3028_s10  ;;  %731 = vrot.lane.b32.xlu0 %v3268_v51, %s3028_s10 }
  0xbb   : > { %807 = vrot.lane.b32.xlu1 %v3265_v50, %s3031_s13  ;;  %735 = vrot.lane.b32.xlu0 %v3274_v53, %s3028_s10 }
  0xbf   : > { %811 = vrot.lane.b32.xlu1 %v3271_v52, %s3031_s13  ;;  %809 = vrot.lane.b32.xlu0 %v3268_v51, %s3031_s13 }
  0xc3   : > { %776 = vrot.lane.b32.xlu1 %v3265_v50, %s3033_s15  ;;  %813 = vrot.lane.b32.xlu0 %v3274_v53, %s3031_s13 }
  0xc7   : > { %780 = vrot.lane.b32.xlu1 %v3271_v52, %s3033_s15  ;;  %778 = vrot.lane.b32.xlu0 %v3268_v51, %s3033_s15 }
  0xcb   : > { %700 = vrot.lane.b32.xlu1 %v3268_v51, %s3030_s12  ;;  %782 = vrot.lane.b32.xlu0 %v3274_v53, %s3033_s15 }
  0xcf   : > { %704 = vrot.lane.b32.xlu1 %v3274_v53, %s3030_s12  ;;  %698 = vrot.lane.b32.xlu0 %v3265_v50, %s3030_s12 }
  0xd3   : > { %885 = vrot.lane.b32.xlu1 %v3265_v50, %s3032_s14  ;;  %702 = vrot.lane.b32.xlu0 %v3271_v52, %s3030_s12 }
  0xd7   : > { %889 = vrot.lane.b32.xlu1 %v3271_v52, %s3032_s14  ;;  %887 = vrot.lane.b32.xlu0 %v3268_v51, %s3032_s14 }
  0xdb   : > { %959 = vrot.lane.b32.xlu1 %v3265_v50, %s3035_s17  ;;  %891 = vrot.lane.b32.xlu0 %v3274_v53, %s3032_s14 }
  0xdf   : > { %963 = vrot.lane.b32.xlu1 %v3271_v52, %s3035_s17  ;;  %961 = vrot.lane.b32.xlu0 %v3268_v51, %s3035_s17 }
  0xe3   : > { %850 = vrot.lane.b32.xlu1 %v3265_v50, %s3034_s16  ;;  %965 = vrot.lane.b32.xlu0 %v3274_v53, %s3035_s17 }
  0xe7   : > { %854 = vrot.lane.b32.xlu1 %v3271_v52, %s3034_s16  ;;  %852 = vrot.lane.b32.xlu0 %v3268_v51, %s3034_s16 }
  0xeb   : > { %928 = vrot.lane.b32.xlu1 %v3265_v50, %s3036_s18  ;;  %856 = vrot.lane.b32.xlu0 %v3274_v53, %s3034_s16 }
  0xef   : > { %932 = vrot.lane.b32.xlu1 %v3271_v52, %s3036_s18  ;;  %930 = vrot.lane.b32.xlu0 %v3268_v51, %s3036_s18 }
  0xf3   : > { %1115 = vrot.lane.b32.xlu1 %v3265_v50, %s3038_s19  ;;  %934 = vrot.lane.b32.xlu0 %v3274_v53, %s3036_s18 }
  0xf7   : > { %1119 = vrot.lane.b32.xlu1 %v3271_v52, %s3038_s19  ;;  %1117 = vrot.lane.b32.xlu0 %v3268_v51, %s3038_s19 }
  0xf9   : > { %v3411_v62 = vpop.permute.xlu1 %653  ;;  %v576_v63 = vpop.permute.xlu0 %575 }
  0xfb   : > { %1037 = vrot.lane.b32.xlu1 %v3265_v50, %s3039_s20  ;;  %1121 = vrot.lane.b32.xlu0 %v3274_v53, %s3038_s19 }
  0xfd   : > { %v3417_v0 = vpop.permute.xlu1 %727  ;;  %v3419_v1 = vpop.permute.xlu0 %618 }
  0xff   : > { %1041 = vrot.lane.b32.xlu1 %v3271_v52, %s3039_s20  ;;  %1039 = vrot.lane.b32.xlu0 %v3268_v51, %s3039_s20 }
 0x101   : > { %v3425_v4 = vpop.permute.xlu1 %696  ;;  %v3427_v7 = vpop.permute.xlu0 %805 }
 0x103   : > { %1113 = vrot.lane.b32.xlu1 %v3223_v42, %s3038_s19  ;;  %1043 = vrot.lane.b32.xlu0 %v3274_v53, %s3039_s20 }
 0x105   : > { %v3433_v9 = vpop.permute.xlu1 %883  ;;  %v3435_v11 = vpop.permute.xlu0 %774 }
 0x107   : > { %1008 = vrot.lane.b32.xlu1 %v3268_v51, %s3040_s21  ;;  %1006 = vrot.lane.b32.xlu0 %v3265_v50, %s3040_s21 }
 0x109   : > { %v3441_v13 = vpop.permute.xlu1 %848  ;;  %v3443_v15 = vpop.permute.xlu0 %957 }
 0x10b   : > { %1012 = vrot.lane.b32.xlu1 %v3274_v53, %s3040_s21  ;;  %1010 = vrot.lane.b32.xlu0 %v3271_v52, %s3040_s21 }
 0x10d   : > { %v580_v21 = vpop.permute.xlu1 %579  ;;  %v3449_v25 = vpop.permute.xlu0 %926 }
 0x10f   : > { %1080 = vrot.lane.b32.xlu1 %v3265_v50, %s3041_s22  ;;  %1035 = vrot.lane.b32.xlu0 %v3223_v42, %s3039_s20 }
 0x111   : > { %v3455_v26 = vpop.permute.xlu1 %583  ;;  %v578_v29 = vpop.permute.xlu0 %577 }
 0x112   : > { %v586_v39 = vsel %vm4664_vm15, %v576_v63, %v578_v29  ;;  %v587_v40 = vsel %vm4664_vm15, %v578_v29, %v580_v21  ;;  %v3474_v63 = vadd.s32 1, %v374_v16  ;;  %v3478_v29 = vadd.s32 1, %v381_v20 }
 0x113   : > { %v594_v44 = vsel %vm3168_vm5, %v586_v39, 0.0  ;;  %v595_v47 = vsel %vm3178_vm8, %v587_v40, 0.0  ;;  %v1251_v48 = vsel %vm4665_vm1, %v587_v40, 0.0  ;;  %1084 = vrot.lane.b32.xlu1 %v3271_v52, %s3041_s22  ;;  %1082 = vrot.lane.b32.xlu0 %v3268_v51, %s3041_s22 }
 0x114   : > { %v602_v54 = vrot.slane %v594_v44, 4  ;;  %v603_v55 = vrot.slane %v595_v47, 4  ;;  %v1259_v56 = vrot.slane %v1251_v48, 4  ;;  %v4810_v47 = vmov 0 }
 0x115   : > { %v658_v57 = vpop.permute.xlu1 %657  ;;  %v582_v58 = vpop.permute.xlu0 %581  ;;  %vm4821_vm14 = vcmp.lt.s32.totalorder %v3478_v29, 8 }
 0x116   : > { %610 = vst [vmem:[#allocation2] sm:$0xf0] %v602_v54  ;;  %611 = vst [vmem:[#allocation2 + $0x8] sm:$0xf0] %v603_v55  ;;  %v588_v59 = vsel %vm4664_vm15, %v580_v21, %v582_v58  ;;  %v589_v60 = vsel %vm4664_vm15, %v582_v58, %v3455_v26  ;;  %vm4809_vm15 = vcmp.ge.s32.totalorder %v3137_v17, 0  ;;  %v3507_v58 = vadd.s32 1, %v388_v24 }
 0x117   : > { %1267 = vst [vmem:[#allocation2 + $0x120] sm:$0xf0] %v1259_v56  ;;  %v596_v39 = vsel %vm3195_vm13, %v588_v59, 0.0  ;;  %v597_v40 = vsel %vm3209_vm0, %v589_v60, 0.0  ;;  %v1252_v21 = vsel %vm3178_vm8, %v588_v59, 0.0  ;;  %v1253_v44 = vsel %vm3195_vm13, %v589_v60, 0.0  ;;  %1004 = vrot.lane.b32.xlu1 %v3223_v42, %s3040_s21  ;;  %1086 = vrot.lane.b32.xlu0 %v3274_v53, %s3041_s22  ;;  %vm3496_vm1 = vmand %vm4809_vm15, %vm4667_vm4 }
 0x118   : > { %v604_v5 = vrot.slane %v596_v39, 4  ;;  %v605_v6 = vrot.slane %v597_v40, 4  ;;  %v1260_v16 = vrot.slane %v1252_v21, 4  ;;  %v1261_v20 = vrot.slane %v1253_v44, 4 }
 0x119   : > { %v4811_v47 = vsel %vm3496_vm1, 4294967295, %v4810_v47  ;;  %v3500_v48 = vpop.permute.xlu1 %661  ;;  %v656_v54 = vpop.permute.xlu0 %655  ;;  %vm4675_vm15 = vcmp.lt.s32.totalorder %v3474_v63, 8  ;;  %v3523_v44 = vadd.s32 1, %v395_v28 }
 0x11a   : > { %612 = vst [vmem:[#allocation2 + $0x10] sm:$0xf0] %v604_v5  ;;  %613 = vst [vmem:[#allocation2 + $0x18] sm:$0xf0] %v605_v6  ;;  %v664_v55 = vsel %vm4666_vm6, %v3411_v62, %v656_v54  ;;  %v665_v56 = vsel %vm4666_vm6, %v656_v54, %v658_v57  ;;  %vm4674_vm6 = vcmask 1031168   ;;  %v4822_v54 = vmov 0 }
 0x11b   : > { %1268 = vst [vmem:[#allocation2 + $0x128] sm:$0xf0] %v1260_v16  ;;  %1269 = vst [vmem:[#allocation2 + $0x130] sm:$0xf0] %v1261_v20  ;;  %v672_v59 = vsel %vm3496_vm1, %v664_v55, 0.0  ;;  %v673_v60 = vsel %vm4668_vm9, %v665_v56, 0.0  ;;  %1189 = vrot.lane.b32.xlu1 %v3265_v50, %s3042_s23  ;;  %1078 = vrot.lane.b32.xlu0 %v3223_v42, %s3041_s22 }
 0x11c   : > { %v1299_v39 = vsel %vm4667_vm4, %v665_v56, 0.0  ;;  %v680_v8 = vrot.slane %v672_v59, 4  ;;  %v681_v24 = vrot.slane %v673_v60, 4  ;;  %vm4812_vm4 = vcmask 982016   ;;  %vm3532_vm1 = vmand %vm3168_vm5, %vm4675_vm15 }
 0x11d   : > { %v1307_v62 = vrot.slane %v1299_v39, 4  ;;  %v623_v40 = vpop.permute.xlu1 %622  ;;  %v660_v21 = vpop.permute.xlu0 %659  ;;  %vm4813_vm9 = vmmov %vm4812_vm4  ;;  %v4814_v16 = vmov 0  ;;  %v4825_v39 = vmov 0 }
 0x11e   : > { %688 = vst [vmem:[#allocation2 + $0x20] sm:$0xf0] %v680_v8  ;;  %689 = vst [vmem:[#allocation2 + $0x28] sm:$0xf0] %v681_v24  ;;  %v666_v5 = vsel %vm4812_vm4, %v658_v57, %v660_v21  ;;  %v667_v6 = vsel %vm4813_vm9, %v660_v21, %v3500_v48  ;;  %v4815_v16 = vsel %vm3532_vm1, 4294967295, %v4814_v16  ;;  %vm4819_vm4 = vcmp.ge.s32.totalorder %v3159_v27, 0 }
 0x11f   : > { %1315 = vst [vmem:[#allocation2 + $0x140] sm:$0xf0] %v1307_v62  ;;  %4816 = vst [vmem:[#allocation7_spill] sm:$0xff] %v4815_v16  ;;  %v674_v10 = vsel %vm4817_vm10, %v666_v5, 0.0  ;;  %v675_v28 = vsel %vm4818_vm11, %v667_v6, 0.0  ;;  %v1300_v57 = vsel %vm4819_vm4, %v666_v5, 0.0  ;;  %1193 = vrot.lane.b32.xlu1 %v3271_v52, %s3042_s23  ;;  %1191 = vrot.lane.b32.xlu0 %v3268_v51, %s3042_s23 }
 0x120   : > { %vm4820_vm9 = vmmov %vm4817_vm10  ;;  %v682_v55 = vrot.slane %v674_v10, 4  ;;  %v683_v56 = vrot.slane %v675_v28, 4  ;;  %v1308_v59 = vrot.slane %v1300_v57, 4  ;;  %vm4824_vm11 = vcmp.ge.s32.totalorder %v3140_v18, 0 }
 0x121   : > { %v1301_v20 = vsel %vm4820_vm9, %v667_v6, 0.0  ;;  %vm3553_vm10 = vmand %vm3178_vm8, %vm4821_vm14  ;;  %v3565_v8 = vpop.permute.xlu1 %626  ;;  %v621_v24 = vpop.permute.xlu0 %620  ;;  %vm4678_vm14 = vcmp.lt.s32.totalorder %v3523_v44, 8  ;;  %vm4827_vm9 = vcmp.ge.s32.totalorder %v3137_v17, 0  ;;  %v4828_v5 = vmov 0 }
 0x122   : > { %v4823_v54 = vsel %vm3553_vm10, 4294967295, %v4822_v54  ;;  %v1309_v60 = vrot.slane %v1301_v20, 4  ;;  %vm3561_vm4 = vmand %vm4824_vm11, %vm4675_vm15  ;;  %690 = vst [vmem:[#allocation2 + $0x30] sm:$0xf0] %v682_v55  ;;  %v629_v62 = vsel %vm4674_vm6, %v3419_v1, %v621_v24  ;;  %v630_v21 = vsel %vm4674_vm6, %v621_v24, %v623_v40 }
 0x123   : > { %v4826_v39 = vsel %vm3561_vm4, 4294967295, %v4825_v39  ;;  %691 = vst [vmem:[#allocation2 + $0x38] sm:$0xf0] %v683_v56  ;;  %1316 = vst [vmem:[#allocation2 + $0x148] sm:$0xf0] %v1308_v59  ;;  %v637_v6 = vsel %vm3532_vm1, %v629_v62, 0.0  ;;  %1247 = vrot.lane.b32.xlu1 %v4688_v61, %s3027_s9  ;;  %1195 = vrot.lane.b32.xlu0 %v3274_v53, %s3042_s23 }
 0x124   : > { %1317 = vst [vmem:[#allocation2 + $0x150] sm:$0xf0] %v1309_v60  ;;  %vm3575_vm11 = vmand %vm4827_vm9, %vm4675_vm15  ;;  %v638_v10 = vsel %vm3553_vm10, %v630_v21, 0.0  ;;  %v1279_v28 = vsel %vm3561_vm4, %v630_v21, 0.0  ;;  %vm4692_vm6 = vcmask 965632   ;;  %vm4831_vm9 = vcmp.lt.s32.totalorder %v3507_v58, 8 }
 0x125   : > { %v4829_v5 = vsel %vm3575_vm11, 4294967295, %v4828_v5  ;;  %vm3593_vm15 = vmand %vm3195_vm13, %vm4831_vm9  ;;  %v4832_v1 = vmov 0  ;;  %641 = vst [vmem:[#allocation2 + $0x20] sm:$0xf] %v637_v6  ;;  %v4835_v57 = vmov 0  ;;  %v730_v20 = vpop.permute.xlu1 %729  ;;  %v625_v55 = vpop.permute.xlu0 %624  ;;  %v3606_v56 = vadd.s32 1, %v3130_v12 }
 0x126   : > { %4830 = vst [vmem:[#allocation8_spill] sm:$0xff] %v4829_v5  ;;  %v4833_v1 = vsel %vm3593_vm15, 4294967295, %v4832_v1  ;;  %642 = vst [vmem:[#allocation2 + $0x28] sm:$0xf] %v638_v10  ;;  %v471_v59 = vadd.s32 1, %v3133_v14  ;;  %v738_v60 = vsel %vm4692_vm6, %v3417_v0, %v730_v20  ;;  %vm4838_vm9 = vcmask 1031168  }
 0x127   : > { %4834 = vst [vmem:[#allocation9_spill] sm:$0xff] %v4833_v1  ;;  %1283 = vst [vmem:[#allocation2 + $0x140] sm:$0xf] %v1279_v28  ;;  %v631_v24 = vsel %vm4838_vm9, %v623_v40, %v625_v55  ;;  %v3615_v21 = vadd.s32 1, %v3142_v19  ;;  %v746_v6 = vsel %vm3575_vm11, %v738_v60, 0.0  ;;  %1158 = vrot.lane.b32.xlu1 %v3265_v50, %s3043_s27  ;;  %1187 = vrot.lane.b32.xlu0 %v3223_v42, %s3042_s23  ;;  %vm4840_vm13 = vcmp.lt.s32.totalorder %v3478_v29, 8 }
 0x128   : > { %vm3601_vm1 = vmand %vm3209_vm0, %vm4678_vm14  ;;  %v639_v12 = vsel %vm3593_vm15, %v631_v24, 0.0  ;;  %v1280_v0 = vsel %vm3553_vm10, %v631_v24, 0.0  ;;  %v754_v19 = vrot.slane %v746_v6, 4  ;;  %vm475_vm14 = vcmp.ge.s32.totalorder %v471_v59, 0 }
 0x129   : > { %v4836_v57 = vsel %vm3601_vm1, 4294967295, %v4835_v57  ;;  %vm4839_vm5 = vmmov %vm4838_vm9  ;;  %643 = vst [vmem:[#allocation2 + $0x30] sm:$0xf] %v639_v12  ;;  %v734_v10 = vpop.permute.xlu1 %733  ;;  %v732_v28 = vpop.permute.xlu0 %731  ;;  %vm479_vm0 = vcmp.lt.s32.totalorder %v471_v59, 8  ;;  %vm4841_vm8 = vcmp.lt.s32.totalorder %v3507_v58, 8  ;;  %vm4852_vm11 = vcmp.lt.s32.totalorder %v3507_v58, 8 }
 0x12a   : > { %4837 = vst [vmem:[#allocation10_spill] sm:$0xff] %v4836_v57  ;;  %v632_v62 = vsel %vm4839_vm5, %v625_v55, %v3565_v8  ;;  %1284 = vst [vmem:[#allocation2 + $0x148] sm:$0xf] %v1280_v0  ;;  %vm4691_vm5 = vcmp.lt.s32.totalorder %v3606_v56, 8  ;;  %v739_v50 = vsel %vm4692_vm6, %v730_v20, %v732_v28  ;;  %v740_v55 = vsel %vm4692_vm6, %v732_v28, %v734_v10 }
 0x12b   : > { %v640_v14 = vsel %vm3601_vm1, %v632_v62, 0.0  ;;  %v1281_v40 = vsel %vm3593_vm15, %v632_v62, 0.0  ;;  %762 = vst [vmem:[#allocation2 + $0x40] sm:$0xf0] %v754_v19  ;;  %v747_v60 = vsel %vm4840_vm13, %v739_v50, 0.0  ;;  %v748_v24 = vsel %vm4841_vm8, %v740_v55, 0.0  ;;  %vm4843_vm9 = vmmov %vm4840_vm13  ;;  %1162 = vrot.lane.b32.xlu1 %v3271_v52, %s3043_s27  ;;  %1160 = vrot.lane.b32.xlu0 %v3268_v51, %s3043_s27 }
 0x12c   : > { %644 = vst [vmem:[#allocation2 + $0x38] sm:$0xf] %v640_v14  ;;  %1285 = vst [vmem:[#allocation2 + $0x150] sm:$0xf] %v1281_v40  ;;  %vm4842_vm1 = vcmp.lt.s32.totalorder %v3474_v63, 8  ;;  %v1344_v6 = vsel %vm4843_vm9, %v740_v55, 0.0 }
 0x12d   : > { %v1343_v62 = vsel %vm4842_vm1, %v739_v50, 0.0  ;;  %v1433_v20 = vld [vmem:[#allocation2 + $0x28] sm:$0xff]  ;;  %v1432_v12 = vld [vmem:[#allocation2 + $0x20] sm:$0xff]  ;;  %v755_v14 = vrot.slane %v747_v60, 4  ;;  %v756_v0 = vrot.slane %v748_v24, 4  ;;  %v1352_v40 = vrot.slane %v1344_v6, 4  ;;  %v808_v52 = vpop.permute.xlu1 %807  ;;  %v3655_v61 = vpop.permute.xlu0 %735 }
 0x12e   : > { %v1351_v19 = vrot.slane %v1343_v62, 4  ;;  %vm4844_vm8 = vcmp.ge.s32.totalorder %v3137_v17, 0  ;;  %v4845_v28 = vmov 0  ;;  %v1429_v50 = vld [vmem:[#allocation2 + $0x8] sm:$0xff]  ;;  %v1428_v55 = vld [vmem:[#allocation2] sm:$0xff]  ;;  %vm480_vm13 = vcmp.lt.s32.totalorder %v3615_v21, 8 }
 0x12f   : > { %vm3651_vm1 = vmand %vm4844_vm8, %vm4691_vm5  ;;  %v2862_v51 = vpack.c.bf16 %v1433_v20, %v1429_v50  ;;  %v2864_v2 = vpack.c.bf16 %v1432_v12, %v1428_v55  ;;  %v473_v60 = vadd.s32 1, %v3146_v22  ;;  %763 = vst [vmem:[#allocation2 + $0x48] sm:$0xf0] %v755_v14  ;;  %vm4848_vm9 = vcmask 908288   ;;  %1156 = vrot.lane.b32.xlu1 %v3223_v42, %s3043_s27  ;;  %1164 = vrot.lane.b32.xlu0 %v3274_v53, %s3043_s27  ;;  %v1430_v42 = vld [vmem:[#allocation2 + $0x10] sm:$0xff] }
 0x130   : > { %v4846_v28 = vsel %vm3651_vm1, 4294967295, %v4845_v28  ;;  %764 = vst [vmem:[#allocation2 + $0x50] sm:$0xf0] %v756_v0  ;;  %1359 = vst [vmem:[#allocation2 + $0x160] sm:$0xf0] %v1351_v19  ;;  %v816_v24 = vsel %vm4848_vm9, %v3427_v7, %v808_v52  ;;  %v741_v62 = vsel %vm4692_vm6, %v734_v10, %v3655_v61  ;;  %v4849_v6 = vmov 0 }
 0x131   : > { %4847 = vst [vmem:[#allocation11_spill] sm:$0xff] %v4846_v28  ;;  %1360 = vst [vmem:[#allocation2 + $0x168] sm:$0xf0] %v1352_v40  ;;  %v824_v20 = vsel %vm3651_vm1, %v816_v24, 0.0  ;;  %vm4851_vm5 = vcmp.lt.s32.totalorder %v3523_v44, 8  ;;  %v1345_v12 = vsel %vm4852_vm11, %v741_v62, 0.0  ;;  %2863 = vmatprep.subr.bf16.mxu0 %v2862_v51  ;;  %v812_v55 = vpop.permute.xlu1 %811  ;;  %v810_v51 = vpop.permute.xlu0 %809 }
 0x132   : > { %vm3665_vm8 = vmand %vm475_vm14, %vm479_vm0  ;;  %v749_v22 = vsel %vm4851_vm5, %v741_v62, 0.0  ;;  %v1431_v7 = vld [vmem:[#allocation2 + $0x18] sm:$0xff]  ;;  %v1434_v59 = vld [vmem:[#allocation2 + $0x30] sm:$0xff]  ;;  %v832_v14 = vrot.slane %v824_v20, 4  ;;  %v1353_v19 = vrot.slane %v1345_v12, 4  ;;  %2865 = vmatpush1.bf16.msra.mxu0 %v2864_v2  ;;  %vm4853_vm0 = vcmp.ge.s32.totalorder %v3615_v21, 0 }
 0x133   : > { %v4850_v6 = vsel %vm3665_vm8, 4294967295, %v4849_v6  ;;  %v1435_v10 = vld [vmem:[#allocation2 + $0x38] sm:$0xff]  ;;  %v757_v0 = vrot.slane %v749_v22, 4  ;;  %vm3683_vm14 = vmand %vm4853_vm0, %vm480_vm13  ;;  %v4854_v40 = vmov 0  ;;  %v2894_v24 = vpack.c.bf16 %v1434_v59, %v1430_v42 }
 0x134   : > { %v4855_v40 = vsel %vm3683_vm14, 4294967295, %v4854_v40  ;;  %v2892_v50 = vpack.c.bf16 %v1435_v10, %v1431_v7  ;;  %vm477_vm11 = vcmp.ge.s32.totalorder %v473_v60, 0  ;;  %vm481_vm5 = vcmp.lt.s32.totalorder %v473_v60, 8  ;;  %840 = vst [vmem:[#allocation2 + $0x60] sm:$0xf0] %v832_v14  ;;  %vm4856_vm6 = vmmov %vm4848_vm9 }
 0x135   : > { %765 = vst [vmem:[#allocation2 + $0x58] sm:$0xf0] %v757_v0  ;;  %1361 = vst [vmem:[#allocation2 + $0x170] sm:$0xf0] %v1353_v19  ;;  %v817_v2 = vsel %vm4848_vm9, %v808_v52, %v810_v51  ;;  %v818_v53 = vsel %vm4856_vm6, %v810_v51, %v812_v55  ;;  %vm4695_vm15 = vcmask 916480   ;;  %vm4857_vm13 = vcmp.lt.s32.totalorder %v3606_v56, 8  ;;  %v777_v19 = vpop.permute.xlu1 %776 }
 0x136   : > { %2893 = vmatprep.subr.bf16.mxu1 %v2892_v50  ;;  %v825_v21 = vsel %vm3665_vm8, %v817_v2, 0.0  ;;  %v826_v62 = vsel %vm3683_vm14, %v818_v53, 0.0  ;;  %v1391_v20 = vsel %vm4857_vm13, %v817_v2, 0.0  ;;  %v1392_v22 = vsel %vm3665_vm8, %v818_v53, 0.0  ;;  %vm3711_vm9 = vmand %vm477_vm11, %vm481_vm5  ;;  %v3715_v50 = vpop.permute.xlu0 %813 }
 0x137   : > { %v4858_v12 = vmov 0.0   ;;  %2895 = vmatpush1.bf16.msra.mxu1 %v2894_v24  ;;  %vm4859_vm6 = vcmp.ge.s32.totalorder %v3150_v23, 0  ;;  %v4860_v52 = vmov 0  ;;  %v833_v7 = vrot.slane %v825_v21, 4 }
 0x138   : > { %1339 = vrot.lane.b32.xlu1 %v4858_v12, %s3028_s10  ;;  %vm3703_vm0 = vmand %vm3651_vm1, %vm4859_vm6  ;;  %v834_v10 = vrot.slane %v826_v62, 4  ;;  %v1399_v59 = vrot.slane %v1391_v20, 4  ;;  %v1400_v14 = vrot.slane %v1392_v22, 4  ;;  %1295 = vrot.lane.b32.xlu0 %v4858_v12, %s3026_s8  ;;  %v4863_v0 = vmov 0 }
 0x139   : > { %v4861_v52 = vsel %vm3703_vm0, 4294967295, %v4860_v52  ;;  %v4864_v0 = vsel %vm3711_vm9, 4294967295, %v4863_v0  ;;  %841 = vst [vmem:[#allocation2 + $0x68] sm:$0xf0] %v833_v7  ;;  %v785_v42 = vsel %vm4695_vm15, %v3435_v11, %v777_v19  ;;  %vm4865_vm13 = vcmask 908288   ;;  %v781_v20 = vpop.permute.xlu1 %780 }
 0x13a   : > { %4862 = vst [vmem:[#allocation12_spill] sm:$0xff] %v4861_v52  ;;  %842 = vst [vmem:[#allocation2 + $0x70] sm:$0xf0] %v834_v10  ;;  %v819_v51 = vsel %vm4865_vm13, %v812_v55, %v3715_v50  ;;  %vm4866_vm6 = vcmp.ge.s32.totalorder %v3159_v27, 0  ;;  %v4867_v60 = vmov 0  ;;  %v793_v24 = vsel %vm3703_vm0, %v785_v42, 0.0  ;;  %v779_v22 = vpop.permute.xlu0 %778 }
 0x13b   : > { %1407 = vst [vmem:[#allocation2 + $0x180] sm:$0xf0] %v1399_v59  ;;  %1408 = vst [vmem:[#allocation2 + $0x188] sm:$0xf0] %v1400_v14  ;;  %v827_v2 = vsel %vm3711_vm9, %v819_v51, 0.0  ;;  %v1393_v11 = vsel %vm3683_vm14, %v819_v51, 0.0 }
 0x13c   : > { %vm3725_vm11 = vmand %vm3665_vm8, %vm4866_vm6  ;;  %1323 = vrot.lane.b32.xlu1 %v4858_v12, %s3030_s12  ;;  %vm4870_vm5 = vcmp.ge.s32.totalorder %v3174_v31, 0  ;;  %v4871_v55 = vmov 0  ;;  %797 = vst [vmem:[#allocation2 + $0x60] sm:$0xf] %v793_v24  ;;  %v835_v53 = vrot.slane %v827_v2, 4  ;;  %v1401_v21 = vrot.slane %v1393_v11, 4  ;;  %1275 = vrot.lane.b32.xlu0 %v4858_v12, %s3029_s11 }
 0x13d   : > { %v4868_v60 = vsel %vm3725_vm11, 4294967295, %v4867_v60  ;;  %vm3741_vm13 = vmand %vm3683_vm14, %vm4870_vm5  ;;  %vm4874_vm6 = vcmp.ge.s32.totalorder %v3150_v23, 0  ;;  %vm4875_vm15 = vcmp.lt.s32.totalorder %v3606_v56, 8  ;;  %v4876_v62 = vmov 0  ;;  %v701_v24 = vpop.permute.xlu1 %700 }
 0x13e   : > { %4869 = vst [vmem:[#allocation13_spill] sm:$0xff] %v4868_v60  ;;  %v4872_v55 = vsel %vm3741_vm13, 4294967295, %v4871_v55  ;;  %vm3751_vm0 = vmand %vm4875_vm15, %vm4874_vm6  ;;  %vm4878_vm5 = vcmask 916480   ;;  %vm4880_vm15 = vcmp.ge.s32.totalorder %v3185_v34, 0  ;;  %v3777_v2 = vpop.permute.xlu0 %782 }
 0x13f   : > { %4873 = vst [vmem:[#allocation14_spill] sm:$0xff] %v4872_v55  ;;  %v4877_v62 = vsel %vm3751_vm0, 4294967295, %v4876_v62  ;;  %843 = vst [vmem:[#allocation2 + $0x78] sm:$0xf0] %v835_v53  ;;  %v786_v7 = vsel %vm4878_vm5, %v777_v19, %v779_v22  ;;  %v4881_v19 = vmov 0 }
 0x140   : > { %1409 = vst [vmem:[#allocation2 + $0x190] sm:$0xf0] %v1401_v21  ;;  %vm4879_vm14 = vmmov %vm4878_vm5  ;;  %v794_v59 = vsel %vm3725_vm11, %v786_v7, 0.0  ;;  %v1375_v42 = vsel %vm3751_vm0, %v786_v7, 0.0  ;;  %1371 = vrot.lane.b32.xlu1 %v4858_v12, %s3033_s15  ;;  %1387 = vrot.lane.b32.xlu0 %v4858_v12, %s3031_s13 }
 0x141   : > { %v787_v10 = vsel %vm4879_vm14, %v779_v22, %v781_v20  ;;  %798 = vst [vmem:[#allocation2 + $0x68] sm:$0xf] %v794_v59  ;;  %1379 = vst [vmem:[#allocation2 + $0x180] sm:$0xf] %v1375_v42  ;;  %v3787_v22 = vpop.permute.xlu1 %704  ;;  %v1484_v42 = vld [vmem:[%s4653_s2] sm:$0xf] }
 0x142   : > { %v795_v14 = vsel %vm3741_vm13, %v787_v10, 0.0  ;;  %v1376_v51 = vsel %vm3725_vm11, %v787_v10, 0.0  ;;  %vm3773_vm14 = vmand %vm3711_vm9, %vm4880_vm15  ;;  %v699_v7 = vpop.permute.xlu0 %698  ;;  %vm4884_vm15 = vcmp.ge.s32.totalorder %v3137_v17, 0 }
 0x143   : > { %799 = vst [vmem:[#allocation2 + $0x70] sm:$0xf] %v795_v14  ;;  %1380 = vst [vmem:[#allocation2 + $0x188] sm:$0xf] %v1376_v51  ;;  %v4882_v19 = vsel %vm3773_vm14, 4294967295, %v4881_v19  ;;  %v3044_v14 = vmov 0  }
 0x144   : > { %vm4883_vm6 = vmmov %vm4878_vm5  ;;  %vm4706_vm5 = vcmask 973824   ;;  %1415 = vrot.lane.b32.xlu0 %v4858_v12, %s3034_s16  ;;  %3011 = vset.pattern.permute.xlu1 %v3044_v14 }
 0x145   : > { %v788_v11 = vsel %vm4883_vm6, %v781_v20, %v3777_v2  ;;  %v707_v10 = vsel %vm4706_vm5, %v3425_v4, %v699_v7  ;;  %v708_v20 = vsel %vm4706_vm5, %v699_v7, %v701_v24  ;;  %vm4705_vm6 = vcmask 523264   ;;  %3012 = vset.pattern.permute.xlu0 %v3044_v14  ;;  %v886_v51 = vpop.permute.xlu1 %885  ;;  %1487 = vperm.xlu1 %3011, %v1484_v42  }
 0x146   : > { %v796_v53 = vsel %vm3773_vm14, %v788_v11, 0.0  ;;  %v1377_v21 = vsel %vm3741_vm13, %v788_v11, 0.0  ;;  %v715_v59 = vsel %vm4884_vm15, %v707_v10, 0.0  ;;  %720 = vst [vmem:[#allocation2 + $0x48] sm:$0xf] %v708_v20  ;;  %v703_v11 = vpop.permute.xlu0 %702  ;;  %v894_v4 = vsel %vm4705_vm6, %v3433_v9, %v886_v51 }
 0x147   : > { %800 = vst [vmem:[#allocation2 + $0x78] sm:$0xf] %v796_v53  ;;  %1381 = vst [vmem:[#allocation2 + $0x190] sm:$0xf] %v1377_v21  ;;  %v709_v53 = vsel %vm4706_vm5, %v701_v24, %v703_v11  ;;  %v710_v21 = vsel %vm4706_vm5, %v703_v11, %v3787_v22  ;;  %v902_v7 = vsel %vm3252_vm3, %v894_v4, 0.0  ;;  %vm4717_vm15 = vcmask 506880  }
 0x148   : > { %1331 = vst [vmem:[#allocation2 + $0x160] sm:$0xf] %v708_v20  ;;  %719 = vst [vmem:[#allocation2 + $0x40] sm:$0xf] %v715_v59  ;;  %v910_v10 = vrot.slane %v902_v7, 4  ;;  %v1441_v24 = vld [vmem:[#allocation2 + $0x68] sm:$0xff] }
 0x149   : > { %721 = vst [vmem:[#allocation2 + $0x50] sm:$0xf] %v709_v53  ;;  %722 = vst [vmem:[#allocation2 + $0x58] sm:$0xf] %v710_v21  ;;  %v890_v20 = vpop.permute.xlu1 %889  ;;  %vm4714_vm5 = vcmask 900096  }
 0x14a   : > { %1332 = vst [vmem:[#allocation2 + $0x168] sm:$0xf] %v709_v53  ;;  %1333 = vst [vmem:[#allocation2 + $0x170] sm:$0xf] %v710_v21  ;;  %v888_v59 = vpop.permute.xlu0 %887  ;;  %v1440_v21 = vld [vmem:[#allocation2 + $0x60] sm:$0xff]  ;;  %v1442_v5 = vld [vmem:[#allocation2 + $0x70] sm:$0xff] }
 0x14b   : > { %918 = vst [vmem:[#allocation2 + $0x80] sm:$0xf0] %v910_v10  ;;  %v895_v14 = vsel %vm4705_vm6, %v886_v51, %v888_v59  ;;  %v896_v9 = vsel %vm4705_vm6, %v888_v59, %v890_v20 }
 0x14c   : > { %v903_v11 = vsel %vm3204_vm2, %v895_v14, 0.0  ;;  %v904_v4 = vsel %vm3218_vm7, %v896_v9, 0.0  ;;  %vm4738_vm2 = vcmask 392192  }
 0x14d   : > { %v1437_v42 = vld [vmem:[#allocation2 + $0x48] sm:$0xff]  ;;  %v911_v7 = vrot.slane %v903_v11, 4  ;;  %v912_v17 = vrot.slane %v904_v4, 4  ;;  %v960_v10 = vpop.permute.xlu1 %959 }
 0x14e   : > { %v2866_v3 = vpack.c.bf16 %v1441_v24, %v1437_v42  ;;  %v892_v51 = vpop.permute.xlu0 %891  ;;  %v968_v59 = vsel %vm4717_vm15, %v3443_v15, %v960_v10  ;;  %v1443_v16 = vld [vmem:[#allocation2 + $0x78] sm:$0xff] }
 0x14f   : > { %v1436_v53 = vld [vmem:[#allocation2 + $0x40] sm:$0xff]  ;;  %919 = vst [vmem:[#allocation2 + $0x88] sm:$0xf0] %v911_v7  ;;  %920 = vst [vmem:[#allocation2 + $0x90] sm:$0xf0] %v912_v17  ;;  %v897_v14 = vsel %vm4705_vm6, %v890_v20, %v892_v51  ;;  %v976_v24 = vsel %vm3561_vm4, %v968_v59, 0.0  ;;  %vm4885_vm6 = vnez %v4833_v1 }
 0x150   : > { %v2868_v52 = vpack.c.bf16 %v1440_v21, %v1436_v53  ;;  %2867 = vmatprep.subr.bf16.mxu0 %v2866_v3  ;;  %v1439_v9 = vld [vmem:[#allocation2 + $0x58] sm:$0xff]  ;;  %v1438_v42 = vld [vmem:[#allocation2 + $0x50] sm:$0xff]  ;;  %v905_v11 = vsel %vm3244_vm12, %v897_v14, 0.0  ;;  %v984_v53 = vrot.slane %v976_v24, 4  ;;  %vm4886_vm4 = vcmp.lt.s32.totalorder %v3474_v63, 8 }
 0x151   : > { %v2896_v3 = vpack.c.bf16 %v1443_v16, %v1439_v9  ;;  %v2898_v4 = vpack.c.bf16 %v1442_v5, %v1438_v42  ;;  %v913_v21 = vrot.slane %v905_v11, 4  ;;  %v964_v17 = vpop.permute.xlu1 %963  ;;  %vm3827_vm12 = vmand %vm3651_vm1, %vm4886_vm4  ;;  %v4887_v59 = vmov 0 }
 0x152   : > { %2869 = vmatpush1.bf16.msra.mxu0 %v2868_v52  ;;  %v962_v7 = vpop.permute.xlu0 %961  ;;  %992 = vst [vmem:[#allocation2 + $0xa0] sm:$0xf0] %v984_v53  ;;  %v4888_v59 = vsel %vm3827_vm12, 4294967295, %v4887_v59  ;;  %v4891_v24 = vmov 0  ;;  %vm4894_vm4 = vnez %v4836_v57  ;;  %vm4895_vm1 = vcmp.lt.s32.totalorder %v3507_v58, 8 }
 0x153   : > { %2897 = vmatprep.subr.bf16.mxu1 %v2896_v3  ;;  %921 = vst [vmem:[#allocation2 + $0x98] sm:$0xf0] %v913_v21  ;;  %v969_v15 = vsel %vm4717_vm15, %v960_v10, %v962_v7  ;;  %v970_v52 = vsel %vm4717_vm15, %v962_v7, %v964_v17  ;;  %4889 = vst [vmem:[#allocation15_spill] sm:$0xff] %v4888_v59  ;;  %v4902_v53 = vmov 0 }
 0x154   : > { %2899 = vmatpush1.bf16.msra.mxu1 %v2898_v4  ;;  %v977_v20 = vsel %vm3553_vm10, %v969_v15, 0.0  ;;  %v978_v51 = vsel %vm4885_vm6, %v970_v52, 0.0  ;;  %vm4890_vm6 = vcmp.lt.s32.totalorder %v3478_v29, 8 }
 0x155   : > { %v985_v16 = vrot.slane %v977_v20, 4  ;;  %v986_v5 = vrot.slane %v978_v51, 4  ;;  %v851_v10 = vpop.permute.xlu1 %850  ;;  %vm3838_vm10 = vmand %vm3665_vm8, %vm4890_vm6  ;;  %vm4900_vm6 = vcmp.lt.s32.totalorder %v3474_v63, 8 }
 0x156   : > { %v966_v14 = vpop.permute.xlu0 %965  ;;  %v859_v9 = vsel %vm4714_vm5, %v3441_v13, %v851_v10  ;;  %v4892_v24 = vsel %vm3838_vm10, 4294967295, %v4891_v24  ;;  %vm4896_vm5 = vnez %v4855_v40  ;;  %v4897_v13 = vmov 0 }
 0x157   : > { %993 = vst [vmem:[#allocation2 + $0xa8] sm:$0xf0] %v985_v16  ;;  %994 = vst [vmem:[#allocation2 + $0xb0] sm:$0xf0] %v986_v5  ;;  %v971_v42 = vsel %vm4717_vm15, %v964_v17, %v966_v14  ;;  %v867_v11 = vsel %vm3827_vm12, %v859_v9, 0.0  ;;  %vm4901_vm15 = vcmp.lt.s32.totalorder %v3606_v56, 8 }
 0x158   : > { %4893 = vst [vmem:[#allocation16_spill] sm:$0xff] %v4892_v24  ;;  %v979_v3 = vsel %vm4894_vm4, %v971_v42, 0.0  ;;  %vm3850_vm7 = vmand %vm4896_vm5, %vm4895_vm1  ;;  %vm4905_vm12 = vcmask 900096   ;;  %vm4727_vm1 = vcmask 515072   ;;  %v4908_v5 = vmov 0 }
 0x159   : > { %v4898_v13 = vsel %vm3850_vm7, 4294967295, %v4897_v13  ;;  %871 = vst [vmem:[#allocation2 + $0x80] sm:$0xf] %v867_v11  ;;  %v987_v4 = vrot.slane %v979_v3, 4  ;;  %vm3858_vm3 = vmand %vm4901_vm15, %vm4900_vm6  ;;  %v855_v21 = vpop.permute.xlu1 %854  ;;  %vm4911_vm6 = vcmp.ge.s32.totalorder %v3140_v18, 0 }
 0x15a   : > { %4899 = vst [vmem:[#allocation17_spill] sm:$0xff] %v4898_v13  ;;  %v4903_v53 = vsel %vm3858_vm3, 4294967295, %v4902_v53  ;;  %v853_v17 = vpop.permute.xlu0 %852  ;;  %vm4906_vm4 = vmmov %vm4905_vm12 }
 0x15b   : > { %4904 = vst [vmem:[#allocation18_spill] sm:$0xff] %v4903_v53  ;;  %995 = vst [vmem:[#allocation2 + $0xb8] sm:$0xf0] %v987_v4  ;;  %v860_v7 = vsel %vm4905_vm12, %v851_v10, %v853_v17  ;;  %v861_v15 = vsel %vm4906_vm4, %v853_v17, %v855_v21  ;;  %vm4907_vm12 = vcmp.lt.s32.totalorder %v3523_v44, 8 }
 0x15c   : > { %v868_v52 = vsel %vm3838_vm10, %v860_v7, 0.0  ;;  %v869_v20 = vsel %vm3850_vm7, %v861_v15, 0.0  ;;  %v1419_v51 = vsel %vm3858_vm3, %v860_v7, 0.0  ;;  %v1420_v16 = vsel %vm3838_vm10, %v861_v15, 0.0  ;;  %vm3876_vm15 = vmand %vm3711_vm9, %vm4907_vm12 }
 0x15d   : > { %872 = vst [vmem:[#allocation2 + $0x88] sm:$0xf] %v868_v52  ;;  %873 = vst [vmem:[#allocation2 + $0x90] sm:$0xf] %v869_v20  ;;  %v4909_v5 = vsel %vm3876_vm15, 4294967295, %v4908_v5  ;;  %v929_v10 = vpop.permute.xlu1 %928  ;;  %vm4912_vm12 = vnez %v4790_v33 }
 0x15e   : > { %1423 = vst [vmem:[#allocation2 + $0x1a0] sm:$0xf] %v1419_v51  ;;  %1424 = vst [vmem:[#allocation2 + $0x1a8] sm:$0xf] %v1420_v16  ;;  %v3880_v14 = vpop.permute.xlu0 %856  ;;  %v937_v9 = vsel %vm4727_vm1, %v3449_v25, %v929_v10 }
 0x15f   : > { %4910 = vst [vmem:[#allocation19_spill] sm:$0xff] %v4909_v5  ;;  %v862_v42 = vsel %vm4906_vm4, %v855_v21, %v3880_v14  ;;  %v945_v11 = vsel %vm4911_vm6, %v937_v9, 0.0  ;;  %vm4913_vm4 = vnez %v4794_v36  ;;  %vm4914_vm6 = vnez %v4798_v38 }
 0x160   : > { %v870_v3 = vsel %vm3876_vm15, %v862_v42, 0.0  ;;  %v1421_v4 = vsel %vm3850_vm7, %v862_v42, 0.0  ;;  %949 = vst [vmem:[#allocation2 + $0xa0] sm:$0xf] %v945_v11 }
 0x161   : > { %874 = vst [vmem:[#allocation2 + $0x98] sm:$0xf] %v870_v3  ;;  %1425 = vst [vmem:[#allocation2 + $0x1b0] sm:$0xf] %v1421_v4  ;;  %v933_v17 = vpop.permute.xlu1 %932 }
 0x162   : > { %v931_v7 = vpop.permute.xlu0 %930 }
 0x163   : > { %v938_v15 = vsel %vm4727_vm1, %v929_v10, %v931_v7  ;;  %v939_v25 = vsel %vm4727_vm1, %v931_v7, %v933_v17 }
 0x164   : > { %v946_v21 = vsel %vm4912_vm12, %v938_v15, 0.0  ;;  %v947_v52 = vsel %vm4913_vm4, %v939_v25, 0.0  ;;  %v1445_v25 = vld [vmem:[#allocation2 + $0x88] sm:$0xff] }
 0x165   : > { %950 = vst [vmem:[#allocation2 + $0xa8] sm:$0xf] %v946_v21  ;;  %951 = vst [vmem:[#allocation2 + $0xb0] sm:$0xf] %v947_v52  ;;  %v1116_v20 = vpop.permute.xlu1 %1115 }
 0x166   : > { %v935_v51 = vpop.permute.xlu0 %934 }
 0x167   : > { %v940_v16 = vsel %vm4727_vm1, %v933_v17, %v935_v51  ;;  %v1448_v4 = vld [vmem:[#allocation2 + $0xa0] sm:$0xff]  ;;  %vm4739_vm1 = vcmask 449536  }
 0x168   : > { %v948_v9 = vsel %vm4914_vm6, %v940_v16, 0.0  ;;  %v1444_v16 = vld [vmem:[#allocation2 + $0x80] sm:$0xff] }
 0x169   : > { %952 = vst [vmem:[#allocation2 + $0xb8] sm:$0xf] %v948_v9  ;;  %v1120_v10 = vpop.permute.xlu1 %1119  ;;  %v2872_v28 = vpack.c.bf16 %v1448_v4, %v1444_v16 }
 0x16a   : > { %v1118_v42 = vpop.permute.xlu0 %1117 }
 0x16b   : > { %v1125_v11 = vsel %vm4738_vm2, %v1116_v20, %v1118_v42  ;;  %v1126_v3 = vsel %vm4738_vm2, %v1118_v42, %v1120_v10 }
 0x16c   : > { %v1133_v7 = vsel %vm3725_vm11, %v1125_v11, 0.0  ;;  %v1134_v15 = vsel %vm3741_vm13, %v1126_v3, 0.0  ;;  %v1449_v17 = vld [vmem:[#allocation2 + $0xa8] sm:$0xff]  ;;  %v1450_v57 = vld [vmem:[#allocation2 + $0xb0] sm:$0xff]  ;;  %v1447_v3 = vld [vmem:[#allocation2 + $0x98] sm:$0xff]  ;;  %vm4915_vm13 = vcmp.ge.s32.totalorder %v3159_v27, 0 }
 0x16d   : > { %v1141_v21 = vrot.slane %v1133_v7, 4  ;;  %v1142_v52 = vrot.slane %v1134_v15, 4  ;;  %v2870_v51 = vpack.c.bf16 %v1449_v17, %v1445_v25  ;;  %v1038_v9 = vpop.permute.xlu1 %1037  ;;  %v1446_v25 = vld [vmem:[#allocation2 + $0x90] sm:$0xff]  ;;  %vm4922_vm11 = vcmp.lt.s32.totalorder %v3523_v44, 8 }
 0x16e   : > { %v1122_v59 = vpop.permute.xlu0 %1121  ;;  %v2902_v1 = vpack.c.bf16 %v1450_v57, %v1446_v25 }
 0x16f   : > { %1149 = vst [vmem:[#allocation2 + $0xe8] sm:$0xf0] %v1141_v21  ;;  %1150 = vst [vmem:[#allocation2 + $0xf0] sm:$0xf0] %v1142_v52  ;;  %v1127_v42 = vsel %vm4738_vm2, %v1120_v10, %v1122_v59  ;;  %2871 = vmatprep.subr.bf16.mxu0 %v2870_v51 }
 0x170   : > { %v1135_v11 = vsel %vm3773_vm14, %v1127_v42, 0.0  ;;  %2873 = vmatpush1.bf16.msra.mxu0 %v2872_v28  ;;  %v1451_v55 = vld [vmem:[#allocation2 + $0xb8] sm:$0xff]  ;;  %vm4746_vm14 = vcmask 457728  }
 0x171   : > { %v1143_v7 = vrot.slane %v1135_v11, 4  ;;  %v2900_v15 = vpack.c.bf16 %v1451_v55, %v1447_v3  ;;  %v1042_v17 = vpop.permute.xlu1 %1041 }
 0x172   : > { %v1040_v60 = vpop.permute.xlu0 %1039 }
 0x173   : > { %1151 = vst [vmem:[#allocation2 + $0xf8] sm:$0xf0] %v1143_v7  ;;  %v1047_v4 = vsel %vm4739_vm1, %v1038_v9, %v1040_v60  ;;  %v1048_v59 = vsel %vm4739_vm1, %v1040_v60, %v1042_v17  ;;  %2901 = vmatprep.subr.bf16.mxu1 %v2900_v15 }
 0x174   : > { %v1063_v10 = vrot.slane %v1047_v4, 4  ;;  %v1064_v21 = vrot.slane %v1048_v59, 4  ;;  %2903 = vmatpush1.bf16.msra.mxu1 %v2902_v1 }
 0x175   : > { %v1114_v28 = vpop.permute.xlu1 %1113 }
 0x176   : > { %1071 = vst [vmem:[#allocation2 + $0xc8] sm:$0xf0] %v1063_v10  ;;  %1072 = vst [vmem:[#allocation2 + $0xd0] sm:$0xf0] %v1064_v21  ;;  %v1044_v52 = vpop.permute.xlu0 %1043  ;;  %v1124_v51 = vsel %vm4738_vm2, %v1114_v28, %v1116_v20  ;;  %vm4916_vm2 = vcmp.ge.s32.totalorder %v3174_v31, 0 }
 0x177   : > { %v1049_v55 = vsel %vm4739_vm1, %v1042_v17, %v1044_v52  ;;  %v1132_v57 = vsel %vm3751_vm0, %v1124_v51, 0.0  ;;  %vm4917_vm1 = vcmp.ge.s32.totalorder %v3185_v34, 0  ;;  %vm4918_vm0 = vcmask 449536  }
 0x178   : > { %v1065_v16 = vrot.slane %v1049_v55, 4  ;;  %v1140_v42 = vrot.slane %v1132_v57, 4 }
 0x179   : > { %v1009_v60 = vpop.permute.xlu1 %1008 }
 0x17a   : > { %1073 = vst [vmem:[#allocation2 + $0xd8] sm:$0xf0] %v1065_v16  ;;  %v1007_v11 = vpop.permute.xlu0 %1006  ;;  %1148 = vst [vmem:[#allocation2 + $0xe0] sm:$0xf0] %v1140_v42 }
 0x17b   : > { %v1016_v1 = vsel %vm4746_vm14, %v1007_v11, %v1009_v60 }
 0x17c   : > { %v1024_v3 = vsel %vm4915_vm13, %v1016_v1, 0.0  ;;  %vm4745_vm13 = vcmask 441344  }
 0x17d   : > { %1028 = vst [vmem:[#allocation2 + $0xc8] sm:$0xf] %v1024_v3  ;;  %v1013_v7 = vpop.permute.xlu1 %1012 }
 0x17e   : > { %v1011_v20 = vpop.permute.xlu0 %1010 }
 0x17f   : > { %v1017_v15 = vsel %vm4746_vm14, %v1009_v60, %v1011_v20  ;;  %v1018_v25 = vsel %vm4746_vm14, %v1011_v20, %v1013_v7 }
 0x180   : > { %v1025_v17 = vsel %vm4916_vm2, %v1017_v15, 0.0  ;;  %v1026_v4 = vsel %vm4917_vm1, %v1018_v25, 0.0  ;;  %vm4919_vm2 = vcmp.lt.s32.totalorder %v3478_v29, 8  ;;  %vm4920_vm1 = vcmp.lt.s32.totalorder %v3507_v58, 8 }
 0x181   : > { %1029 = vst [vmem:[#allocation2 + $0xd0] sm:$0xf] %v1025_v17  ;;  %1030 = vst [vmem:[#allocation2 + $0xd8] sm:$0xf] %v1026_v4  ;;  %v1081_v59 = vpop.permute.xlu1 %1080 }
 0x182   : > { %v1036_v10 = vpop.permute.xlu0 %1035 }
 0x183   : > { %v1046_v21 = vsel %vm4918_vm0, %v1036_v10, %v1038_v9  ;;  %vm4921_vm0 = vcmp.ge.s32.totalorder %v3150_v23, 0 }
 0x184   : > { %v1062_v28 = vrot.slane %v1046_v21, 4  ;;  %v1453_v10 = vld [vmem:[#allocation2 + $0xc8] sm:$0xff] }
 0x185   : > { %v1085_v52 = vpop.permute.xlu1 %1084 }
 0x186   : > { %1070 = vst [vmem:[#allocation2 + $0xc0] sm:$0xf0] %v1062_v28  ;;  %v1083_v51 = vpop.permute.xlu0 %1082 }
 0x187   : > { %v1090_v55 = vsel %vm4745_vm13, %v1081_v59, %v1083_v51  ;;  %v1091_v57 = vsel %vm4745_vm13, %v1083_v51, %v1085_v52 }
 0x188   : > { %v1098_v16 = vsel %vm4919_vm2, %v1090_v55, 0.0  ;;  %v1099_v42 = vsel %vm4920_vm1, %v1091_v57, 0.0  ;;  %vm4923_vm2 = vcmp.lt.s32.totalorder %v3474_v63, 8  ;;  %vm4744_vm1 = vcmask 375808  }
 0x189   : > { %1102 = vst [vmem:[#allocation2 + $0xe8] sm:$0xf] %v1098_v16  ;;  %1103 = vst [vmem:[#allocation2 + $0xf0] sm:$0xf] %v1099_v42  ;;  %v1005_v60 = vpop.permute.xlu1 %1004  ;;  %v1455_v42 = vld [vmem:[#allocation2 + $0xd8] sm:$0xff] }
 0x18a   : > { %v1087_v1 = vpop.permute.xlu0 %1086  ;;  %v1015_v9 = vsel %vm4746_vm14, %v1005_v60, %v1007_v11 }
 0x18b   : > { %v1092_v3 = vsel %vm4745_vm13, %v1085_v52, %v1087_v1  ;;  %v1023_v7 = vsel %vm4921_vm0, %v1015_v9, 0.0  ;;  %vm4925_vm0 = vnez %v4802_v43 }
 0x18c   : > { %v1100_v20 = vsel %vm4922_vm11, %v1092_v3, 0.0  ;;  %1027 = vst [vmem:[#allocation2 + $0xc0] sm:$0xf] %v1023_v7  ;;  %v1454_v7 = vld [vmem:[#allocation2 + $0xd0] sm:$0xff]  ;;  %vm4924_vm11 = vcmask 1039360  }
 0x18d   : > { %1104 = vst [vmem:[#allocation2 + $0xf8] sm:$0xf] %v1100_v20  ;;  %v1190_v15 = vpop.permute.xlu1 %1189 }
 0x18e   : > { %v1079_v25 = vpop.permute.xlu0 %1078 }
 0x18f   : > { %v1089_v17 = vsel %vm4745_vm13, %v1079_v25, %v1081_v59  ;;  %vm4928_vm13 = vcmp.lt.s32.totalorder %v3176_v32, 8 }
 0x190   : > { %v1097_v4 = vsel %vm4923_vm2, %v1089_v17, 0.0  ;;  %v1457_v11 = vld [vmem:[#allocation2 + $0xe8] sm:$0xff]  ;;  %v1458_v57 = vld [vmem:[#allocation2 + $0xf0] sm:$0xff]  ;;  %vm4749_vm2 = vcmask 384000  }
 0x191   : > { %1101 = vst [vmem:[#allocation2 + $0xe0] sm:$0xf] %v1097_v4  ;;  %v2874_v21 = vpack.c.bf16 %v1457_v11, %v1453_v10  ;;  %v1194_v28 = vpop.permute.xlu1 %1193  ;;  %v2906_v17 = vpack.c.bf16 %v1458_v57, %v1454_v7 }
 0x192   : > { %v1192_v52 = vpop.permute.xlu0 %1191 }
 0x193   : > { %v1199_v51 = vsel %vm4744_vm1, %v1190_v15, %v1192_v52  ;;  %v1200_v55 = vsel %vm4744_vm1, %v1192_v52, %v1194_v28  ;;  %2875 = vmatprep.subr.bf16.mxu0 %v2874_v21  ;;  %v1452_v52 = vld [vmem:[#allocation2 + $0xc0] sm:$0xff] }
 0x194   : > { %v1207_v16 = vsel %vm3838_vm10, %v1199_v51, 0.0  ;;  %v1208_v59 = vsel %vm3850_vm7, %v1200_v55, 0.0  ;;  %v1459_v60 = vld [vmem:[#allocation2 + $0xf8] sm:$0xff]  ;;  %vm4935_vm7 = vcmask 965632  }
 0x195   : > { %v1215_v1 = vrot.slane %v1207_v16, 4  ;;  %v1216_v9 = vrot.slane %v1208_v59, 4  ;;  %v2904_v3 = vpack.c.bf16 %v1459_v60, %v1455_v42  ;;  %v3947_v20 = vpop.permute.xlu1 %1247 }
 0x196   : > { %v1196_v25 = vpop.permute.xlu0 %1195  ;;  %v1249_v4 = vsel %vm4924_vm11, %v3455_v26, %v3947_v20  ;;  %vm4926_vm11 = vcmp.lt.s32.totalorder %v3606_v56, 8 }
 0x197   : > { %1223 = vst [vmem:[#allocation2 + $0x108] sm:$0xf0] %v1215_v1  ;;  %1224 = vst [vmem:[#allocation2 + $0x110] sm:$0xf0] %v1216_v9  ;;  %v1201_v10 = vsel %vm4744_vm1, %v1194_v28, %v1196_v25  ;;  %2905 = vmatprep.subr.bf16.mxu1 %v2904_v3  ;;  %v1254_v11 = vsel %vm4925_vm0, %v1249_v4, 0.0 }
 0x198   : > { %v1209_v21 = vsel %vm3876_vm15, %v1201_v10, 0.0  ;;  %2907 = vmatpush1.bf16.msra.mxu1 %v2906_v17  ;;  %v1456_v51 = vld [vmem:[#allocation2 + $0xe0] sm:$0xff]  ;;  %v1262_v55 = vrot.slane %v1254_v11, 4  ;;  %vm4931_vm15 = vcmp.ge.s32.totalorder %v3185_v34, 0 }
 0x199   : > { %v1217_v57 = vrot.slane %v1209_v21, 4  ;;  %v2876_v16 = vpack.c.bf16 %v1456_v51, %v1452_v52  ;;  %v1159_v59 = vpop.permute.xlu1 %1158  ;;  %v5018_v51 = vld [vmem:[#allocation11_spill] sm:$0xff] }
 0x19a   : > { %v1188_v42 = vpop.permute.xlu0 %1187  ;;  %1270 = vst [vmem:[#allocation2 + $0x138] sm:$0xf0] %v1262_v55 }
 0x19b   : > { %1225 = vst [vmem:[#allocation2 + $0x118] sm:$0xf0] %v1217_v57  ;;  %v1198_v26 = vsel %vm4744_vm1, %v1188_v42, %v1190_v15  ;;  %2877 = vmatpush1.bf16.msra.mxu0 %v2876_v16  ;;  %vm4927_vm1 = vcmp.lt.s32.totalorder %v3523_v44, 8 }
 0x19c   : > { %v1206_v28 = vsel %vm3858_vm3, %v1198_v26, 0.0  ;;  %vm3976_vm14 = vmand %vm4928_vm13, %vm4927_vm1  ;;  %vm4944_vm3 = vcmp.ge.s32.totalorder %v3185_v34, 0 }
 0x19d   : > { %v1214_v60 = vrot.slane %v1206_v28, 4  ;;  %v1163_v1 = vpop.permute.xlu1 %1162 }
 0x19e   : > { %v1161_v9 = vpop.permute.xlu0 %1160 }
 0x19f   : > { %1222 = vst [vmem:[#allocation2 + $0x100] sm:$0xf0] %v1214_v60  ;;  %v1168_v3 = vsel %vm4749_vm2, %v1159_v59, %v1161_v9  ;;  %v1169_v7 = vsel %vm4749_vm2, %v1161_v9, %v1163_v1  ;;  %v1465_v60 = vld [vmem:[#allocation2 + $0x128] sm:$0xff] }
 0x1a0   : > { %v1176_v25 = vsel %vm3665_vm8, %v1168_v3, 0.0  ;;  %v1177_v17 = vsel %vm4896_vm5, %v1169_v7, 0.0 }
 0x1a1   : > { %1180 = vst [vmem:[#allocation2 + $0x108] sm:$0xf] %v1176_v25  ;;  %1181 = vst [vmem:[#allocation2 + $0x110] sm:$0xf] %v1177_v17  ;;  %v1157_v15 = vpop.permute.xlu1 %1156 }
 0x1a2   : > { %v1167_v4 = vsel %vm4749_vm2, %v1157_v15, %v1159_v59  ;;  %v1165_v10 = vpop.permute.xlu0 %1164 }
 0x1a3   : > { %v1175_v11 = vsel %vm4926_vm11, %v1167_v4, 0.0  ;;  %v1170_v21 = vsel %vm4749_vm2, %v1163_v1, %v1165_v10  ;;  %vm4932_vm11 = vmmov %vm4928_vm13  ;;  %vm4936_vm13 = vcmask 982016   ;;  %v1464_v4 = vld [vmem:[#allocation2 + $0x120] sm:$0xff]  ;;  %v1473_v10 = vld [vmem:[#allocation2 + $0x168] sm:$0xff] }
 0x1a4   : > { %1179 = vst [vmem:[#allocation2 + $0x100] sm:$0xf] %v1175_v11  ;;  %v1178_v52 = vsel %vm3711_vm9, %v1170_v21, 0.0  ;;  %vm3986_vm2 = vmand %vm4932_vm11, %vm4931_vm15 }
 0x1a5   : > { %1182 = vst [vmem:[#allocation2 + $0x118] sm:$0xf] %v1178_v52  ;;  %v4945_v52 = vmov 0 }
 0x1a8   : > { %v1461_v28 = vld [vmem:[#allocation2 + $0x108] sm:$0xff] }
 0x1a9   : > { %v2878_v3 = vpack.c.bf16 %v1465_v60, %v1461_v28  ;;  %v1467_v60 = vld [vmem:[#allocation2 + $0x138] sm:$0xff] }
 0x1aa   : > { %v3980_v55 = vpop.permute.xlu1 %1339  ;;  %v3993_v59 = vpop.permute.xlu0 %1295 }
 0x1ab   : > { %v1341_v16 = vsel %vm4935_vm7, %v3655_v61, %v3980_v55  ;;  %v1297_v26 = vsel %vm4936_vm13, %v3500_v48, %v3993_v59  ;;  %vm4937_vm7 = vmmov %vm4932_vm11  ;;  %v4938_v61 = vmov 0  ;;  %vm4942_vm13 = vcmask 973824   ;;  %2879 = vmatprep.subr.bf16.mxu0 %v2878_v3 }
 0x1ac   : > { %v1346_v42 = vsel %vm3976_vm14, %v1341_v16, 0.0  ;;  %v1302_v9 = vsel %vm3986_vm2, %v1297_v26, 0.0  ;;  %vm4006_vm15 = vmand %vm4937_vm7, %vm3711_vm9  ;;  %v1462_v16 = vld [vmem:[#allocation2 + $0x110] sm:$0xff]  ;;  %v1463_v28 = vld [vmem:[#allocation2 + $0x118] sm:$0xff] }
 0x1ad   : > { %v1354_v1 = vrot.slane %v1346_v42, 4  ;;  %v4939_v61 = vsel %vm4006_vm15, 4294967295, %v4938_v61  ;;  %v1310_v7 = vrot.slane %v1302_v9, 4  ;;  %vm4016_vm11 = vmand %vm4925_vm0, %vm4927_vm1  ;;  %vm4943_vm1 = vcmask 1031168  }
 0x1ae   : > { %v4010_v25 = vpop.permute.xlu1 %1323  ;;  %v4023_v15 = vpop.permute.xlu0 %1275  ;;  %vm4034_vm10 = vmand %vm4006_vm15, %vm4944_vm3  ;;  %v2908_v9 = vpack.c.bf16 %v1467_v60, %v1463_v28  ;;  %vm4759_vm3 = vcmask 1043456   ;;  %v1477_v60 = vld [vmem:[#allocation2 + $0x188] sm:$0xff] }
 0x1af   : > { %1362 = vst [vmem:[#allocation2 + $0x178] sm:$0xf0] %v1354_v1  ;;  %v1325_v17 = vsel %vm4942_vm13, %v3787_v22, %v4010_v25  ;;  %1318 = vst [vmem:[#allocation2 + $0x158] sm:$0xf0] %v1310_v7  ;;  %v1277_v21 = vsel %vm4943_vm1, %v3565_v8, %v4023_v15  ;;  %v4946_v52 = vsel %vm4034_vm10, 4294967295, %v4945_v52  ;;  %v1460_v22 = vld [vmem:[#allocation2 + $0x100] sm:$0xff] }
 0x1b0   : > { %v1330_v11 = vsel %vm4937_vm7, %v1325_v17, 0.0  ;;  %v1282_v42 = vsel %vm4016_vm11, %v1277_v21, 0.0  ;;  %v2880_v26 = vpack.c.bf16 %v1464_v4, %v1460_v22  ;;  %v1469_v1 = vld [vmem:[#allocation2 + $0x148] sm:$0xff]  ;;  %v1466_v7 = vld [vmem:[#allocation2 + $0x130] sm:$0xff]  ;;  %v1472_v17 = vld [vmem:[#allocation2 + $0x160] sm:$0xff]  ;;  %vm4947_vm13 = vcmask 916480   ;;  %2909 = vmatprep.subr.bf16.mxu1 %v2908_v9 }
 0x1b1   : > { %1334 = vst [vmem:[#allocation2 + $0x178] sm:$0xf] %v1330_v11  ;;  %1286 = vst [vmem:[#allocation2 + $0x158] sm:$0xf] %v1282_v42  ;;  %v2882_v3 = vpack.c.bf16 %v1473_v10, %v1469_v1  ;;  %v2910_v21 = vpack.c.bf16 %v1466_v7, %v1462_v16  ;;  %v1481_v4 = vld [vmem:[#allocation2 + $0x1a8] sm:$0xf] }
 0x1b2   : > { %v4040_v8 = vpop.permute.xlu1 %1371  ;;  %v4045_v11 = vpop.permute.xlu0 %1387  ;;  %2881 = vmatpush1.bf16.msra.mxu0 %v2880_v26  ;;  %vm4948_vm7 = vcmask 908288   ;;  %v1468_v10 = vld [vmem:[#allocation2 + $0x140] sm:$0xff]  ;;  %vm3045_vm1 = vmmov 1   ;;  %v4949_v16 = vmov 0  ;;  %v2886_v26 = vpack.c.bf16 %v1481_v4, %v1477_v60  ;;  %v1482_v60 = vld [vmem:[#allocation2 + $0x1b0] sm:$0xf] }
 0x1b3   : > { %v1373_v5 = vsel %vm4947_vm13, %v3777_v2, %v4040_v8  ;;  %v1389_v42 = vsel %vm4948_vm7, %v3715_v50, %v4045_v11  ;;  %2883 = vmatprep.subr.bf16.mxu0 %v2882_v3  ;;  %2911 = vmatpush1.bf16.msra.mxu1 %v2910_v21  ;;  %v2884_v2 = vpack.c.bf16 %v1472_v17, %v1468_v10  ;;  %vm4055_vm13 = vmpackc.low %vm4759_vm3, %vm3045_vm1  ;;  %v4953_v50 = vmov 0  ;;  %v1480_v1 = vld [vmem:[#allocation2 + $0x1a0] sm:$0xf]  ;;  %v1474_v21 = vld [vmem:[#allocation2 + $0x170] sm:$0xff] }
 0x1b4   : > { %v1378_v22 = vsel %vm4034_vm10, %v1373_v5, 0.0  ;;  %v1394_v28 = vsel %vm4006_vm15, %v1389_v42, 0.0  ;;  %v4950_v16 = vsel %vm4055_vm13, 4294967295, %v4949_v16  ;;  %vm4952_vm10 = vcmp.lt.s32.totalorder %v3523_v44, 8  ;;  %v1476_v7 = vld [vmem:[#allocation2 + $0x180] sm:$0xff] }
 0x1b5   : > { %1382 = vst [vmem:[#allocation2 + $0x198] sm:$0xf] %v1378_v22  ;;  %4951 = vst [vmem:[#allocation20_spill] sm:$0xff] %v4950_v16  ;;  %v1402_v5 = vrot.slane %v1394_v28, 4  ;;  %vm4957_vm1 = vcmask 900096   ;;  %v2889_v42 = vpack.c.bf16 %v1480_v1, %v1476_v7  ;;  %v1470_v28 = vld [vmem:[#allocation2 + $0x150] sm:$0xff] }
 0x1b6   : > { %vm4063_vm7 = vmand %vm4006_vm15, %vm4952_vm10  ;;  %v4067_v9 = vpop.permute.xlu0 %1415  ;;  %2885 = vmatpush1.bf16.msra.mxu0 %v2884_v2  ;;  %v2914_v2 = vpack.c.bf16 %v1474_v21, %v1470_v28  ;;  %vm4760_vm10 = vcmask 883712   ;;  %vm4966_vm15 = vnez %v4804_v45 }
 0x1b7   : > { %v4954_v50 = vsel %vm4063_vm7, 4294967295, %v4953_v50  ;;  %4956 = vst [vmem:[#allocation22_spill] sm:$0xff] %v4067_v9  ;;  %1410 = vst [vmem:[#allocation2 + $0x198] sm:$0xf0] %v1402_v5  ;;  %v1417_v3 = vsel %vm4957_vm1, %v3880_v14, %v4067_v9  ;;  %2888 = vmatprep.subr.msk.bf16.mxu0 %vm4055_vm13, %v2886_v26  ;;  %v1427_v14 = vld [vmem:[%s4652_s1] sm:$0xf] }
 0x1b8   : > { %4955 = vst [vmem:[#allocation21_spill] sm:$0xff] %v4954_v50  ;;  %v1475_v17 = vld [vmem:[#allocation2 + $0x178] sm:$0xff]  ;;  %v1422_v22 = vsel %vm4063_vm7, %v1417_v3, 0.0  ;;  %v1478_v3 = vld [vmem:[#allocation2 + $0x190] sm:$0xff]  ;;  %vm4958_vm1 = vcmask 596992  }
 0x1b9   : > { %v1471_v4 = vld [vmem:[#allocation2 + $0x158] sm:$0xff]  ;;  %1426 = vst [vmem:[#allocation2 + $0x1b8] sm:$0xf] %v1422_v22  ;;  %v2919_v7 = vpack.c.bf16 %v1482_v60, %v1478_v3  ;;  %vm4959_vm3 = vmmov %vm4958_vm1 }
 0x1ba   : > { %v2912_v10 = vpack.c.bf16 %v1475_v17, %v1471_v4  ;;  %2891 = vmatpush1.bf16.msk.msra.mxu0 %vm4055_vm13, %v2889_v42  ;;  %vm4964_vm7 = vmmov %vm4959_vm3 }
 0x1bc   : > { %2913 = vmatprep.subr.bf16.mxu1 %v2912_v10 }
 0x1bd   : > { %2915 = vmatpush1.bf16.msra.mxu1 %v2914_v2  ;;  %2842 = vmatmul.mubr.msk.f32.vlgmr.msra.gmra.mrb[0].mxu0 %vm4760_vm10, %v1427_v14 }
 0x1be   : > { %2513 = vmatprep.mubr.f32.mxu0 %v4858_v12  ;;  %v1479_v5 = vld [vmem:[#allocation2 + $0x198] sm:$0xff] }
 0x1c0   : > { %v1483_v26 = vld [vmem:[#allocation2 + $0x1b8] sm:$0xf] }
 0x1c1   : > { %v2916_v1 = vpack.c.bf16 %v1483_v26, %v1479_v5 }
 0x1c3   : > { %2918 = vmatprep.subr.msk.bf16.mxu1 %vm4055_vm13, %v2916_v1 }
 0x1c4   : > { %2921 = vmatpush1.bf16.msk.msra.mxu1 %vm4055_vm13, %v2919_v7  ;;  %v1488_v17 = vpop.permute.xlu1 %1487  ;;  %vm4961_vm13 = vnez %v4796_v37 }
 0x1c7   : > { %2845 = vmatmul.mubr.msk.f32.vlgmr.msra.gmra.mrb[0].mxu1 %vm4760_vm10, %v1427_v14  ;;  %vm4960_vm10 = vnez %v4792_v35 }
 0x1c8   : > { %2584 = vmatprep.mubr.f32.mxu1 %v4858_v12 }
 0x290   : > { %v1573_v21 = vpop.f32.mrb[0].mxu0 }
 0x291   : > { %v1574_v22 = vadd.f32 %v1573_v21, %v1488_v17  ;;  %v1575_v42 = vpop.f32.mrb[1].mxu0 }
 0x292   : > { %v1576_v4 = vadd.f32 %v1575_v42, %v1488_v17 }
 0x293   : > { %v1649_v10 = vmax.f32 %v1574_v22, 0.0 }
 0x294   : > { %v1650_v28 = vmax.f32 %v1576_v4, 0.0 }
 0x295   : > { %1657 = vrot.lane.b32.xlu0 %v1649_v10, %s3025_s30 }
 0x296   : > { %1659 = vrot.lane.b32.xlu1 %v1650_v28, %s3025_s30 }
 0x29a   : > { %v1644_v2 = vpop.f32.mrb[0].mxu1 }
 0x29b   : > { %v1645_v60 = vadd.f32 %v1644_v2, %v1488_v17  ;;  %v1646_v5 = vpop.f32.mrb[1].mxu1 }
 0x29c   : > { %v1647_v26 = vadd.f32 %v1646_v5, %v1488_v17 }
 0x29d   : > { %v1651_v1 = vmax.f32 %v1645_v60, 0.0 }
 0x29e   : > { %v1652_v3 = vmax.f32 %v1647_v26, 0.0 }
 0x29f   : > { %1661 = vrot.lane.b32.xlu0 %v1651_v1, %s3025_s30 }
 0x2a0   : > { %1663 = vrot.lane.b32.xlu1 %v1652_v3, %s3025_s30 }
 0x307   : > { %v1658_v14 = vpop.permute.xlu0 %1657 }
 0x308   : > { %v4094_v7 = vsel %vm4958_vm1, 0.0, %v1658_v14  ;;  %v1660_v21 = vpop.permute.xlu1 %1659  ;;  %vm4962_vm1 = vnez %v4806_v46 }
 0x309   : > { %v4097_v22 = vsel %vm4959_vm3, %v1658_v14, %v1660_v21  ;;  %1749 = vrot.lane.b32.xlu1 %v4094_v7, %s3026_s8  ;;  %1685 = vrot.lane.b32.xlu0 %v4094_v7, %s3027_s9  ;;  %v1675_v17 = vsel %vm4960_vm10, %v4094_v7, 0.0  ;;  %vm4963_vm10 = vmmov %vm4959_vm3 }
 0x30a   : > { %v1676_v42 = vsel %vm4961_vm13, %v4097_v22, 0.0  ;;  %1679 = vst [vmem:[#allocation2] sm:$0xf] %v1675_v17  ;;  %v2235_v4 = vsel %vm4962_vm1, %v4097_v22, 0.0  ;;  %vm4965_vm1 = vnez %v4800_v41 }
 0x30b   : > { %1680 = vst [vmem:[#allocation2 + $0x8] sm:$0xf] %v1676_v42  ;;  %2239 = vst [vmem:[#allocation2 + $0x120] sm:$0xf] %v2235_v4 }
 0x30d   : > { %1813 = vrot.lane.b32.xlu1 %v4094_v7, %s3028_s10  ;;  %1723 = vrot.lane.b32.xlu0 %v4094_v7, %s3029_s11 }
 0x311   : > { %v1662_v10 = vpop.permute.xlu0 %1661  ;;  %1787 = vrot.lane.b32.xlu1 %v4094_v7, %s3030_s12  ;;  %1877 = vrot.lane.b32.xlu0 %v4094_v7, %s3031_s13 }
 0x312   : > { %v4121_v35 = vsel %vm4959_vm3, %v1660_v21, %v1662_v10  ;;  %v1664_v28 = vpop.permute.xlu1 %1663  ;;  %vm4967_vm3 = vnez %v4808_v49 }
 0x313   : > { %v4124_v2 = vsel %vm4963_vm10, %v1662_v10, %v1664_v28  ;;  %v4127_v60 = vsel %vm4964_vm7, %v1664_v28, 0.0  ;;  %v1677_v5 = vsel %vm4965_vm1, %v4121_v35, 0.0  ;;  %v2236_v26 = vsel %vm4961_vm13, %v4121_v35, 0.0 }
 0x314   : > { %v1678_v1 = vsel %vm4966_vm15, %v4124_v2, 0.0  ;;  %1681 = vst [vmem:[#allocation2 + $0x10] sm:$0xf] %v1677_v5  ;;  %2240 = vst [vmem:[#allocation2 + $0x128] sm:$0xf] %v2236_v26  ;;  %v2238_v3 = vsel %vm4967_vm3, %v4127_v60, 0.0  ;;  %vm4977_vm3 = vnez %v4788_v30 }
 0x315   : > { %v2237_v14 = vsel %vm4965_vm1, %v4124_v2, 0.0  ;;  %1941 = vrot.lane.b32.xlu1 %v4094_v7, %s3032_s14  ;;  %1851 = vrot.lane.b32.xlu0 %v4094_v7, %s3033_s15  ;;  %1682 = vst [vmem:[#allocation2 + $0x18] sm:$0xf] %v1678_v1  ;;  %2242 = vst [vmem:[#allocation2 + $0x138] sm:$0xf] %v2238_v3  ;;  %vm4975_vm7 = vcmask 1039360  }
 0x316   : > { %2241 = vst [vmem:[#allocation2 + $0x130] sm:$0xf] %v2237_v14  ;;  %vm4976_vm10 = vmmov %vm4975_vm7  ;;  %vm4978_vm15 = vcmp.ge.s32.totalorder %v3140_v18, 0 }
 0x319   : > { %1915 = vrot.lane.b32.xlu1 %v4094_v7, %s3034_s16  ;;  %2005 = vrot.lane.b32.xlu0 %v4094_v7, %s3035_s17 }
 0x31d   : > { %2133 = vrot.lane.b32.xlu1 %v4094_v7, %s3038_s19  ;;  %1979 = vrot.lane.b32.xlu0 %v4094_v7, %s3036_s18 }
 0x321   : > { %2043 = vrot.lane.b32.xlu1 %v4094_v7, %s3040_s21  ;;  %2069 = vrot.lane.b32.xlu0 %v4094_v7, %s3039_s20 }
 0x325   : > { %2197 = vrot.lane.b32.xlu1 %v4094_v7, %s3042_s23  ;;  %2107 = vrot.lane.b32.xlu0 %v4094_v7, %s3041_s22 }
 0x329   : > { %1687 = vrot.lane.b32.xlu0 %v4097_v22, %s3027_s9  ;;  %1689 = vrot.lane.b32.xlu1 %v4121_v35, %s3027_s9 }
 0x32d   : > { %1691 = vrot.lane.b32.xlu0 %v4124_v2, %s3027_s9  ;;  %1693 = vrot.lane.b32.xlu1 %v4127_v60, %s3027_s9 }
 0x331   : > { %1751 = vrot.lane.b32.xlu0 %v4097_v22, %s3026_s8  ;;  %1753 = vrot.lane.b32.xlu1 %v4121_v35, %s3026_s8 }
 0x335   : > { %1755 = vrot.lane.b32.xlu0 %v4124_v2, %s3026_s8  ;;  %1757 = vrot.lane.b32.xlu1 %v4127_v60, %s3026_s8 }
 0x339   : > { %1725 = vrot.lane.b32.xlu0 %v4097_v22, %s3029_s11  ;;  %1727 = vrot.lane.b32.xlu1 %v4121_v35, %s3029_s11 }
 0x33d   : > { %1729 = vrot.lane.b32.xlu0 %v4124_v2, %s3029_s11  ;;  %1731 = vrot.lane.b32.xlu1 %v4127_v60, %s3029_s11 }
 0x341   : > { %1817 = vrot.lane.b32.xlu0 %v4121_v35, %s3028_s10  ;;  %1815 = vrot.lane.b32.xlu1 %v4097_v22, %s3028_s10 }
 0x345   : > { %1821 = vrot.lane.b32.xlu0 %v4127_v60, %s3028_s10  ;;  %1819 = vrot.lane.b32.xlu1 %v4124_v2, %s3028_s10 }
 0x349   : > { %1881 = vrot.lane.b32.xlu0 %v4121_v35, %s3031_s13  ;;  %1879 = vrot.lane.b32.xlu1 %v4097_v22, %s3031_s13 }
 0x34d   : > { %1885 = vrot.lane.b32.xlu0 %v4127_v60, %s3031_s13  ;;  %1883 = vrot.lane.b32.xlu1 %v4124_v2, %s3031_s13 }
 0x351   : > { %1855 = vrot.lane.b32.xlu0 %v4121_v35, %s3033_s15  ;;  %1853 = vrot.lane.b32.xlu1 %v4097_v22, %s3033_s15 }
 0x355   : > { %1859 = vrot.lane.b32.xlu0 %v4127_v60, %s3033_s15  ;;  %1857 = vrot.lane.b32.xlu1 %v4124_v2, %s3033_s15  ;;  %s5138_s15 = sshll.u32 %s5141_s25, 4 }
 0x359   : > { %1789 = vrot.lane.b32.xlu0 %v4097_v22, %s3030_s12  ;;  %1791 = vrot.lane.b32.xlu1 %v4121_v35, %s3030_s12 }
 0x35d   : > { %1793 = vrot.lane.b32.xlu0 %v4124_v2, %s3030_s12  ;;  %1795 = vrot.lane.b32.xlu1 %v4127_v60, %s3030_s12 }
 0x361   : > { %1945 = vrot.lane.b32.xlu0 %v4121_v35, %s3032_s14  ;;  %1943 = vrot.lane.b32.xlu1 %v4097_v22, %s3032_s14 }
 0x365   : > { %1949 = vrot.lane.b32.xlu0 %v4127_v60, %s3032_s14  ;;  %1947 = vrot.lane.b32.xlu1 %v4124_v2, %s3032_s14 }
 0x369   : > { %2009 = vrot.lane.b32.xlu0 %v4121_v35, %s3035_s17  ;;  %2007 = vrot.lane.b32.xlu1 %v4097_v22, %s3035_s17 }
 0x36d   : > { %2013 = vrot.lane.b32.xlu0 %v4127_v60, %s3035_s17  ;;  %2011 = vrot.lane.b32.xlu1 %v4124_v2, %s3035_s17 }
 0x371   : > { %1919 = vrot.lane.b32.xlu0 %v4121_v35, %s3034_s16  ;;  %1917 = vrot.lane.b32.xlu1 %v4097_v22, %s3034_s16 }
 0x375   : > { %1923 = vrot.lane.b32.xlu0 %v4127_v60, %s3034_s16  ;;  %1921 = vrot.lane.b32.xlu1 %v4124_v2, %s3034_s16 }
 0x379   : > { %1983 = vrot.lane.b32.xlu0 %v4121_v35, %s3036_s18  ;;  %1981 = vrot.lane.b32.xlu1 %v4097_v22, %s3036_s18 }
 0x37b   : > { %v4248_v49 = vpop.permute.xlu1 %1749  ;;  %v1686_v21 = vpop.permute.xlu0 %1685 }
 0x37d   : > { %1987 = vrot.lane.b32.xlu0 %v4127_v60, %s3036_s18  ;;  %1985 = vrot.lane.b32.xlu1 %v4124_v2, %s3036_s18  ;;  %s278_s18 = scalar_lea.vmem %s4658_s7, %s5138_s15 }
 0x37f   : > { %v4254_v17 = vpop.permute.xlu1 %1813  ;;  %v4256_v42 = vpop.permute.xlu0 %1723 }
 0x381   : > { %2137 = vrot.lane.b32.xlu0 %v4121_v35, %s3038_s19  ;;  %2135 = vrot.lane.b32.xlu1 %v4097_v22, %s3038_s19 }
 0x383   : > { %v4262_v4 = vpop.permute.xlu1 %1787  ;;  %v4264_v10 = vpop.permute.xlu0 %1877 }
 0x385   : > { %2141 = vrot.lane.b32.xlu0 %v4127_v60, %s3038_s19  ;;  %2139 = vrot.lane.b32.xlu1 %v4124_v2, %s3038_s19 }
 0x387   : > { %v4270_v28 = vpop.permute.xlu1 %1941  ;;  %v4272_v5 = vpop.permute.xlu0 %1851 }
 0x389   : > { %2073 = vrot.lane.b32.xlu0 %v4121_v35, %s3039_s20  ;;  %2071 = vrot.lane.b32.xlu1 %v4097_v22, %s3039_s20 }
 0x38b   : > { %v4278_v26 = vpop.permute.xlu1 %1915  ;;  %v4280_v1 = vpop.permute.xlu0 %2005 }
 0x38c   : > { %4968 = vst [vmem:[#allocation23_spill] sm:$0xff] %v4278_v26 }
 0x38d   : > { %2077 = vrot.lane.b32.xlu0 %v4127_v60, %s3039_s20  ;;  %2075 = vrot.lane.b32.xlu1 %v4124_v2, %s3039_s20 }
 0x38f   : > { %v4286_v3 = vpop.permute.xlu1 %2133  ;;  %v4288_v14 = vpop.permute.xlu0 %1979 }
 0x390   : > { %4969 = vst [vmem:[#allocation24_spill] sm:$0xff] %v4286_v3  ;;  %4970 = vst [vmem:[#allocation25_spill] sm:$0xff] %v4288_v14 }
 0x391   : > { %2045 = vrot.lane.b32.xlu0 %v4097_v22, %s3040_s21  ;;  %2047 = vrot.lane.b32.xlu1 %v4121_v35, %s3040_s21 }
 0x393   : > { %v4294_v12 = vpop.permute.xlu1 %2043  ;;  %v4296_v16 = vpop.permute.xlu0 %2069 }
 0x394   : > { %4971 = vst [vmem:[#allocation26_spill] sm:$0xff] %v4294_v12  ;;  %4972 = vst [vmem:[#allocation27_spill] sm:$0xff] %v4296_v16 }
 0x395   : > { %2049 = vrot.lane.b32.xlu0 %v4124_v2, %s3040_s21  ;;  %2051 = vrot.lane.b32.xlu1 %v4127_v60, %s3040_s21 }
 0x397   : > { %v4302_v50 = vpop.permute.xlu1 %2197  ;;  %v4304_v3 = vpop.permute.xlu0 %2107 }
 0x398   : > { %4973 = vst [vmem:[#allocation28_spill] sm:$0xff] %v4302_v50  ;;  %4974 = vst [vmem:[#allocation29_spill] sm:$0xff] %v4304_v3 }
 0x399   : > { %2111 = vrot.lane.b32.xlu0 %v4121_v35, %s3041_s22  ;;  %2109 = vrot.lane.b32.xlu1 %v4097_v22, %s3041_s22 }
 0x39b   : > { %v1690_v14 = vpop.permute.xlu1 %1689  ;;  %v1688_v12 = vpop.permute.xlu0 %1687 }
 0x39c   : > { %v1695_v16 = vsel %vm4975_vm7, %v1686_v21, %v1688_v12  ;;  %v1696_v13 = vsel %vm4976_vm10, %v1688_v12, %v1690_v14  ;;  %vm4979_vm10 = vmmov %vm4975_vm7 }
 0x39d   : > { %v1703_v9 = vsel %vm4977_vm3, %v1695_v16, 0.0  ;;  %v1704_v50 = vsel %vm4912_vm12, %v1696_v13, 0.0  ;;  %v2245_v3 = vsel %vm4978_vm15, %v1696_v13, 0.0  ;;  %2115 = vrot.lane.b32.xlu0 %v4127_v60, %s3041_s22  ;;  %2113 = vrot.lane.b32.xlu1 %v4124_v2, %s3041_s22  ;;  %vm4980_vm15 = vmmov %vm4975_vm7 }
 0x39e   : > { %v1711_v53 = vrot.slane %v1703_v9, 4  ;;  %v1712_v24 = vrot.slane %v1704_v50, 4  ;;  %v2253_v21 = vrot.slane %v2245_v3, 4 }
 0x39f   : > { %v1694_v26 = vpop.permute.xlu1 %1693  ;;  %v1692_v12 = vpop.permute.xlu0 %1691 }
 0x3a0   : > { %1719 = vst [vmem:[#allocation2] sm:$0xf0] %v1711_v53  ;;  %1720 = vst [vmem:[#allocation2 + $0x8] sm:$0xf0] %v1712_v24  ;;  %v2243_v30 = vsel %vm4975_vm7, %v1694_v26, %v3947_v20  ;;  %v1697_v16 = vsel %vm4979_vm10, %v1690_v14, %v1692_v12  ;;  %v1698_v13 = vsel %vm4980_vm15, %v1692_v12, %v1694_v26  ;;  %vm4983_vm7 = vnez %v4811_v47 }
 0x3a1   : > { %2261 = vst [vmem:[#allocation2 + $0x120] sm:$0xf0] %v2253_v21  ;;  %v2248_v18 = vsel %vm4925_vm0, %v2243_v30, 0.0  ;;  %v1705_v9 = vsel %vm4913_vm4, %v1697_v16, 0.0  ;;  %v1706_v50 = vsel %vm4914_vm6, %v1698_v13, 0.0  ;;  %v2246_v24 = vsel %vm4912_vm12, %v1697_v16, 0.0  ;;  %2201 = vrot.lane.b32.xlu0 %v4121_v35, %s3042_s23  ;;  %2199 = vrot.lane.b32.xlu1 %v4097_v22, %s3042_s23 }
 0x3a2   : > { %v2256_v53 = vrot.slane %v2248_v18, 4  ;;  %v1713_v20 = vrot.slane %v1705_v9, 4  ;;  %v1714_v26 = vrot.slane %v1706_v50, 4  ;;  %v2247_v43 = vsel %vm4913_vm4, %v1698_v13, 0.0 }
 0x3a3   : > { %v2254_v3 = vrot.slane %v2246_v24, 4  ;;  %v2255_v14 = vrot.slane %v2247_v43, 4  ;;  %v1754_v21 = vpop.permute.xlu1 %1753  ;;  %v1752_v12 = vpop.permute.xlu0 %1751  ;;  %vm4981_vm0 = vcmask 982016   ;;  %vm4984_vm10 = vcmp.ge.s32.totalorder %v3159_v27, 0 }
 0x3a4   : > { %2264 = vst [vmem:[#allocation2 + $0x138] sm:$0xf0] %v2256_v53  ;;  %1721 = vst [vmem:[#allocation2 + $0x10] sm:$0xf0] %v1713_v20  ;;  %v1759_v30 = vsel %vm4981_vm0, %v4248_v49, %v1752_v12  ;;  %vm4985_vm15 = vcmp.ge.s32.totalorder %v3150_v23, 0  ;;  %vm4990_vm6 = vcmp.ge.s32.totalorder %v3159_v27, 0 }
 0x3a5   : > { %1722 = vst [vmem:[#allocation2 + $0x18] sm:$0xf0] %v1714_v26  ;;  %vm4982_vm3 = vmmov %vm4981_vm0  ;;  %v1767_v18 = vsel %vm4983_vm7, %v1759_v30, 0.0  ;;  %2205 = vrot.lane.b32.xlu0 %v4127_v60, %s3042_s23  ;;  %2203 = vrot.lane.b32.xlu1 %v4124_v2, %s3042_s23  ;;  %vm5010_vm4 = vcmp.lt.s32.totalorder %v3474_v63, 8  ;;  %vm5014_vm12 = vcmp.lt.s32.totalorder %v3523_v44, 8 }
 0x3a6   : > { %v1760_v16 = vsel %vm4982_vm3, %v1752_v12, %v1754_v21  ;;  %2262 = vst [vmem:[#allocation2 + $0x128] sm:$0xf0] %v2254_v3  ;;  %2263 = vst [vmem:[#allocation2 + $0x130] sm:$0xf0] %v2255_v14  ;;  %v1775_v49 = vrot.slane %v1767_v18, 4 }
 0x3a7   : > { %v1768_v13 = vsel %vm4984_vm10, %v1760_v16, 0.0  ;;  %v2277_v9 = vsel %vm4985_vm15, %v1760_v16, 0.0  ;;  %v1758_v53 = vpop.permute.xlu1 %1757  ;;  %v1756_v20 = vpop.permute.xlu0 %1755  ;;  %vm4986_vm3 = vmmov %vm4981_vm0  ;;  %vm4988_vm10 = vcmp.ge.s32.totalorder %v3174_v31, 0  ;;  %vm4989_vm15 = vcmp.ge.s32.totalorder %v3185_v34, 0 }
 0x3a8   : > { %v1776_v50 = vrot.slane %v1768_v13, 4  ;;  %v2285_v24 = vrot.slane %v2277_v9, 4  ;;  %1783 = vst [vmem:[#allocation2 + $0x20] sm:$0xf0] %v1775_v49  ;;  %v2275_v47 = vsel %vm4981_vm0, %v1758_v53, %v3993_v59  ;;  %v1761_v26 = vsel %vm4986_vm3, %v1754_v21, %v1756_v20  ;;  %vm4987_vm7 = vmmov %vm4981_vm0 }
 0x3a9   : > { %v1762_v43 = vsel %vm4987_vm7, %v1756_v20, %v1758_v53  ;;  %v2280_v3 = vsel %vm3986_vm2, %v2275_v47, 0.0  ;;  %v1769_v14 = vsel %vm4988_vm10, %v1761_v26, 0.0  ;;  %v2278_v30 = vsel %vm4990_vm6, %v1761_v26, 0.0  ;;  %2173 = vrot.lane.b32.xlu0 %v4097_v22, %s3043_s27  ;;  %2175 = vrot.lane.b32.xlu1 %v4121_v35, %s3043_s27  ;;  %vm4991_vm2 = vmmov %vm4988_vm10  ;;  %v4994_v35 = vld [vmem:[#allocation7_spill] sm:$0xff] }
 0x3aa   : > { %1784 = vst [vmem:[#allocation2 + $0x28] sm:$0xf0] %v1776_v50  ;;  %2293 = vst [vmem:[#allocation2 + $0x140] sm:$0xf0] %v2285_v24  ;;  %v1770_v12 = vsel %vm4989_vm15, %v1762_v43, 0.0  ;;  %v2288_v59 = vrot.slane %v2280_v3, 4  ;;  %vm4995_vm3 = vnez %v4994_v35  ;;  %vm4996_vm7 = vnez %v4823_v54 }
 0x3ab   : > { %v1777_v21 = vrot.slane %v1769_v14, 4  ;;  %v1778_v16 = vrot.slane %v1770_v12, 4  ;;  %v2279_v57 = vsel %vm4991_vm2, %v1762_v43, 0.0  ;;  %v2286_v18 = vrot.slane %v2278_v30, 4  ;;  %v1728_v9 = vpop.permute.xlu1 %1727  ;;  %v1726_v49 = vpop.permute.xlu0 %1725  ;;  %v5003_v30 = vld [vmem:[#allocation10_spill] sm:$0xff] }
 0x3ac   : > { %v2287_v13 = vrot.slane %v2279_v57, 4  ;;  %2296 = vst [vmem:[#allocation2 + $0x158] sm:$0xf0] %v2288_v59  ;;  %vm4992_vm6 = vcmask 1031168   ;;  %vm4997_vm10 = vnez %v4826_v39 }
 0x3ad   : > { %1785 = vst [vmem:[#allocation2 + $0x30] sm:$0xf0] %v1777_v21  ;;  %1786 = vst [vmem:[#allocation2 + $0x38] sm:$0xf0] %v1778_v16  ;;  %v1733_v50 = vsel %vm4992_vm6, %v4256_v42, %v1726_v49  ;;  %2177 = vrot.lane.b32.xlu0 %v4124_v2, %s3043_s27  ;;  %2179 = vrot.lane.b32.xlu1 %v4127_v60, %s3043_s27  ;;  %v2428_v42 = vld [vmem:[%s4655_s4] sm:$0xf] }
 0x3ae   : > { %vm4993_vm0 = vmmov %vm4992_vm6  ;;  %2294 = vst [vmem:[#allocation2 + $0x148] sm:$0xf0] %v2286_v18  ;;  %v1741_v24 = vsel %vm4995_vm3, %v1733_v50, 0.0  ;;  %v5001_v60 = vld [vmem:[#allocation9_spill] sm:$0xff]  ;;  %vm5004_vm3 = vnez %v5003_v30  ;;  %v2373_v50 = vld [vmem:[#allocation2 + $0x8] sm:$0xff] }
 0x3af   : > { %v1734_v22 = vsel %vm4993_vm0, %v1726_v49, %v1728_v9  ;;  %2295 = vst [vmem:[#allocation2 + $0x150] sm:$0xf0] %v2287_v13  ;;  %1745 = vst [vmem:[#allocation2 + $0x20] sm:$0xf] %v1741_v24  ;;  %v1732_v47 = vpop.permute.xlu1 %1731  ;;  %v1730_v26 = vpop.permute.xlu0 %1729  ;;  %v5007_v13 = vld [vmem:[#allocation8_spill] sm:$0xff] }
 0x3b0   : > { %v1742_v53 = vsel %vm4996_vm7, %v1734_v22, 0.0  ;;  %v2267_v20 = vsel %vm4997_vm10, %v1734_v22, 0.0  ;;  %vm4998_vm15 = vmmov %vm4993_vm0 }
 0x3b1   : > { %1746 = vst [vmem:[#allocation2 + $0x28] sm:$0xf] %v1742_v53  ;;  %2271 = vst [vmem:[#allocation2 + $0x140] sm:$0xf] %v2267_v20  ;;  %v2265_v43 = vsel %vm4998_vm15, %v1732_v47, %v4023_v15  ;;  %2171 = vrot.lane.b32.xlu0 %v4094_v7, %s3043_s27  ;;  %2431 = vperm.xlu1 %3011, %v2428_v42  }
 0x3b2   : > { %vm4999_vm2 = vmmov %vm4993_vm0  ;;  %v2270_v2 = vsel %vm4016_vm11, %v2265_v43, 0.0  ;;  %vm5005_vm11 = vcmask 965632  }
 0x3b3   : > { %v1735_v3 = vsel %vm4999_vm2, %v1728_v9, %v1730_v26  ;;  %vm5000_vm6 = vmmov %vm4993_vm0  ;;  %vm5002_vm0 = vnez %v5001_v60  ;;  %2274 = vst [vmem:[#allocation2 + $0x158] sm:$0xf] %v2270_v2  ;;  %v1816_v15 = vpop.permute.xlu1 %1815  ;;  %v1818_v16 = vpop.permute.xlu0 %1817  ;;  %vm5008_vm2 = vnez %v5007_v13 }
 0x3b4   : > { %v1736_v14 = vsel %vm5000_vm6, %v1730_v26, %v1732_v47  ;;  %v1743_v12 = vsel %vm5002_vm0, %v1735_v3, 0.0  ;;  %v2268_v21 = vsel %vm4996_vm7, %v1735_v3, 0.0  ;;  %v1823_v57 = vsel %vm5005_vm11, %v4254_v17, %v1816_v15  ;;  %vm5006_vm15 = vmmov %vm5005_vm11  ;;  %v2372_v47 = vld [vmem:[#allocation2] sm:$0xff] }
 0x3b5   : > { %v1744_v59 = vsel %vm5004_vm3, %v1736_v14, 0.0  ;;  %1747 = vst [vmem:[#allocation2 + $0x30] sm:$0xf] %v1743_v12  ;;  %v2269_v48 = vsel %vm5002_vm0, %v1736_v14, 0.0  ;;  %2272 = vst [vmem:[#allocation2 + $0x148] sm:$0xf] %v2268_v21  ;;  %v1824_v18 = vsel %vm5006_vm15, %v1816_v15, %v1818_v16 }
 0x3b6   : > { %1748 = vst [vmem:[#allocation2 + $0x38] sm:$0xf] %v1744_v59  ;;  %2273 = vst [vmem:[#allocation2 + $0x150] sm:$0xf] %v2269_v48  ;;  %v1831_v9 = vsel %vm5008_vm2, %v1823_v57, 0.0  ;;  %vm5009_vm6 = vcmp.lt.s32.totalorder %v3478_v29, 8 }
 0x3b7   : > { %v1832_v7 = vsel %vm5009_vm6, %v1824_v18, 0.0  ;;  %v2309_v49 = vsel %vm5010_vm4, %v1824_v18, 0.0  ;;  %v2376_v35 = vld [vmem:[#allocation2 + $0x20] sm:$0xff]  ;;  %v1839_v24 = vrot.slane %v1831_v9, 4  ;;  %v1820_v17 = vpop.permute.xlu1 %1819  ;;  %v1822_v26 = vpop.permute.xlu0 %1821  ;;  %vm5011_vm15 = vmmov %vm5005_vm11  ;;  %vm5013_vm2 = vcmp.lt.s32.totalorder %v3507_v58, 8  ;;  %v2375_v9 = vld [vmem:[#allocation2 + $0x18] sm:$0xff] }
 0x3b8   : > { %v2377_v22 = vld [vmem:[#allocation2 + $0x28] sm:$0xff]  ;;  %v1840_v53 = vrot.slane %v1832_v7, 4  ;;  %v2317_v20 = vrot.slane %v2309_v49, 4  ;;  %v2924_v43 = vpack.c.bf16 %v2376_v35, %v2372_v47  ;;  %v1825_v3 = vsel %vm5005_vm11, %v1818_v16, %v1820_v17  ;;  %vm5012_vm4 = vmmov %vm5005_vm11  ;;  %v2374_v7 = vld [vmem:[#allocation2 + $0x10] sm:$0xff] }
 0x3b9   : > { %v2922_v42 = vpack.c.bf16 %v2377_v22, %v2373_v50  ;;  %1847 = vst [vmem:[#allocation2 + $0x40] sm:$0xf0] %v1839_v24  ;;  %v1826_v14 = vsel %vm5011_vm15, %v1820_v17, %v1822_v26  ;;  %v2307_v2 = vsel %vm5012_vm4, %v1822_v26, %v3980_v55  ;;  %v1833_v12 = vsel %vm5013_vm2, %v1825_v3, 0.0  ;;  %vm5015_vm3 = vmmov %vm5013_vm2 }
 0x3ba   : > { %1848 = vst [vmem:[#allocation2 + $0x48] sm:$0xf0] %v1840_v53  ;;  %2325 = vst [vmem:[#allocation2 + $0x160] sm:$0xf0] %v2317_v20  ;;  %v2310_v59 = vsel %vm5009_vm6, %v1825_v3, 0.0  ;;  %v1834_v21 = vsel %vm5014_vm12, %v1826_v14, 0.0  ;;  %vm5024_vm6 = vnez %v4939_v61 }
 0x3bb   : > { %2923 = vmatprep.subr.bf16.mxu0 %v2922_v42  ;;  %v2311_v48 = vsel %vm5015_vm3, %v1826_v14, 0.0  ;;  %v1841_v57 = vrot.slane %v1833_v12, 4  ;;  %v2318_v18 = vrot.slane %v2310_v59, 4  ;;  %v1842_v13 = vrot.slane %v1834_v21, 4  ;;  %v1880_v22 = vpop.permute.xlu1 %1879  ;;  %v1882_v35 = vpop.permute.xlu0 %1881 }
 0x3bc   : > { %2925 = vmatpush1.bf16.msra.mxu0 %v2924_v43  ;;  %v2378_v16 = vld [vmem:[#allocation2 + $0x30] sm:$0xff]  ;;  %v2312_v55 = vsel %vm3976_vm14, %v2307_v2, 0.0  ;;  %v2319_v49 = vrot.slane %v2311_v48, 4  ;;  %vm5016_vm12 = vcmask 908288   ;;  %vm5019_vm14 = vnez %v5018_v51 }
 0x3bd   : > { %v2379_v15 = vld [vmem:[#allocation2 + $0x38] sm:$0xff]  ;;  %v2320_v50 = vrot.slane %v2312_v55, 4  ;;  %v2954_v53 = vpack.c.bf16 %v2378_v16, %v2374_v7  ;;  %1849 = vst [vmem:[#allocation2 + $0x50] sm:$0xf0] %v1841_v57  ;;  %2326 = vst [vmem:[#allocation2 + $0x168] sm:$0xf0] %v2318_v18  ;;  %v1887_v20 = vsel %vm5016_vm12, %v4264_v10, %v1880_v22 }
 0x3be   : > { %v2952_v24 = vpack.c.bf16 %v2379_v15, %v2375_v9  ;;  %1850 = vst [vmem:[#allocation2 + $0x58] sm:$0xf0] %v1842_v13  ;;  %vm5017_vm3 = vmmov %vm5016_vm12  ;;  %v1895_v47 = vsel %vm5019_vm14, %v1887_v20, 0.0  ;;  %vm5020_vm11 = vcmp.lt.s32.totalorder %v3606_v56, 8  ;;  %vm5025_vm12 = vcmask 916480   ;;  %v5029_v20 = vld [vmem:[#allocation13_spill] sm:$0xff] }
 0x3bf   : > { %v1888_v42 = vsel %vm5017_vm3, %v1880_v22, %v1882_v35  ;;  %2327 = vst [vmem:[#allocation2 + $0x170] sm:$0xf0] %v2319_v49  ;;  %2328 = vst [vmem:[#allocation2 + $0x178] sm:$0xf0] %v2320_v50  ;;  %v1903_v43 = vrot.slane %v1895_v47, 4  ;;  %v1884_v2 = vpop.permute.xlu1 %1883  ;;  %v1886_v10 = vpop.permute.xlu0 %1885 }
 0x3c0   : > { %v1896_v17 = vsel %vm3665_vm8, %v1888_v42, 0.0  ;;  %v2341_v26 = vsel %vm5020_vm11, %v1888_v42, 0.0  ;;  %2953 = vmatprep.subr.bf16.mxu1 %v2952_v24  ;;  %vm5021_vm15 = vmmov %vm5017_vm3  ;;  %v5027_v24 = vld [vmem:[#allocation12_spill] sm:$0xff]  ;;  %vm5030_vm11 = vnez %v5029_v20 }
 0x3c1   : > { %v1904_v3 = vrot.slane %v1896_v17, 4  ;;  %v2349_v14 = vrot.slane %v2341_v26, 4  ;;  %2955 = vmatpush1.bf16.msra.mxu1 %v2954_v53  ;;  %1911 = vst [vmem:[#allocation2 + $0x60] sm:$0xf0] %v1903_v43  ;;  %v1889_v12 = vsel %vm5021_vm15, %v1882_v35, %v1884_v2  ;;  %vm5022_vm4 = vmmov %vm5017_vm3  ;;  %vm5028_vm14 = vnez %v5027_v24  ;;  %v5035_v43 = vld [vmem:[#allocation14_spill] sm:$0xff] }
 0x3c2   : > { %v1890_v59 = vsel %vm5022_vm4, %v1884_v2, %v1886_v10  ;;  %vm5023_vm2 = vmmov %vm5017_vm3  ;;  %v1897_v48 = vsel %vm4896_vm5, %v1889_v12, 0.0  ;;  %v2342_v15 = vsel %vm3665_vm8, %v1889_v12, 0.0  ;;  %vm5031_vm15 = vnez %v4877_v62 }
 0x3c3   : > { %1912 = vst [vmem:[#allocation2 + $0x68] sm:$0xf0] %v1904_v3  ;;  %2357 = vst [vmem:[#allocation2 + $0x180] sm:$0xf0] %v2349_v14  ;;  %v2339_v21 = vsel %vm5023_vm2, %v1886_v10, %v4045_v11  ;;  %v1898_v16 = vsel %vm3711_vm9, %v1890_v59, 0.0  ;;  %v2343_v57 = vsel %vm4896_vm5, %v1890_v59, 0.0  ;;  %v1854_v49 = vpop.permute.xlu1 %1853  ;;  %v1856_v50 = vpop.permute.xlu0 %1855 }
 0x3c4   : > { %v1905_v18 = vrot.slane %v1897_v48, 4  ;;  %v2350_v13 = vrot.slane %v2342_v15, 4  ;;  %v1906_v55 = vrot.slane %v1898_v16, 4  ;;  %v2344_v9 = vsel %vm5024_vm6, %v2339_v21, 0.0  ;;  %vm5026_vm3 = vmmov %vm5025_vm12  ;;  %v5041_v15 = vld [vmem:[#allocation5_spill] sm:$0xff] }
 0x3c5   : > { %v2351_v7 = vrot.slane %v2343_v57, 4  ;;  %v2352_v11 = vrot.slane %v2344_v9, 4  ;;  %v1861_v22 = vsel %vm5025_vm12, %v4272_v5, %v1854_v49  ;;  %v1862_v35 = vsel %vm5026_vm3, %v1854_v49, %v1856_v50  ;;  %vm5032_vm4 = vmmov %vm5026_vm3 }
 0x3c6   : > { %1913 = vst [vmem:[#allocation2 + $0x70] sm:$0xf0] %v1905_v18  ;;  %2358 = vst [vmem:[#allocation2 + $0x188] sm:$0xf0] %v2350_v13  ;;  %v1869_v53 = vsel %vm5028_vm14, %v1861_v22, 0.0  ;;  %v1870_v61 = vsel %vm5030_vm11, %v1862_v35, 0.0  ;;  %vm5036_vm12 = vnez %v5035_v43  ;;  %vm5038_vm14 = vnez %v4946_v52 }
 0x3c7   : > { %1914 = vst [vmem:[#allocation2 + $0x78] sm:$0xf0] %v1906_v55  ;;  %2359 = vst [vmem:[#allocation2 + $0x190] sm:$0xf0] %v2351_v7  ;;  %v2331_v42 = vsel %vm5031_vm15, %v1862_v35, 0.0  ;;  %v1858_v51 = vpop.permute.xlu1 %1857  ;;  %v1860_v47 = vpop.permute.xlu0 %1859  ;;  %vm5046_vm8 = vcmp.lt.s32.totalorder %v3176_v32, 8 }
 0x3c8   : > { %2360 = vst [vmem:[#allocation2 + $0x198] sm:$0xf0] %v2352_v11  ;;  %1873 = vst [vmem:[#allocation2 + $0x60] sm:$0xf] %v1869_v53  ;;  %v1863_v5 = vsel %vm5032_vm4, %v1856_v50, %v1858_v51  ;;  %vm5039_vm4 = vcmask 973824  }
 0x3c9   : > { %1874 = vst [vmem:[#allocation2 + $0x68] sm:$0xf] %v1870_v61  ;;  %2335 = vst [vmem:[#allocation2 + $0x180] sm:$0xf] %v2331_v42  ;;  %v1871_v3 = vsel %vm5036_vm12, %v1863_v5, 0.0  ;;  %v2332_v14 = vsel %vm5030_vm11, %v1863_v5, 0.0 }
 0x3ca   : > { %vm5033_vm2 = vmmov %vm5026_vm3  ;;  %vm5037_vm3 = vnez %v4882_v19  ;;  %1875 = vst [vmem:[#allocation2 + $0x70] sm:$0xf] %v1871_v3 }
 0x3cb   : > { %v1864_v17 = vsel %vm5033_vm2, %v1858_v51, %v1860_v47  ;;  %vm5034_vm6 = vmmov %vm5033_vm2  ;;  %2336 = vst [vmem:[#allocation2 + $0x188] sm:$0xf] %v2332_v14  ;;  %v1790_v59 = vpop.permute.xlu0 %1789 }
 0x3cc   : > { %v2329_v26 = vsel %vm5034_vm6, %v1860_v47, %v4040_v8  ;;  %v1872_v2 = vsel %vm5037_vm3, %v1864_v17, 0.0  ;;  %v2333_v10 = vsel %vm5036_vm12, %v1864_v17, 0.0  ;;  %v1792_v8 = vpop.permute.xlu1 %1791  ;;  %v1797_v21 = vsel %vm5039_vm4, %v4262_v4, %v1790_v59  ;;  %vm5040_vm2 = vmmov %vm5039_vm4 }
 0x3cd   : > { %1876 = vst [vmem:[#allocation2 + $0x78] sm:$0xf] %v1872_v2  ;;  %v2334_v12 = vsel %vm5038_vm14, %v2329_v26, 0.0  ;;  %2337 = vst [vmem:[#allocation2 + $0x190] sm:$0xf] %v2333_v10  ;;  %v1798_v48 = vsel %vm5040_vm2, %v1790_v59, %v1792_v8  ;;  %vm5042_vm6 = vcmp.ge.s32.totalorder %v5041_v15, 0 }
 0x3ce   : > { %2338 = vst [vmem:[#allocation2 + $0x198] sm:$0xf] %v2334_v12  ;;  %v1805_v16 = vsel %vm5042_vm6, %v1797_v21, 0.0  ;;  %1810 = vst [vmem:[#allocation2 + $0x48] sm:$0xf] %v1798_v48  ;;  %vm5047_vm4 = vcmask 523264  }
 0x3cf   : > { %2303 = vst [vmem:[#allocation2 + $0x160] sm:$0xf] %v1798_v48  ;;  %1809 = vst [vmem:[#allocation2 + $0x40] sm:$0xf] %v1805_v16  ;;  %v1794_v18 = vpop.permute.xlu0 %1793  ;;  %v2384_v53 = vld [vmem:[#allocation2 + $0x60] sm:$0xff]  ;;  %vm5053_vm6 = vcmask 506880  }
 0x3d0   : > { %v1796_v57 = vpop.permute.xlu1 %1795  ;;  %vm5043_vm9 = vmmov %vm5040_vm2  ;;  %v2385_v50 = vld [vmem:[#allocation2 + $0x68] sm:$0xff] }
 0x3d1   : > { %v2297_v52 = vsel %vm5043_vm9, %v1796_v57, %v4010_v25  ;;  %vm5044_vm14 = vmmov %vm5040_vm2  ;;  %vm5049_vm9 = vnez %v4806_v46  ;;  %v2386_v3 = vld [vmem:[#allocation2 + $0x70] sm:$0xff] }
 0x3d2   : > { %v1799_v13 = vsel %vm5044_vm14, %v1792_v8, %v1794_v18  ;;  %vm5045_vm5 = vmmov %vm5040_vm2  ;;  %v2302_v4 = vsel %vm5046_vm8, %v2297_v52, 0.0 }
 0x3d3   : > { %v1800_v55 = vsel %vm5045_vm5, %v1794_v18, %v1796_v57  ;;  %1811 = vst [vmem:[#allocation2 + $0x50] sm:$0xf] %v1799_v13  ;;  %2304 = vst [vmem:[#allocation2 + $0x168] sm:$0xf] %v1799_v13  ;;  %v1946_v7 = vpop.permute.xlu0 %1945 }
 0x3d4   : > { %1812 = vst [vmem:[#allocation2 + $0x58] sm:$0xf] %v1800_v55  ;;  %2305 = vst [vmem:[#allocation2 + $0x170] sm:$0xf] %v1800_v55  ;;  %v1944_v9 = vpop.permute.xlu1 %1943 }
 0x3d5   : > { %2306 = vst [vmem:[#allocation2 + $0x178] sm:$0xf] %v2302_v4  ;;  %v1951_v11 = vsel %vm5047_vm4, %v4270_v28, %v1944_v9  ;;  %vm5048_vm2 = vmmov %vm5047_vm4  ;;  %v2381_v25 = vld [vmem:[#allocation2 + $0x48] sm:$0xff]  ;;  %v2387_v28 = vld [vmem:[#allocation2 + $0x78] sm:$0xff] }
 0x3d6   : > { %v1952_v49 = vsel %vm5048_vm2, %v1944_v9, %v1946_v7  ;;  %v1959_v22 = vsel %vm5049_vm9, %v1951_v11, 0.0  ;;  %v2926_v35 = vpack.c.bf16 %v2385_v50, %v2381_v25  ;;  %v2380_v24 = vld [vmem:[#allocation2 + $0x40] sm:$0xff]  ;;  %vm5050_vm8 = vmmov %vm5048_vm2 }
 0x3d7   : > { %v1960_v32 = vsel %vm4961_vm13, %v1952_v49, 0.0  ;;  %v1967_v61 = vrot.slane %v1959_v22, 4  ;;  %v2928_v51 = vpack.c.bf16 %v2384_v53, %v2380_v24  ;;  %v1950_v5 = vpop.permute.xlu0 %1949  ;;  %vm5051_vm5 = vmmov %vm5048_vm2  ;;  %vm5052_vm13 = vnez %v4804_v45  ;;  %v5058_v49 = vld [vmem:[#allocation23_spill] sm:$0xff]  ;;  %v5065_v24 = vld [vmem:[#allocation18_spill] sm:$0xff] }
 0x3d8   : > { %v1968_v42 = vrot.slane %v1960_v32, 4  ;;  %v1948_v47 = vpop.permute.xlu1 %1947  ;;  %2927 = vmatprep.subr.bf16.mxu0 %v2926_v35  ;;  %vm5054_vm14 = vmmov %vm5053_vm6  ;;  %vm5057_vm2 = vnez %v5003_v30  ;;  %v5061_v22 = vld [vmem:[#allocation15_spill] sm:$0xff]  ;;  %v5063_v35 = vld [vmem:[#allocation16_spill] sm:$0xff] }
 0x3d9   : > { %1975 = vst [vmem:[#allocation2 + $0x80] sm:$0xf0] %v1967_v61  ;;  %v1953_v17 = vsel %vm5050_vm8, %v1946_v7, %v1948_v47  ;;  %v1954_v46 = vsel %vm5051_vm5, %v1948_v47, %v1950_v5  ;;  %2929 = vmatpush1.bf16.msra.mxu0 %v2928_v51  ;;  %vm5062_vm9 = vnez %v5061_v22  ;;  %vm5064_vm8 = vnez %v5063_v35  ;;  %v5069_v47 = vld [vmem:[#allocation22_spill] sm:$0xff] }
 0x3da   : > { %1976 = vst [vmem:[#allocation2 + $0x88] sm:$0xf0] %v1968_v42  ;;  %v2382_v37 = vld [vmem:[#allocation2 + $0x50] sm:$0xff]  ;;  %v1961_v14 = vsel %vm4965_vm1, %v1953_v17, 0.0  ;;  %v1962_v2 = vsel %vm5052_vm13, %v1954_v46, 0.0  ;;  %vm5055_vm1 = vmmov %vm5053_vm6 }
 0x3db   : > { %v2383_v26 = vld [vmem:[#allocation2 + $0x58] sm:$0xff]  ;;  %v2958_v12 = vpack.c.bf16 %v2386_v3, %v2382_v37  ;;  %v1969_v8 = vrot.slane %v1961_v14, 4  ;;  %v1970_v59 = vrot.slane %v1962_v2, 4  ;;  %v2010_v48 = vpop.permute.xlu0 %2009  ;;  %vm5056_vm4 = vmmov %vm5055_vm1  ;;  %v5075_v14 = vld [vmem:[#allocation21_spill] sm:$0xff] }
 0x3dc   : > { %v2956_v10 = vpack.c.bf16 %v2387_v28, %v2383_v26  ;;  %v2008_v21 = vpop.permute.xlu1 %2007  ;;  %v5071_v28 = vld [vmem:[#allocation17_spill] sm:$0xff]  ;;  %v5073_v26 = vld [vmem:[#allocation19_spill] sm:$0xff] }
 0x3dd   : > { %1977 = vst [vmem:[#allocation2 + $0x90] sm:$0xf0] %v1969_v8  ;;  %1978 = vst [vmem:[#allocation2 + $0x98] sm:$0xf0] %v1970_v59  ;;  %v2015_v15 = vsel %vm5053_vm6, %v4280_v1, %v2008_v21  ;;  %v2016_v16 = vsel %vm5054_vm14, %v2008_v21, %v2010_v48  ;;  %vm5072_vm14 = vnez %v5071_v28  ;;  %v5077_v8 = vld [vmem:[#allocation25_spill] sm:$0xff] }
 0x3de   : > { %2957 = vmatprep.subr.bf16.mxu1 %v2956_v10  ;;  %v2023_v41 = vsel %vm4997_vm10, %v2015_v15, 0.0  ;;  %v2024_v45 = vsel %vm4996_vm7, %v2016_v16, 0.0  ;;  %vm5059_vm7 = vcmask 900096  }
 0x3df   : > { %2959 = vmatpush1.bf16.msra.mxu1 %v2958_v12  ;;  %v2031_v57 = vrot.slane %v2023_v41, 4  ;;  %v2032_v18 = vrot.slane %v2024_v45, 4  ;;  %v2014_v13 = vpop.permute.xlu0 %2013  ;;  %vm5060_vm10 = vmmov %vm5059_vm7 }
 0x3e0   : > { %v2012_v52 = vpop.permute.xlu1 %2011  ;;  %vm5067_vm5 = vmmov %vm5059_vm7 }
 0x3e1   : > { %2039 = vst [vmem:[#allocation2 + $0xa0] sm:$0xf0] %v2031_v57  ;;  %2040 = vst [vmem:[#allocation2 + $0xa8] sm:$0xf0] %v2032_v18  ;;  %v2017_v55 = vsel %vm5055_vm1, %v2010_v48, %v2012_v52  ;;  %v2018_v4 = vsel %vm5056_vm4, %v2012_v52, %v2014_v13  ;;  %vm5074_vm1 = vnez %v5073_v26  ;;  %vm5076_vm4 = vnez %v5075_v14  ;;  %v5080_v48 = vld [vmem:[#allocation6_spill] sm:$0xff] }
 0x3e2   : > { %v2025_v1 = vsel %vm5002_vm0, %v2017_v55, 0.0  ;;  %v2026_v39 = vsel %vm5057_vm2, %v2018_v4, 0.0  ;;  %vm5066_vm0 = vnez %v5065_v24  ;;  %vm5068_vm13 = vmmov %vm5067_vm5  ;;  %vm5078_vm2 = vcmask 515072  }
 0x3e3   : > { %v2033_v9 = vrot.slane %v2025_v1, 4  ;;  %v2034_v7 = vrot.slane %v2026_v39, 4  ;;  %v1920_v11 = vpop.permute.xlu0 %1919  ;;  %vm5070_vm6 = vmmov %vm5067_vm5 }
 0x3e4   : > { %v1918_v54 = vpop.permute.xlu1 %1917 }
 0x3e5   : > { %2041 = vst [vmem:[#allocation2 + $0xb0] sm:$0xf0] %v2033_v9  ;;  %2042 = vst [vmem:[#allocation2 + $0xb8] sm:$0xf0] %v2034_v7  ;;  %v1925_v25 = vsel %vm5059_vm7, %v5058_v49, %v1918_v54  ;;  %v1926_v50 = vsel %vm5060_vm10, %v1918_v54, %v1920_v11  ;;  %vm5081_vm10 = vcmp.ge.s32.totalorder %v5080_v48, 0 }
 0x3e6   : > { %v1933_v32 = vsel %vm5062_vm9, %v1925_v25, 0.0  ;;  %v1934_v60 = vsel %vm5064_vm8, %v1926_v50, 0.0  ;;  %v2363_v30 = vsel %vm5066_vm0, %v1926_v50, 0.0  ;;  %vm5079_vm7 = vmmov %vm5078_vm2  ;;  %vm5082_vm9 = vnez %v4790_v33  ;;  %v5087_v33 = vld [vmem:[#allocation24_spill] sm:$0xff] }
 0x3e7   : > { %1937 = vst [vmem:[#allocation2 + $0x80] sm:$0xf] %v1933_v32  ;;  %1938 = vst [vmem:[#allocation2 + $0x88] sm:$0xf] %v1934_v60  ;;  %v1924_v61 = vpop.permute.xlu0 %1923 }
 0x3e8   : > { %2367 = vst [vmem:[#allocation2 + $0x1a0] sm:$0xf] %v2363_v30  ;;  %v1922_v53 = vpop.permute.xlu1 %1921  ;;  %v2361_v5 = vsel %vm5070_vm6, %v1924_v61, %v5069_v47  ;;  %vm5085_vm6 = vnez %v4794_v36 }
 0x3e9   : > { %v1927_v42 = vsel %vm5067_vm5, %v1920_v11, %v1922_v53  ;;  %v1928_v51 = vsel %vm5068_vm13, %v1922_v53, %v1924_v61  ;;  %v2366_v2 = vsel %vm5076_vm4, %v2361_v5, 0.0  ;;  %vm5083_vm5 = vmmov %vm5078_vm2  ;;  %vm5086_vm4 = vnez %v4798_v38 }
 0x3ea   : > { %v1935_v17 = vsel %vm5072_vm14, %v1927_v42, 0.0  ;;  %v2364_v46 = vsel %vm5064_vm8, %v1927_v42, 0.0  ;;  %v1936_v37 = vsel %vm5074_vm1, %v1928_v51, 0.0  ;;  %v2365_v3 = vsel %vm5072_vm14, %v1928_v51, 0.0  ;;  %2370 = vst [vmem:[#allocation2 + $0x1b8] sm:$0xf] %v2366_v2  ;;  %vm5084_vm13 = vmmov %vm5078_vm2 }
 0x3eb   : > { %1939 = vst [vmem:[#allocation2 + $0x90] sm:$0xf] %v1935_v17  ;;  %2368 = vst [vmem:[#allocation2 + $0x1a8] sm:$0xf] %v2364_v46  ;;  %v1984_v12 = vpop.permute.xlu0 %1983  ;;  %v5092_v2 = vld [vmem:[#allocation27_spill] sm:$0xff] }
 0x3ec   : > { %1940 = vst [vmem:[#allocation2 + $0x98] sm:$0xf] %v1936_v37  ;;  %2369 = vst [vmem:[#allocation2 + $0x1b0] sm:$0xf] %v2365_v3  ;;  %v1982_v10 = vpop.permute.xlu1 %1981 }
 0x3ed   : > { %v1989_v59 = vsel %vm5078_vm2, %v5077_v8, %v1982_v10  ;;  %v1990_v21 = vsel %vm5079_vm7, %v1982_v10, %v1984_v12  ;;  %vm5088_vm2 = vcmask 392192  }
 0x3ee   : > { %v1997_v15 = vsel %vm5081_vm10, %v1989_v59, 0.0  ;;  %v1998_v16 = vsel %vm5082_vm9, %v1990_v21, 0.0  ;;  %vm5089_vm7 = vmmov %vm5088_vm2  ;;  %v2389_v9 = vld [vmem:[#allocation2 + $0x88] sm:$0xff]  ;;  %v2388_v11 = vld [vmem:[#allocation2 + $0x80] sm:$0xff] }
 0x3ef   : > { %2001 = vst [vmem:[#allocation2 + $0xa0] sm:$0xf] %v1997_v15  ;;  %2002 = vst [vmem:[#allocation2 + $0xa8] sm:$0xf] %v1998_v16  ;;  %v1988_v45 = vpop.permute.xlu0 %1987 }
 0x3f0   : > { %v1986_v41 = vpop.permute.xlu1 %1985  ;;  %vm5090_vm10 = vmmov %vm5088_vm2 }
 0x3f1   : > { %v1991_v57 = vsel %vm5083_vm5, %v1984_v12, %v1986_v41  ;;  %v1992_v18 = vsel %vm5084_vm13, %v1986_v41, %v1988_v45  ;;  %vm5091_vm9 = vmmov %vm5088_vm2  ;;  %vm5098_vm5 = vcmask 457728  }
 0x3f2   : > { %v1999_v52 = vsel %vm5085_vm6, %v1991_v57, 0.0  ;;  %v2000_v13 = vsel %vm5086_vm4, %v1992_v18, 0.0  ;;  %v2390_v51 = vld [vmem:[#allocation2 + $0x90] sm:$0xff]  ;;  %v5097_v57 = vld [vmem:[#allocation26_spill] sm:$0xff]  ;;  %vm5099_vm13 = vmmov %vm5098_vm5  ;;  %vm5100_vm6 = vcmp.ge.s32.totalorder %v3150_v23, 0  ;;  %vm5101_vm4 = vcmp.ge.s32.totalorder %v3159_v27, 0 }
 0x3f3   : > { %2003 = vst [vmem:[#allocation2 + $0xb0] sm:$0xf] %v1999_v52  ;;  %2004 = vst [vmem:[#allocation2 + $0xb8] sm:$0xf] %v2000_v13  ;;  %v2138_v4 = vpop.permute.xlu0 %2137  ;;  %v2391_v62 = vld [vmem:[#allocation2 + $0x98] sm:$0xff]  ;;  %v5106_v27 = vld [vmem:[#allocation29_spill] sm:$0xff] }
 0x3f4   : > { %v2136_v55 = vpop.permute.xlu1 %2135 }
 0x3f5   : > { %v2143_v1 = vsel %vm5088_vm2, %v5087_v33, %v2136_v55  ;;  %v2144_v39 = vsel %vm5089_vm7, %v2136_v55, %v2138_v4  ;;  %vm5102_vm2 = vmmov %vm5098_vm5 }
 0x3f6   : > { %v2151_v7 = vsel %vm5031_vm15, %v2143_v1, 0.0  ;;  %v2152_v36 = vsel %vm5030_vm11, %v2144_v39, 0.0  ;;  %v2393_v54 = vld [vmem:[#allocation2 + $0xa8] sm:$0xff]  ;;  %v2392_v38 = vld [vmem:[#allocation2 + $0xa0] sm:$0xff]  ;;  %vm5093_vm11 = vcmask 449536   ;;  %vm5103_vm7 = vmmov %vm5102_vm2 }
 0x3f7   : > { %v2159_v49 = vrot.slane %v2151_v7, 4  ;;  %v2160_v25 = vrot.slane %v2152_v36, 4  ;;  %v2930_v50 = vpack.c.bf16 %v2393_v54, %v2389_v9  ;;  %v2932_v22 = vpack.c.bf16 %v2392_v38, %v2388_v11  ;;  %v2142_v60 = vpop.permute.xlu0 %2141  ;;  %vm5094_vm15 = vmmov %vm5093_vm11 }
 0x3f8   : > { %v2140_v32 = vpop.permute.xlu1 %2139 }
 0x3f9   : > { %2167 = vst [vmem:[#allocation2 + $0xe0] sm:$0xf0] %v2159_v49  ;;  %2168 = vst [vmem:[#allocation2 + $0xe8] sm:$0xf0] %v2160_v25  ;;  %v2145_v30 = vsel %vm5090_vm10, %v2138_v4, %v2140_v32  ;;  %v2146_v53 = vsel %vm5091_vm9, %v2140_v32, %v2142_v60  ;;  %2931 = vmatprep.subr.bf16.mxu0 %v2930_v50  ;;  %vm5104_vm10 = vcmp.ge.s32.totalorder %v3174_v31, 0  ;;  %vm5105_vm9 = vcmp.ge.s32.totalorder %v3185_v34, 0 }
 0x3fa   : > { %v2153_v20 = vsel %vm5036_vm12, %v2145_v30, 0.0  ;;  %v2154_v61 = vsel %vm5037_vm3, %v2146_v53, 0.0  ;;  %2933 = vmatpush1.bf16.msra.mxu0 %v2932_v22  ;;  %v2395_v42 = vld [vmem:[#allocation2 + $0xb8] sm:$0xff]  ;;  %v2394_v47 = vld [vmem:[#allocation2 + $0xb0] sm:$0xff]  ;;  %vm5095_vm12 = vmmov %vm5093_vm11 }
 0x3fb   : > { %v2161_v5 = vrot.slane %v2153_v20, 4  ;;  %v2162_v17 = vrot.slane %v2154_v61, 4  ;;  %v2960_v46 = vpack.c.bf16 %v2395_v42, %v2391_v62  ;;  %v2962_v37 = vpack.c.bf16 %v2394_v47, %v2390_v51  ;;  %v2074_v14 = vpop.permute.xlu0 %2073  ;;  %vm5096_vm3 = vmmov %vm5093_vm11 }
 0x3fc   : > { %v2072_v3 = vpop.permute.xlu1 %2071 }
 0x3fd   : > { %2169 = vst [vmem:[#allocation2 + $0xf0] sm:$0xf0] %v2161_v5  ;;  %2170 = vst [vmem:[#allocation2 + $0xf8] sm:$0xf0] %v2162_v17  ;;  %v2079_v10 = vsel %vm5093_vm11, %v5092_v2, %v2072_v3  ;;  %v2080_v43 = vsel %vm5094_vm15, %v2072_v3, %v2074_v14  ;;  %2961 = vmatprep.subr.bf16.mxu1 %v2960_v46  ;;  %vm5107_vm11 = vcmask 441344  }
 0x3fe   : > { %v2095_v19 = vrot.slane %v2079_v10, 4  ;;  %v2096_v12 = vrot.slane %v2080_v43, 4  ;;  %2963 = vmatpush1.bf16.msra.mxu1 %v2962_v37  ;;  %vm5108_vm15 = vmmov %vm5107_vm11 }
 0x3ff   : > { %v2078_v59 = vpop.permute.xlu0 %2077 }
 0x400   : > { %2103 = vst [vmem:[#allocation2 + $0xc0] sm:$0xf0] %v2095_v19  ;;  %2104 = vst [vmem:[#allocation2 + $0xc8] sm:$0xf0] %v2096_v12  ;;  %v2076_v8 = vpop.permute.xlu1 %2075 }
 0x401   : > { %v2081_v21 = vsel %vm5095_vm12, %v2074_v14, %v2076_v8  ;;  %v2082_v48 = vsel %vm5096_vm3, %v2076_v8, %v2078_v59  ;;  %vm5109_vm12 = vcmp.lt.s32.totalorder %v3474_v63, 8  ;;  %vm5110_vm3 = vcmp.lt.s32.totalorder %v3478_v29, 8  ;;  %v5115_v29 = vld [vmem:[#allocation28_spill] sm:$0xff] }
 0x402   : > { %v2097_v15 = vrot.slane %v2081_v21, 4  ;;  %v2098_v16 = vrot.slane %v2082_v48, 4 }
 0x403   : > { %v2046_v45 = vpop.permute.xlu0 %2045 }
 0x404   : > { %2105 = vst [vmem:[#allocation2 + $0xd0] sm:$0xf0] %v2097_v15  ;;  %2106 = vst [vmem:[#allocation2 + $0xd8] sm:$0xf0] %v2098_v16  ;;  %v2048_v41 = vpop.permute.xlu1 %2047  ;;  %v2053_v18 = vsel %vm5098_vm5, %v5097_v57, %v2046_v45 }
 0x405   : > { %v2054_v52 = vsel %vm5099_vm13, %v2046_v45, %v2048_v41  ;;  %v2061_v13 = vsel %vm5100_vm6, %v2053_v18, 0.0  ;;  %vm5111_vm5 = vmmov %vm5107_vm11  ;;  %vm5113_vm6 = vcmp.lt.s32.totalorder %v3507_v58, 8 }
 0x406   : > { %v2062_v55 = vsel %vm5101_vm4, %v2054_v52, 0.0  ;;  %2065 = vst [vmem:[#allocation2 + $0xc0] sm:$0xf] %v2061_v13  ;;  %vm5112_vm13 = vmmov %vm5111_vm5  ;;  %vm5114_vm4 = vcmp.lt.s32.totalorder %v3523_v44, 8 }
 0x407   : > { %2066 = vst [vmem:[#allocation2 + $0xc8] sm:$0xf] %v2062_v55  ;;  %v2050_v33 = vpop.permute.xlu0 %2049 }
 0x408   : > { %v2052_v4 = vpop.permute.xlu1 %2051  ;;  %v2055_v1 = vsel %vm5102_vm2, %v2048_v41, %v2050_v33  ;;  %vm5116_vm2 = vcmask 375808  }
 0x409   : > { %v2056_v39 = vsel %vm5103_vm7, %v2050_v33, %v2052_v4  ;;  %v2063_v9 = vsel %vm5104_vm10, %v2055_v1, 0.0  ;;  %vm5117_vm7 = vmmov %vm5116_vm2  ;;  %v2409_v33 = vld [vmem:[#allocation2 + $0x128] sm:$0xff] }
 0x40a   : > { %v2064_v7 = vsel %vm5105_vm9, %v2056_v39, 0.0  ;;  %2067 = vst [vmem:[#allocation2 + $0xd0] sm:$0xf] %v2063_v9  ;;  %vm5118_vm10 = vmmov %vm5116_vm2  ;;  %v2411_v39 = vld [vmem:[#allocation2 + $0x138] sm:$0xff]  ;;  %v2410_v9 = vld [vmem:[#allocation2 + $0x130] sm:$0xff] }
 0x40b   : > { %2068 = vst [vmem:[#allocation2 + $0xd8] sm:$0xf] %v2064_v7  ;;  %v2112_v36 = vpop.permute.xlu0 %2111  ;;  %vm5119_vm9 = vmmov %vm5116_vm2 }
 0x40c   : > { %v2110_v23 = vpop.permute.xlu1 %2109 }
 0x40d   : > { %v2117_v54 = vsel %vm5107_vm11, %v5106_v27, %v2110_v23  ;;  %v2118_v11 = vsel %vm5108_vm15, %v2110_v23, %v2112_v36  ;;  %v2396_v42 = vld [vmem:[#allocation2 + $0xc0] sm:$0xff]  ;;  %vm5124_vm11 = vnez %v4855_v40  ;;  %vm5125_vm15 = vnez %v4864_v0  ;;  %v2419_v23 = vld [vmem:[#allocation2 + $0x178] sm:$0xff] }
 0x40e   : > { %v2125_v38 = vsel %vm5109_vm12, %v2117_v54, 0.0  ;;  %v2126_v49 = vsel %vm5110_vm3, %v2118_v11, 0.0  ;;  %v2397_v62 = vld [vmem:[#allocation2 + $0xc8] sm:$0xff]  ;;  %vm5127_vm3 = vcmp.lt.s32.totalorder %v3606_v56, 8  ;;  %v2415_v27 = vld [vmem:[#allocation2 + $0x158] sm:$0xff] }
 0x40f   : > { %2129 = vst [vmem:[#allocation2 + $0xe0] sm:$0xf] %v2125_v38  ;;  %2130 = vst [vmem:[#allocation2 + $0xe8] sm:$0xf] %v2126_v49  ;;  %v2116_v34 = vpop.permute.xlu0 %2115  ;;  %v2972_v54 = vpack.c.bf16 %v2419_v23, %v2415_v27  ;;  %v2417_v11 = vld [vmem:[#allocation2 + $0x168] sm:$0xff]  ;;  %v2418_v38 = vld [vmem:[#allocation2 + $0x170] sm:$0xff] }
 0x410   : > { %v2114_v31 = vpop.permute.xlu1 %2113  ;;  %v2408_v49 = vld [vmem:[#allocation2 + $0x120] sm:$0xff] }
 0x411   : > { %v2119_v25 = vsel %vm5111_vm5, %v2112_v36, %v2114_v31  ;;  %v2120_v50 = vsel %vm5112_vm13, %v2114_v31, %v2116_v34  ;;  %v2398_v43 = vld [vmem:[#allocation2 + $0xd0] sm:$0xff]  ;;  %v2427_v31 = vld [vmem:[#allocation2 + $0x1b8] sm:$0xf]  ;;  %vm5130_vm13 = vcmask 883712  }
 0x412   : > { %v2127_v22 = vsel %vm5113_vm6, %v2119_v25, 0.0  ;;  %v2128_v32 = vsel %vm5114_vm4, %v2120_v50, 0.0  ;;  %v2399_v24 = vld [vmem:[#allocation2 + $0xd8] sm:$0xff]  ;;  %v2413_v25 = vld [vmem:[#allocation2 + $0x148] sm:$0xff]  ;;  %v2414_v50 = vld [vmem:[#allocation2 + $0x150] sm:$0xff]  ;;  %vm2602_vm4 = vcmask 31744  }
 0x413   : > { %2131 = vst [vmem:[#allocation2 + $0xf0] sm:$0xf] %v2127_v22  ;;  %2132 = vst [vmem:[#allocation2 + $0xf8] sm:$0xf] %v2128_v32  ;;  %v2202_v60 = vpop.permute.xlu0 %2201  ;;  %v2942_v22 = vpack.c.bf16 %v2417_v11, %v2413_v25  ;;  %v2974_v32 = vpack.c.bf16 %v2418_v38, %v2414_v50 }
 0x414   : > { %v2200_v63 = vpop.permute.xlu1 %2199  ;;  %vm5132_vm6 = vmmov %vm5130_vm13 }
 0x415   : > { %v2207_v30 = vsel %vm5116_vm2, %v5115_v29, %v2200_v63  ;;  %v2208_v53 = vsel %vm5117_vm7, %v2200_v63, %v2202_v60  ;;  %v2423_v63 = vld [vmem:[#allocation2 + $0x198] sm:$0xff]  ;;  %vm5133_vm2 = vcmask 1043456  }
 0x416   : > { %v2215_v20 = vsel %vm5066_vm0, %v2207_v30, 0.0  ;;  %v2216_v58 = vsel %vm5064_vm8, %v2208_v53, 0.0  ;;  %v2401_v61 = vld [vmem:[#allocation2 + $0xe8] sm:$0xff]  ;;  %v2400_v44 = vld [vmem:[#allocation2 + $0xe0] sm:$0xff]  ;;  %vm5120_vm8 = vcmask 384000   ;;  %vm5121_vm0 = vnez %v4850_v6  ;;  %vm5134_vm7 = vmmov %vm5133_vm2 }
 0x417   : > { %v2223_v51 = vrot.slane %v2215_v20, 4  ;;  %v2224_v47 = vrot.slane %v2216_v58, 4  ;;  %v2934_v5 = vpack.c.bf16 %v2401_v61, %v2397_v62  ;;  %v2936_v17 = vpack.c.bf16 %v2400_v44, %v2396_v42  ;;  %v2206_v37 = vpop.permute.xlu0 %2205  ;;  %v2425_v30 = vld [vmem:[#allocation2 + $0x1a8] sm:$0xf]  ;;  %v2426_v53 = vld [vmem:[#allocation2 + $0x1b0] sm:$0xf] }
 0x418   : > { %v2204_v46 = vpop.permute.xlu1 %2203  ;;  %v2976_v29 = vpack.c.bf16 %v2427_v31, %v2423_v63  ;;  %v2412_v62 = vld [vmem:[#allocation2 + $0x140] sm:$0xff]  ;;  %v5128_v20 = vld [vmem:[#allocation20_spill] sm:$0xff]  ;;  %v2422_v42 = vld [vmem:[#allocation2 + $0x190] sm:$0xff] }
 0x419   : > { %2231 = vst [vmem:[#allocation2 + $0x100] sm:$0xf0] %v2223_v51  ;;  %2232 = vst [vmem:[#allocation2 + $0x108] sm:$0xf0] %v2224_v47  ;;  %v2209_v3 = vsel %vm5118_vm10, %v2202_v60, %v2204_v46  ;;  %v2210_v14 = vsel %vm5119_vm9, %v2204_v46, %v2206_v37  ;;  %2935 = vmatprep.subr.bf16.mxu0 %v2934_v5  ;;  %v2416_v60 = vld [vmem:[#allocation2 + $0x160] sm:$0xff]  ;;  %vm5129_vm5 = vnez %v5128_v20  ;;  %v2421_v61 = vld [vmem:[#allocation2 + $0x188] sm:$0xff] }
 0x41a   : > { %v2217_v35 = vsel %vm5072_vm14, %v2209_v3, 0.0  ;;  %v2218_v2 = vsel %vm5074_vm1, %v2210_v14, 0.0  ;;  %2937 = vmatpush1.bf16.msra.mxu0 %v2936_v17  ;;  %v2403_v10 = vld [vmem:[#allocation2 + $0xf8] sm:$0xff]  ;;  %v2402_v19 = vld [vmem:[#allocation2 + $0xf0] sm:$0xff]  ;;  %vm5122_vm14 = vmmov %vm5120_vm8  ;;  %v2944_v58 = vpack.c.bf16 %v2416_v60, %v2412_v62  ;;  %v2946_v44 = vpack.c.bf16 %v2425_v30, %v2421_v61 }
 0x41b   : > { %v2225_v12 = vrot.slane %v2217_v35, 4  ;;  %v2226_v8 = vrot.slane %v2218_v2, 4  ;;  %v2964_v59 = vpack.c.bf16 %v2403_v10, %v2399_v24  ;;  %v2966_v21 = vpack.c.bf16 %v2402_v19, %v2398_v43  ;;  %v2174_v15 = vpop.permute.xlu0 %2173  ;;  %vm5123_vm1 = vmmov %vm5120_vm8  ;;  %v2424_v47 = vld [vmem:[#allocation2 + $0x1a0] sm:$0xf] }
 0x41c   : > { %v2176_v48 = vpop.permute.xlu1 %2175  ;;  %vm5126_vm12 = vmmov %vm5123_vm1  ;;  %v2979_v51 = vpack.c.bf16 %v2426_v53, %v2422_v42  ;;  %v2420_v5 = vld [vmem:[#allocation2 + $0x180] sm:$0xff]  ;;  %v5131_v37 = vmov 0.0  }
 0x41d   : > { %2233 = vst [vmem:[#allocation2 + $0x110] sm:$0xf0] %v2225_v12  ;;  %2234 = vst [vmem:[#allocation2 + $0x118] sm:$0xf0] %v2226_v8  ;;  %v2182_v16 = vsel %vm5120_vm8, %v2174_v15, %v2176_v48  ;;  %2965 = vmatprep.subr.bf16.mxu1 %v2964_v59  ;;  %v2371_v17 = vld [vmem:[%s4654_s3] sm:$0xf]  ;;  %v2949_v46 = vpack.c.bf16 %v2424_v47, %v2420_v5 }
 0x41e   : > { %v2190_v28 = vsel %vm5121_vm0, %v2182_v16, 0.0  ;;  %2967 = vmatpush1.bf16.msra.mxu1 %v2966_v21  ;;  %v2596_v3 = vld [vmem:[%s4657_s6] sm:$0xf]  ;;  %vm5135_vm10 = vmmov %vm5133_vm2 }
 0x41f   : > { %2194 = vst [vmem:[#allocation2 + $0x108] sm:$0xf] %v2190_v28  ;;  %v2178_v41 = vpop.permute.xlu0 %2177  ;;  %2599 = vperm.xlu0 %3012, %v2596_v3   ;;  %vm5136_vm9 = vmmov %vm5133_vm2 }
 0x420   : > { %v2180_v26 = vpop.permute.xlu1 %2179  ;;  %v2183_v45 = vsel %vm5122_vm14, %v2176_v48, %v2178_v41  ;;  %v2595_v48 = vld [vmem:[%s4656_s5] sm:$0xf] }
 0x421   : > { %v2184_v57 = vsel %vm5123_vm1, %v2178_v41, %v2180_v26  ;;  %v2191_v18 = vsel %vm5124_vm11, %v2183_v45, 0.0 }
 0x422   : > { %v2192_v52 = vsel %vm5125_vm15, %v2184_v57, 0.0  ;;  %2195 = vst [vmem:[#allocation2 + $0x110] sm:$0xf] %v2191_v18 }
 0x423   : > { %2196 = vst [vmem:[#allocation2 + $0x118] sm:$0xf] %v2192_v52  ;;  %v2172_v13 = vpop.permute.xlu0 %2171  ;;  %v3015_v52 = vld [vmem:[%s3102_s29 + $0x8] sm:$0xff] }
 0x424   : > { %v2181_v6 = vsel %vm5126_vm12, %v2172_v13, %v2174_v15 }
 0x425   : > { %v2189_v55 = vsel %vm5127_vm3, %v2181_v6, 0.0 }
 0x426   : > { %v2405_v4 = vld [vmem:[#allocation2 + $0x108] sm:$0xff]  ;;  %2193 = vst [vmem:[#allocation2 + $0x100] sm:$0xf] %v2189_v55 }
 0x427   : > { %v2938_v1 = vpack.c.bf16 %v2409_v33, %v2405_v4  ;;  %v5137_v4 = vld [vmem:[#allocation4_spill] sm:$0xff] }
 0x429   : > { %2939 = vmatprep.subr.bf16.mxu0 %v2938_v1  ;;  %v2406_v7 = vld [vmem:[#allocation2 + $0x110] sm:$0xff] }
 0x42a   : > { %v2407_v40 = vld [vmem:[#allocation2 + $0x118] sm:$0xff]  ;;  %v2970_v36 = vpack.c.bf16 %v2410_v9, %v2406_v7  ;;  %v5139_v7 = vld [vmem:[#allocation3_spill] sm:$0xff] }
 0x42b   : > { %v2968_v0 = vpack.c.bf16 %v2411_v39, %v2407_v40  ;;  %v3016_v39 = vld [vmem:[%s3102_s29] sm:$0xff] }
 0x42d   : > { %2969 = vmatprep.subr.bf16.mxu1 %v2968_v0  ;;  %v2404_v56 = vld [vmem:[#allocation2 + $0x100] sm:$0xff] }
 0x42e   : > { %2971 = vmatpush1.bf16.msra.mxu1 %v2970_v36  ;;  %v2940_v34 = vpack.c.bf16 %v2408_v49, %v2404_v56 }
 0x42f   : > { %2973 = vmatprep.subr.bf16.mxu1 %v2972_v54 }
 0x430   : > { %2941 = vmatpush1.bf16.msra.mxu0 %v2940_v34  ;;  %v2432_v14 = vpop.permute.xlu1 %2431 }
 0x431   : > { %2943 = vmatprep.subr.bf16.mxu0 %v2942_v22 }
 0x432   : > { %2975 = vmatpush1.bf16.msra.mxu1 %v2974_v32 }
 0x433   : > { %2978 = vmatprep.subr.msk.bf16.mxu1 %vm5129_vm5, %v2976_v29 }
 0x434   : > { %2945 = vmatpush1.bf16.msra.mxu0 %v2944_v58 }
 0x435   : > { %2948 = vmatprep.subr.msk.bf16.mxu0 %vm5129_vm5, %v2946_v44 }
 0x436   : > { %2981 = vmatpush1.bf16.msk.msra.mxu1 %vm5129_vm5, %v2979_v51 }
 0x438   : > { %2951 = vmatpush1.bf16.msk.msra.mxu0 %vm5129_vm5, %v2949_v46 }
 0x439   : > { %2851 = vmatmul.mubr.msk.f32.vlgmr.msra.gmra.mrb[2].mxu1 %vm5130_vm13, %v2371_v17 }
 0x43a   : > { %2753 = vmatprep.mubr.f32.mxu1 %v5131_v37 }
 0x43b   : > { %2848 = vmatmul.mubr.msk.f32.vlgmr.msra.gmra.mrb[2].mxu0 %vm5132_vm6, %v2371_v17 }
 0x43c   : > { %2682 = vmatprep.mubr.f32.mxu0 %v5131_v37 }
 0x49e   : > { %v2600_v28 = vpop.permute.xlu0 %2599 }
 0x50c   : > { %v2586_v24 = vpop.f32.mrb[2].mxu1 }
 0x50d   : > { %v2587_v35 = vadd.f32 %v2586_v24, %v2432_v14  ;;  %v2588_v2 = vpop.f32.mrb[3].mxu1 }
 0x50e   : > { %v2589_v10 = vadd.f32 %v2588_v2, %v2432_v14  ;;  %v2515_v43 = vpop.f32.mrb[2].mxu0 }
 0x50f   : > { %v2516_v12 = vadd.f32 %v2515_v43, %v2432_v14  ;;  %v2517_v8 = vpop.f32.mrb[3].mxu0  ;;  %v2593_v59 = vmax.f32 %v2587_v35, 0.0 }
 0x510   : > { %v2594_v19 = vmax.f32 %v2589_v10, 0.0  ;;  %v2518_v21 = vadd.f32 %v2517_v8, %v2432_v14 }
 0x511   : > { %v2591_v16 = vmax.f32 %v2516_v12, 0.0 }
 0x512   : > { %2855 = vmatprep.subr.msk.mxu1 %vm5133_vm2, %v2594_v19  ;;  %v2592_v15 = vmax.f32 %v2518_v21, 0.0 }
 0x513   : > { %2856 = vmatpush1.msk.msra.mxu1 %vm5134_vm7, %v2593_v59 }
 0x514   : > { %2857 = vmatmul.mubr.msk.f32.vlgmr.msra.gmra.mrb[4].mxu1 %vm2602_vm4, %v2595_v48  ;;  %2852 = vmatprep.subr.msk.mxu0 %vm5135_vm10, %v2592_v15 }
 0x515   : > { %2853 = vmatpush1.msk.msra.mxu0 %vm5136_vm9, %v2591_v16 }
 0x516   : > { %2854 = vmatmul.mubr.msk.f32.vlgmr.msra.gmra.mrb[4].mxu0 %vm2602_vm4, %v2595_v48 }
 0x5e7   : > { %v2755_v26 = vpop.f32.mrb[4].mxu1 }
 0x5e8   : > { %v2757_v41 = vpop.f32.mrb[5].mxu1  ;;  %v2756_v45 = vadd.f32 %v2755_v26, %v2600_v28 }
 0x5e9   : > { %v2758_v57 = vadd.f32 %v2757_v41, %v2600_v28  ;;  %v2684_v18 = vpop.f32.mrb[4].mxu0 }
 0x5ea   : > { %v2764_v13 = vadd.f32 %v3015_v52, %v2756_v45  ;;  %v2686_v6 = vpop.f32.mrb[5].mxu0  ;;  %v2685_v55 = vadd.f32 %v2684_v18, %v2600_v28 }
 0x5eb   : > { %v2765_v33 = vadd.f32 %v2758_v57, %v5137_v4  ;;  %v2687_v1 = vadd.f32 %v2686_v6, %v2600_v28 }
 0x5ec   : > { %v2762_v9 = vadd.f32 %v3016_v39, %v2685_v55 }
 0x5ed   : > { %v2771_v40 = vcombine.low %v2764_v13, %v2765_v33  ;;  %v2763_v23 = vadd.f32 %v2687_v1, %v5139_v7 }
 0x5ef   : > { %2775 = vst [vmem:[%s278_s18 + $0x8] sm:$0xff] %v2771_v40  ;;  %v2770_v0 = vcombine.low %v2762_v9, %v2763_v23 }
 0x5f1   : > { %2774 = vst [vmem:[%s278_s18] sm:$0xff] %v2770_v0 }
 0x5f2 PF: > { %s17_s24 = sadd.s32 1, %s3023_s24  }
 0x5f3   : > { %p14_p4 = scmp.ge.s32.totalorder %s17_s24, 4  }
 0x5f5   :  { %16 = sbr.rel (!%p14_p4) target bundleno = 1 (0x1), region = 78 }

</bundles_post_ra>
